<compile_context>
chip_gen: v5e
topology: v5e:2x2
jax: 0.10.0
libtpu: 0.0.40
codegen_flags: <defaults>
</compile_context>

<pallas_src>
import jax
import jax.numpy as jnp
from jax.experimental import pallas as pl
from jax.experimental.pallas import tpu as pltpu


VEC_ORDER = ('bih', 'bhh', 'b1', 'g1', 'be1', 'b2',
             'bm1', 'gm', 'bem', 'bm2', 'bc1', 'gc', 'bec', 'bc2')


# ----------------------------- fused kernel ---------------------------------
def _fused_kernel(x_ref, eps_z_ref, eps_s_ref,
                  wih_ref, whh_ref,
                  w1_ref, w2_ref, wm1_ref, wm2_ref, wc1_ref, wc2_ref,
                  vec_ref, out_ref):
    f32, bf16 = jnp.float32, jnp.bfloat16
    B = eps_z_ref.shape[0]
    L = wm1_ref.shape[0]
    H = whh_ref.shape[0]
    DH = w1_ref.shape[1]
    F = wm2_ref.shape[1]
    T = x_ref.shape[0] // B

    # ---- packed (1,N) parameter vectors: one (14,128) DMA, sliced here -----
    vec = vec_ref[...]

    def vrow(r, w):
        return vec[r:r + 1, 0:w]

    bih, bhh = vrow(0, 3 * H), vrow(1, 3 * H)
    b1, g1, be1 = vrow(2, DH), vrow(3, DH), vrow(4, DH)
    b2 = vrow(5, 2 * L)
    bm1, gm, bem, bm2 = vrow(6, DH), vrow(7, DH), vrow(8, DH), vrow(9, F)
    bc1, gc, bec, bc2 = vrow(10, DH), vrow(11, DH), vrow(12, DH), vrow(13, F * F)

    def mm(x, w):                         # bf16 MXU operands, f32 accumulate
        return jnp.dot(x.astype(bf16), w, preferred_element_type=f32)

    # ---- GRU: input projection hoisted out of the serial recurrence --------
    gi_all = mm(x_ref[...], wih_ref[...]) + bih            # (T*B, 3H), one matmul
    whh = whh_ref[...]
    h = jnp.zeros((B, H), f32)
    for t in range(T):                    # inherently serial; unrolled (T small, static)
        gi = gi_all[t * B:(t + 1) * B, :]
        gh = mm(h, whh) + bhh
        r = jax.nn.sigmoid(gi[:, :H] + gh[:, :H])
        zg = jax.nn.sigmoid(gi[:, H:2 * H] + gh[:, H:2 * H])
        n = jnp.tanh(gi[:, 2 * H:] + r * gh[:, 2 * H:])
        h = (1.0 - zg) * n + zg * h

    # ---- BatchNorm1d, training mode (batch stats, biased variance) ---------
    # TODO(synk): running-stat updates (a PyTorch train-mode side effect) are
    # not modeled; only the normalized forward output is computed.
    def batchnorm(x, gamma, beta):
        m = jnp.mean(x, axis=0, keepdims=True)
        var = jnp.mean((x - m) ** 2, axis=0, keepdims=True)
        return (x - m) * jax.lax.rsqrt(var + 1e-5) * gamma + beta

    # dist_predictor: Linear -> Tanh -> BN -> Linear -> Tanh
    t1 = batchnorm(jnp.tanh(mm(h, w1_ref[...]) + b1), g1, be1)
    mu_std = jnp.tanh(mm(t1, w2_ref[...]) + b2)
    mu, std = mu_std[:, :L], mu_std[:, L:]
    z = mu + std * eps_z_ref[...]                          # reparameterized latent

    # mean_generator: Linear -> Tanh -> BN -> Linear
    tmh = batchnorm(jnp.tanh(mm(z, wm1_ref[...]) + bm1), gm, bem)
    mean = mm(tmh, wm2_ref[...]) + bm2                     # (B, F)

    # cov_generator: Linear -> Tanh -> BN -> Linear -> ReLU
    tch = batchnorm(jnp.tanh(mm(z, wc1_ref[...]) + bc1), gc, bec)
    a = jnp.maximum(mm(tch, wc2_ref[...]) + bc2, 0.0).reshape(B, F, F)

    # covariance = a @ a^T + 0.01 * I
    ri = jax.lax.broadcasted_iota(jnp.int32, (1, F, F), 1)
    ci = jax.lax.broadcasted_iota(jnp.int32, (1, F, F), 2)
    eye = jnp.where(ri == ci, 0.01, 0.0).astype(f32)
    cov = jnp.einsum('bij,bkj->bik', a, a, preferred_element_type=f32) + eye

    # ---- MVN rsample: unrolled batched Cholesky (F small) + L @ eps --------
    # Lt[b, j, i] = L[b, i, j]: column j of L lives in sublane-row j so the
    # unrolled loop needs no lane<->sublane relayouts.
    lane_i = jax.lax.broadcasted_iota(jnp.int32, (1, 1, F), 2)
    sub_j = jax.lax.broadcasted_iota(jnp.int32, (1, F, 1), 1)
    Lt = jnp.zeros((B, F, F), f32)
    for j in range(F):
        cov_col = cov[:, j:j + 1, :]                                   # (B,1,F), row j == col j (symmetric)
        s = jnp.sum(Lt * Lt[:, :, j:j + 1], axis=1, keepdims=True)     # (B,1,F)  sum_{k<j} L[i,k]L[j,k]
        vj = cov_col - s
        d = jnp.sqrt(jnp.maximum(vj[:, :, j:j + 1], 1e-12))            # (B,1,1) = L[j,j]
        colv = jnp.where(lane_i >= j, vj / d, 0.0)                     # (B,1,F)
        Lt = Lt + colv * (sub_j == j).astype(f32)                      # place column j

    sample = mean + jnp.sum(Lt * eps_s_ref[...], axis=1)               # eps_s is (B,F,1)

    # ---- lane-dense output: full (B,128) slab, wrapper slices [:, :F] ------
    out_ref[...] = jnp.zeros(out_ref.shape, out_ref.dtype)
    out_ref[:, 0:F] = sample.astype(out_ref.dtype)


# ------------------------------ parameters ----------------------------------
def _pack_vectors(p):
    """Pack all (1,N) bias/gamma/beta vectors into one lane-padded (14, W) array."""
    lens = [int(p[n].size) for n in VEC_ORDER]
    width = max(128, ((max(lens) + 127) // 128) * 128)
    rows = [jnp.pad(p[n].reshape(-1), (0, width - int(p[n].size))) for n in VEC_ORDER]
    return jnp.stack(rows, axis=0).astype(jnp.float32)


def init_params(key, feature_size, rnn_hidden, dist_hidden, latent):
    keys = jax.random.split(key, 10)

    def nrm(k, shape, s):
        return jax.random.normal(k, shape, jnp.float32) * s

    F, H, DH, L = feature_size, rnn_hidden, dist_hidden, latent
    p = dict(
        # GRU (nn.init.normal_(w, 0, 0.02) as in the module); pre-transposed to [in,out].
        wih=nrm(keys[0], (F, 3 * H), 0.02),
        whh=nrm(keys[1], (H, 3 * H), 0.02),
        bih=nrm(keys[2], (1, 3 * H), 0.02),
        bhh=nrm(keys[3], (1, 3 * H), 0.02),
        # dist_predictor
        w1=nrm(keys[4], (H, DH), 0.1), b1=jnp.zeros((1, DH), jnp.float32),
        g1=jnp.ones((1, DH), jnp.float32), be1=jnp.zeros((1, DH), jnp.float32),
        w2=nrm(keys[5], (DH, 2 * L), 0.1), b2=jnp.zeros((1, 2 * L), jnp.float32),
        # mean_generator
        wm1=nrm(keys[6], (L, DH), 0.1), bm1=jnp.zeros((1, DH), jnp.float32),
        gm=jnp.ones((1, DH), jnp.float32), bem=jnp.zeros((1, DH), jnp.float32),
        wm2=nrm(keys[7], (DH, F), 0.1), bm2=jnp.zeros((1, F), jnp.float32),
        # cov_generator
        wc1=nrm(keys[8], (L, DH), 0.1), bc1=jnp.zeros((1, DH), jnp.float32),
        gc=jnp.ones((1, DH), jnp.float32), bec=jnp.zeros((1, DH), jnp.float32),
        wc2=nrm(keys[9], (DH, F * F), 0.1), bc2=jnp.zeros((1, F * F), jnp.float32),
    )
    p['vecs'] = _pack_vectors(p)
    return p


# ------------------------------- forward ------------------------------------
def joint_feature_generator_forward(params, past, key, latent_size):
    """Pallas forward: returns MultivariateNormal(mean, a a^T + 0.01 I).rsample()."""
    B, T, F = past.shape
    L = latent_size

    # Glue only: time-major 2-D view of `past`, deterministic noise draws, and
    # bf16 casts of the matmul weights (f32 accumulation happens in-kernel).
    x_tm = jnp.transpose(past, (1, 0, 2)).reshape(T * B, F)
    k_z, k_s = jax.random.split(key)
    eps_z = jax.random.normal(k_z, (B, L), jnp.float32)       # randn_like(mu)
    eps_s = jax.random.normal(k_s, (B, F, 1), jnp.float32)    # MVN rsample noise

    weights = tuple(params[k].astype(jnp.bfloat16)
                    for k in ('wih', 'whh', 'w1', 'w2', 'wm1', 'wm2', 'wc1', 'wc2'))

    out_pad = max(128, ((F + 127) // 128) * 128)              # lane-dense output slab
    vmem = pl.BlockSpec(memory_space=pltpu.MemorySpace.VMEM)
    out = pl.pallas_call(
        _fused_kernel,
        out_shape=jax.ShapeDtypeStruct((B, out_pad), jnp.float32),
        in_specs=[vmem] * (3 + len(weights) + 1),
        out_specs=vmem,
    )(x_tm, eps_z, eps_s, *weights, params['vecs'])
    return out[:, :F]


if __name__ == "__main__":
    B, T, F = 4, 8, 8          # batch, seq_len, feature_size
    H, DH, LAT = 32, 16, 16    # rnn_hidden_size, dist_hidden_size, latent_size

    key = jax.random.PRNGKey(0)
    kp, kx, ks = jax.random.split(key, 3)
    params = init_params(kp, F, H, DH, LAT)
    past = jax.random.normal(kx, (B, T, F), jnp.float32)

    fwd = jax.jit(joint_feature_generator_forward, static_argnums=(3,))
    out = jax.block_until_ready(fwd(params, past, ks, LAT))

    assert out.shape == (B, F), out.shape
    assert bool(jnp.all(jnp.isfinite(out)))
    print("KERNEL_OK")
</pallas_src>

<mosaic_0001>
module attributes {stable_mosaic.version = 11 : i64} {
  func.func @_fused_kernel(%arg0: memref<32x8xf32, #tpu.memory_space<vmem>>, %arg1: memref<4x16xf32, #tpu.memory_space<vmem>>, %arg2: memref<4x8x1xf32, #tpu.memory_space<vmem>>, %arg3: memref<8x96xbf16, #tpu.memory_space<vmem>>, %arg4: memref<32x96xbf16, #tpu.memory_space<vmem>>, %arg5: memref<32x16xbf16, #tpu.memory_space<vmem>>, %arg6: memref<16x32xbf16, #tpu.memory_space<vmem>>, %arg7: memref<16x16xbf16, #tpu.memory_space<vmem>>, %arg8: memref<16x8xbf16, #tpu.memory_space<vmem>>, %arg9: memref<16x16xbf16, #tpu.memory_space<vmem>>, %arg10: memref<16x64xbf16, #tpu.memory_space<vmem>>, %arg11: memref<14x128xf32, #tpu.memory_space<vmem>>, %arg12: memref<4x128xf32, #tpu.memory_space<vmem>>) attributes {dimension_semantics = [], scalar_prefetch = 0 : i64, scratch_operands = 0 : i64, tpu.core_type = #tpu.core_type<tc>} {
    %c0 = arith.constant 0 : index
    %c0_0 = arith.constant 0 : index
    %0 = vector.load %arg11[%c0, %c0_0] : memref<14x128xf32, #tpu.memory_space<vmem>>, vector<14x128xf32>
    %1 = vector.extract_strided_slice %0 {offsets = [0, 0], sizes = [1, 96], strides = [1, 1]} : vector<14x128xf32> to vector<1x96xf32>
    %2 = vector.extract_strided_slice %0 {offsets = [1, 0], sizes = [1, 96], strides = [1, 1]} : vector<14x128xf32> to vector<1x96xf32>
    %3 = vector.extract_strided_slice %0 {offsets = [2, 0], sizes = [1, 16], strides = [1, 1]} : vector<14x128xf32> to vector<1x16xf32>
    %4 = vector.extract_strided_slice %0 {offsets = [3, 0], sizes = [1, 16], strides = [1, 1]} : vector<14x128xf32> to vector<1x16xf32>
    %5 = vector.extract_strided_slice %0 {offsets = [4, 0], sizes = [1, 16], strides = [1, 1]} : vector<14x128xf32> to vector<1x16xf32>
    %6 = vector.extract_strided_slice %0 {offsets = [5, 0], sizes = [1, 32], strides = [1, 1]} : vector<14x128xf32> to vector<1x32xf32>
    %7 = vector.extract_strided_slice %0 {offsets = [6, 0], sizes = [1, 16], strides = [1, 1]} : vector<14x128xf32> to vector<1x16xf32>
    %8 = vector.extract_strided_slice %0 {offsets = [7, 0], sizes = [1, 16], strides = [1, 1]} : vector<14x128xf32> to vector<1x16xf32>
    %9 = vector.extract_strided_slice %0 {offsets = [8, 0], sizes = [1, 16], strides = [1, 1]} : vector<14x128xf32> to vector<1x16xf32>
    %10 = vector.extract_strided_slice %0 {offsets = [9, 0], sizes = [1, 8], strides = [1, 1]} : vector<14x128xf32> to vector<1x8xf32>
    %11 = vector.extract_strided_slice %0 {offsets = [10, 0], sizes = [1, 16], strides = [1, 1]} : vector<14x128xf32> to vector<1x16xf32>
    %12 = vector.extract_strided_slice %0 {offsets = [11, 0], sizes = [1, 16], strides = [1, 1]} : vector<14x128xf32> to vector<1x16xf32>
    %13 = vector.extract_strided_slice %0 {offsets = [12, 0], sizes = [1, 16], strides = [1, 1]} : vector<14x128xf32> to vector<1x16xf32>
    %14 = vector.extract_strided_slice %0 {offsets = [13, 0], sizes = [1, 64], strides = [1, 1]} : vector<14x128xf32> to vector<1x64xf32>
    %c0_1 = arith.constant 0 : index
    %c0_2 = arith.constant 0 : index
    %15 = vector.load %arg0[%c0_1, %c0_2] : memref<32x8xf32, #tpu.memory_space<vmem>>, vector<32x8xf32>
    %c0_3 = arith.constant 0 : index
    %c0_4 = arith.constant 0 : index
    %16 = vector.load %arg3[%c0_3, %c0_4] : memref<8x96xbf16, #tpu.memory_space<vmem>>, vector<8x96xbf16>
    %17 = arith.truncf %15 : vector<32x8xf32> to vector<32x8xbf16>
    %cst = arith.constant dense<0.000000e+00> : vector<32x96xf32>
    %18 = tpu.matmul %17, %16, %cst {dimension_numbers = #tpu.dot_dimension_numbers<[1], [0], [0], [1], [0, 0, 1, 1], [], []>} : vector<32x8xbf16>, vector<8x96xbf16>, vector<32x96xf32> -> vector<32x96xf32>
    %19 = vector.broadcast %1 : vector<1x96xf32> to vector<32x96xf32>
    %20 = arith.addf %18, %19 : vector<32x96xf32>
    %c0_5 = arith.constant 0 : index
    %c0_6 = arith.constant 0 : index
    %21 = vector.load %arg4[%c0_5, %c0_6] : memref<32x96xbf16, #tpu.memory_space<vmem>>, vector<32x96xbf16>
    %cst_7 = arith.constant 0.000000e+00 : f32
    %22 = vector.broadcast %cst_7 : f32 to vector<4x32xf32>
    %23 = vector.extract_strided_slice %20 {offsets = [0, 0], sizes = [4, 96], strides = [1, 1]} : vector<32x96xf32> to vector<4x96xf32>
    %24 = arith.truncf %22 : vector<4x32xf32> to vector<4x32xbf16>
    %cst_8 = arith.constant dense<0.000000e+00> : vector<4x96xf32>
    %25 = tpu.matmul %24, %21, %cst_8 {dimension_numbers = #tpu.dot_dimension_numbers<[1], [0], [0], [1], [0, 0, 1, 1], [], []>} : vector<4x32xbf16>, vector<32x96xbf16>, vector<4x96xf32> -> vector<4x96xf32>
    %26 = vector.broadcast %2 : vector<1x96xf32> to vector<4x96xf32>
    %27 = arith.addf %25, %26 : vector<4x96xf32>
    %28 = vector.extract_strided_slice %23 {offsets = [0, 0], sizes = [4, 32], strides = [1, 1]} : vector<4x96xf32> to vector<4x32xf32>
    %29 = vector.extract_strided_slice %27 {offsets = [0, 0], sizes = [4, 32], strides = [1, 1]} : vector<4x96xf32> to vector<4x32xf32>
    %30 = arith.addf %28, %29 : vector<4x32xf32>
    %31 = arith.negf %30 : vector<4x32xf32>
    %32 = math.exp %31 : vector<4x32xf32>
    %cst_9 = arith.constant 1.000000e+00 : f32
    %33 = vector.broadcast %cst_9 : f32 to vector<4x32xf32>
    %34 = arith.addf %33, %32 : vector<4x32xf32>
    %35 = arith.divf %33, %34 : vector<4x32xf32>
    %36 = vector.extract_strided_slice %23 {offsets = [0, 32], sizes = [4, 32], strides = [1, 1]} : vector<4x96xf32> to vector<4x32xf32>
    %37 = vector.extract_strided_slice %27 {offsets = [0, 32], sizes = [4, 32], strides = [1, 1]} : vector<4x96xf32> to vector<4x32xf32>
    %38 = arith.addf %36, %37 : vector<4x32xf32>
    %39 = arith.negf %38 : vector<4x32xf32>
    %40 = math.exp %39 : vector<4x32xf32>
    %cst_10 = arith.constant 1.000000e+00 : f32
    %41 = vector.broadcast %cst_10 : f32 to vector<4x32xf32>
    %42 = arith.addf %41, %40 : vector<4x32xf32>
    %43 = arith.divf %41, %42 : vector<4x32xf32>
    %44 = vector.extract_strided_slice %23 {offsets = [0, 64], sizes = [4, 32], strides = [1, 1]} : vector<4x96xf32> to vector<4x32xf32>
    %45 = vector.extract_strided_slice %27 {offsets = [0, 64], sizes = [4, 32], strides = [1, 1]} : vector<4x96xf32> to vector<4x32xf32>
    %46 = arith.mulf %35, %45 : vector<4x32xf32>
    %47 = arith.addf %44, %46 : vector<4x32xf32>
    %48 = math.tanh %47 : vector<4x32xf32>
    %cst_11 = arith.constant 1.000000e+00 : f32
    %49 = vector.broadcast %cst_11 : f32 to vector<4x32xf32>
    %50 = arith.subf %49, %43 : vector<4x32xf32>
    %51 = arith.mulf %50, %48 : vector<4x32xf32>
    %52 = arith.mulf %43, %22 : vector<4x32xf32>
    %53 = arith.addf %51, %52 : vector<4x32xf32>
    %54 = vector.extract_strided_slice %20 {offsets = [4, 0], sizes = [4, 96], strides = [1, 1]} : vector<32x96xf32> to vector<4x96xf32>
    %55 = arith.truncf %53 : vector<4x32xf32> to vector<4x32xbf16>
    %cst_12 = arith.constant dense<0.000000e+00> : vector<4x96xf32>
    %56 = tpu.matmul %55, %21, %cst_12 {dimension_numbers = #tpu.dot_dimension_numbers<[1], [0], [0], [1], [0, 0, 1, 1], [], []>} : vector<4x32xbf16>, vector<32x96xbf16>, vector<4x96xf32> -> vector<4x96xf32>
    %57 = vector.broadcast %2 : vector<1x96xf32> to vector<4x96xf32>
    %58 = arith.addf %56, %57 : vector<4x96xf32>
    %59 = vector.extract_strided_slice %54 {offsets = [0, 0], sizes = [4, 32], strides = [1, 1]} : vector<4x96xf32> to vector<4x32xf32>
    %60 = vector.extract_strided_slice %58 {offsets = [0, 0], sizes = [4, 32], strides = [1, 1]} : vector<4x96xf32> to vector<4x32xf32>
    %61 = arith.addf %59, %60 : vector<4x32xf32>
    %62 = arith.negf %61 : vector<4x32xf32>
    %63 = math.exp %62 : vector<4x32xf32>
    %cst_13 = arith.constant 1.000000e+00 : f32
    %64 = vector.broadcast %cst_13 : f32 to vector<4x32xf32>
    %65 = arith.addf %64, %63 : vector<4x32xf32>
    %66 = arith.divf %64, %65 : vector<4x32xf32>
    %67 = vector.extract_strided_slice %54 {offsets = [0, 32], sizes = [4, 32], strides = [1, 1]} : vector<4x96xf32> to vector<4x32xf32>
    %68 = vector.extract_strided_slice %58 {offsets = [0, 32], sizes = [4, 32], strides = [1, 1]} : vector<4x96xf32> to vector<4x32xf32>
    %69 = arith.addf %67, %68 : vector<4x32xf32>
    %70 = arith.negf %69 : vector<4x32xf32>
    %71 = math.exp %70 : vector<4x32xf32>
    %cst_14 = arith.constant 1.000000e+00 : f32
    %72 = vector.broadcast %cst_14 : f32 to vector<4x32xf32>
    %73 = arith.addf %72, %71 : vector<4x32xf32>
    %74 = arith.divf %72, %73 : vector<4x32xf32>
    %75 = vector.extract_strided_slice %54 {offsets = [0, 64], sizes = [4, 32], strides = [1, 1]} : vector<4x96xf32> to vector<4x32xf32>
    %76 = vector.extract_strided_slice %58 {offsets = [0, 64], sizes = [4, 32], strides = [1, 1]} : vector<4x96xf32> to vector<4x32xf32>
    %77 = arith.mulf %66, %76 : vector<4x32xf32>
    %78 = arith.addf %75, %77 : vector<4x32xf32>
    %79 = math.tanh %78 : vector<4x32xf32>
    %cst_15 = arith.constant 1.000000e+00 : f32
    %80 = vector.broadcast %cst_15 : f32 to vector<4x32xf32>
    %81 = arith.subf %80, %74 : vector<4x32xf32>
    %82 = arith.mulf %81, %79 : vector<4x32xf32>
    %83 = arith.mulf %74, %53 : vector<4x32xf32>
    %84 = arith.addf %82, %83 : vector<4x32xf32>
    %85 = vector.extract_strided_slice %20 {offsets = [8, 0], sizes = [4, 96], strides = [1, 1]} : vector<32x96xf32> to vector<4x96xf32>
    %86 = arith.truncf %84 : vector<4x32xf32> to vector<4x32xbf16>
    %cst_16 = arith.constant dense<0.000000e+00> : vector<4x96xf32>
    %87 = tpu.matmul %86, %21, %cst_16 {dimension_numbers = #tpu.dot_dimension_numbers<[1], [0], [0], [1], [0, 0, 1, 1], [], []>} : vector<4x32xbf16>, vector<32x96xbf16>, vector<4x96xf32> -> vector<4x96xf32>
    %88 = vector.broadcast %2 : vector<1x96xf32> to vector<4x96xf32>
    %89 = arith.addf %87, %88 : vector<4x96xf32>
    %90 = vector.extract_strided_slice %85 {offsets = [0, 0], sizes = [4, 32], strides = [1, 1]} : vector<4x96xf32> to vector<4x32xf32>
    %91 = vector.extract_strided_slice %89 {offsets = [0, 0], sizes = [4, 32], strides = [1, 1]} : vector<4x96xf32> to vector<4x32xf32>
    %92 = arith.addf %90, %91 : vector<4x32xf32>
    %93 = arith.negf %92 : vector<4x32xf32>
    %94 = math.exp %93 : vector<4x32xf32>
    %cst_17 = arith.constant 1.000000e+00 : f32
    %95 = vector.broadcast %cst_17 : f32 to vector<4x32xf32>
    %96 = arith.addf %95, %94 : vector<4x32xf32>
    %97 = arith.divf %95, %96 : vector<4x32xf32>
    %98 = vector.extract_strided_slice %85 {offsets = [0, 32], sizes = [4, 32], strides = [1, 1]} : vector<4x96xf32> to vector<4x32xf32>
    %99 = vector.extract_strided_slice %89 {offsets = [0, 32], sizes = [4, 32], strides = [1, 1]} : vector<4x96xf32> to vector<4x32xf32>
    %100 = arith.addf %98, %99 : vector<4x32xf32>
    %101 = arith.negf %100 : vector<4x32xf32>
    %102 = math.exp %101 : vector<4x32xf32>
    %cst_18 = arith.constant 1.000000e+00 : f32
    %103 = vector.broadcast %cst_18 : f32 to vector<4x32xf32>
    %104 = arith.addf %103, %102 : vector<4x32xf32>
    %105 = arith.divf %103, %104 : vector<4x32xf32>
    %106 = vector.extract_strided_slice %85 {offsets = [0, 64], sizes = [4, 32], strides = [1, 1]} : vector<4x96xf32> to vector<4x32xf32>
    %107 = vector.extract_strided_slice %89 {offsets = [0, 64], sizes = [4, 32], strides = [1, 1]} : vector<4x96xf32> to vector<4x32xf32>
    %108 = arith.mulf %97, %107 : vector<4x32xf32>
    %109 = arith.addf %106, %108 : vector<4x32xf32>
    %110 = math.tanh %109 : vector<4x32xf32>
    %cst_19 = arith.constant 1.000000e+00 : f32
    %111 = vector.broadcast %cst_19 : f32 to vector<4x32xf32>
    %112 = arith.subf %111, %105 : vector<4x32xf32>
    %113 = arith.mulf %112, %110 : vector<4x32xf32>
    %114 = arith.mulf %105, %84 : vector<4x32xf32>
    %115 = arith.addf %113, %114 : vector<4x32xf32>
    %116 = vector.extract_strided_slice %20 {offsets = [12, 0], sizes = [4, 96], strides = [1, 1]} : vector<32x96xf32> to vector<4x96xf32>
    %117 = arith.truncf %115 : vector<4x32xf32> to vector<4x32xbf16>
    %cst_20 = arith.constant dense<0.000000e+00> : vector<4x96xf32>
    %118 = tpu.matmul %117, %21, %cst_20 {dimension_numbers = #tpu.dot_dimension_numbers<[1], [0], [0], [1], [0, 0, 1, 1], [], []>} : vector<4x32xbf16>, vector<32x96xbf16>, vector<4x96xf32> -> vector<4x96xf32>
    %119 = vector.broadcast %2 : vector<1x96xf32> to vector<4x96xf32>
    %120 = arith.addf %118, %119 : vector<4x96xf32>
    %121 = vector.extract_strided_slice %116 {offsets = [0, 0], sizes = [4, 32], strides = [1, 1]} : vector<4x96xf32> to vector<4x32xf32>
    %122 = vector.extract_strided_slice %120 {offsets = [0, 0], sizes = [4, 32], strides = [1, 1]} : vector<4x96xf32> to vector<4x32xf32>
    %123 = arith.addf %121, %122 : vector<4x32xf32>
    %124 = arith.negf %123 : vector<4x32xf32>
    %125 = math.exp %124 : vector<4x32xf32>
    %cst_21 = arith.constant 1.000000e+00 : f32
    %126 = vector.broadcast %cst_21 : f32 to vector<4x32xf32>
    %127 = arith.addf %126, %125 : vector<4x32xf32>
    %128 = arith.divf %126, %127 : vector<4x32xf32>
    %129 = vector.extract_strided_slice %116 {offsets = [0, 32], sizes = [4, 32], strides = [1, 1]} : vector<4x96xf32> to vector<4x32xf32>
    %130 = vector.extract_strided_slice %120 {offsets = [0, 32], sizes = [4, 32], strides = [1, 1]} : vector<4x96xf32> to vector<4x32xf32>
    %131 = arith.addf %129, %130 : vector<4x32xf32>
    %132 = arith.negf %131 : vector<4x32xf32>
    %133 = math.exp %132 : vector<4x32xf32>
    %cst_22 = arith.constant 1.000000e+00 : f32
    %134 = vector.broadcast %cst_22 : f32 to vector<4x32xf32>
    %135 = arith.addf %134, %133 : vector<4x32xf32>
    %136 = arith.divf %134, %135 : vector<4x32xf32>
    %137 = vector.extract_strided_slice %116 {offsets = [0, 64], sizes = [4, 32], strides = [1, 1]} : vector<4x96xf32> to vector<4x32xf32>
    %138 = vector.extract_strided_slice %120 {offsets = [0, 64], sizes = [4, 32], strides = [1, 1]} : vector<4x96xf32> to vector<4x32xf32>
    %139 = arith.mulf %128, %138 : vector<4x32xf32>
    %140 = arith.addf %137, %139 : vector<4x32xf32>
    %141 = math.tanh %140 : vector<4x32xf32>
    %cst_23 = arith.constant 1.000000e+00 : f32
    %142 = vector.broadcast %cst_23 : f32 to vector<4x32xf32>
    %143 = arith.subf %142, %136 : vector<4x32xf32>
    %144 = arith.mulf %143, %141 : vector<4x32xf32>
    %145 = arith.mulf %136, %115 : vector<4x32xf32>
    %146 = arith.addf %144, %145 : vector<4x32xf32>
    %147 = vector.extract_strided_slice %20 {offsets = [16, 0], sizes = [4, 96], strides = [1, 1]} : vector<32x96xf32> to vector<4x96xf32>
    %148 = arith.truncf %146 : vector<4x32xf32> to vector<4x32xbf16>
    %cst_24 = arith.constant dense<0.000000e+00> : vector<4x96xf32>
    %149 = tpu.matmul %148, %21, %cst_24 {dimension_numbers = #tpu.dot_dimension_numbers<[1], [0], [0], [1], [0, 0, 1, 1], [], []>} : vector<4x32xbf16>, vector<32x96xbf16>, vector<4x96xf32> -> vector<4x96xf32>
    %150 = vector.broadcast %2 : vector<1x96xf32> to vector<4x96xf32>
    %151 = arith.addf %149, %150 : vector<4x96xf32>
    %152 = vector.extract_strided_slice %147 {offsets = [0, 0], sizes = [4, 32], strides = [1, 1]} : vector<4x96xf32> to vector<4x32xf32>
    %153 = vector.extract_strided_slice %151 {offsets = [0, 0], sizes = [4, 32], strides = [1, 1]} : vector<4x96xf32> to vector<4x32xf32>
    %154 = arith.addf %152, %153 : vector<4x32xf32>
    %155 = arith.negf %154 : vector<4x32xf32>
    %156 = math.exp %155 : vector<4x32xf32>
    %cst_25 = arith.constant 1.000000e+00 : f32
    %157 = vector.broadcast %cst_25 : f32 to vector<4x32xf32>
    %158 = arith.addf %157, %156 : vector<4x32xf32>
    %159 = arith.divf %157, %158 : vector<4x32xf32>
    %160 = vector.extract_strided_slice %147 {offsets = [0, 32], sizes = [4, 32], strides = [1, 1]} : vector<4x96xf32> to vector<4x32xf32>
    %161 = vector.extract_strided_slice %151 {offsets = [0, 32], sizes = [4, 32], strides = [1, 1]} : vector<4x96xf32> to vector<4x32xf32>
    %162 = arith.addf %160, %161 : vector<4x32xf32>
    %163 = arith.negf %162 : vector<4x32xf32>
    %164 = math.exp %163 : vector<4x32xf32>
    %cst_26 = arith.constant 1.000000e+00 : f32
    %165 = vector.broadcast %cst_26 : f32 to vector<4x32xf32>
    %166 = arith.addf %165, %164 : vector<4x32xf32>
    %167 = arith.divf %165, %166 : vector<4x32xf32>
    %168 = vector.extract_strided_slice %147 {offsets = [0, 64], sizes = [4, 32], strides = [1, 1]} : vector<4x96xf32> to vector<4x32xf32>
    %169 = vector.extract_strided_slice %151 {offsets = [0, 64], sizes = [4, 32], strides = [1, 1]} : vector<4x96xf32> to vector<4x32xf32>
    %170 = arith.mulf %159, %169 : vector<4x32xf32>
    %171 = arith.addf %168, %170 : vector<4x32xf32>
    %172 = math.tanh %171 : vector<4x32xf32>
    %cst_27 = arith.constant 1.000000e+00 : f32
    %173 = vector.broadcast %cst_27 : f32 to vector<4x32xf32>
    %174 = arith.subf %173, %167 : vector<4x32xf32>
    %175 = arith.mulf %174, %172 : vector<4x32xf32>
    %176 = arith.mulf %167, %146 : vector<4x32xf32>
    %177 = arith.addf %175, %176 : vector<4x32xf32>
    %178 = vector.extract_strided_slice %20 {offsets = [20, 0], sizes = [4, 96], strides = [1, 1]} : vector<32x96xf32> to vector<4x96xf32>
    %179 = arith.truncf %177 : vector<4x32xf32> to vector<4x32xbf16>
    %cst_28 = arith.constant dense<0.000000e+00> : vector<4x96xf32>
    %180 = tpu.matmul %179, %21, %cst_28 {dimension_numbers = #tpu.dot_dimension_numbers<[1], [0], [0], [1], [0, 0, 1, 1], [], []>} : vector<4x32xbf16>, vector<32x96xbf16>, vector<4x96xf32> -> vector<4x96xf32>
    %181 = vector.broadcast %2 : vector<1x96xf32> to vector<4x96xf32>
    %182 = arith.addf %180, %181 : vector<4x96xf32>
    %183 = vector.extract_strided_slice %178 {offsets = [0, 0], sizes = [4, 32], strides = [1, 1]} : vector<4x96xf32> to vector<4x32xf32>
    %184 = vector.extract_strided_slice %182 {offsets = [0, 0], sizes = [4, 32], strides = [1, 1]} : vector<4x96xf32> to vector<4x32xf32>
    %185 = arith.addf %183, %184 : vector<4x32xf32>
    %186 = arith.negf %185 : vector<4x32xf32>
    %187 = math.exp %186 : vector<4x32xf32>
    %cst_29 = arith.constant 1.000000e+00 : f32
    %188 = vector.broadcast %cst_29 : f32 to vector<4x32xf32>
    %189 = arith.addf %188, %187 : vector<4x32xf32>
    %190 = arith.divf %188, %189 : vector<4x32xf32>
    %191 = vector.extract_strided_slice %178 {offsets = [0, 32], sizes = [4, 32], strides = [1, 1]} : vector<4x96xf32> to vector<4x32xf32>
    %192 = vector.extract_strided_slice %182 {offsets = [0, 32], sizes = [4, 32], strides = [1, 1]} : vector<4x96xf32> to vector<4x32xf32>
    %193 = arith.addf %191, %192 : vector<4x32xf32>
    %194 = arith.negf %193 : vector<4x32xf32>
    %195 = math.exp %194 : vector<4x32xf32>
    %cst_30 = arith.constant 1.000000e+00 : f32
    %196 = vector.broadcast %cst_30 : f32 to vector<4x32xf32>
    %197 = arith.addf %196, %195 : vector<4x32xf32>
    %198 = arith.divf %196, %197 : vector<4x32xf32>
    %199 = vector.extract_strided_slice %178 {offsets = [0, 64], sizes = [4, 32], strides = [1, 1]} : vector<4x96xf32> to vector<4x32xf32>
    %200 = vector.extract_strided_slice %182 {offsets = [0, 64], sizes = [4, 32], strides = [1, 1]} : vector<4x96xf32> to vector<4x32xf32>
    %201 = arith.mulf %190, %200 : vector<4x32xf32>
    %202 = arith.addf %199, %201 : vector<4x32xf32>
    %203 = math.tanh %202 : vector<4x32xf32>
    %cst_31 = arith.constant 1.000000e+00 : f32
    %204 = vector.broadcast %cst_31 : f32 to vector<4x32xf32>
    %205 = arith.subf %204, %198 : vector<4x32xf32>
    %206 = arith.mulf %205, %203 : vector<4x32xf32>
    %207 = arith.mulf %198, %177 : vector<4x32xf32>
    %208 = arith.addf %206, %207 : vector<4x32xf32>
    %209 = vector.extract_strided_slice %20 {offsets = [24, 0], sizes = [4, 96], strides = [1, 1]} : vector<32x96xf32> to vector<4x96xf32>
    %210 = arith.truncf %208 : vector<4x32xf32> to vector<4x32xbf16>
    %cst_32 = arith.constant dense<0.000000e+00> : vector<4x96xf32>
    %211 = tpu.matmul %210, %21, %cst_32 {dimension_numbers = #tpu.dot_dimension_numbers<[1], [0], [0], [1], [0, 0, 1, 1], [], []>} : vector<4x32xbf16>, vector<32x96xbf16>, vector<4x96xf32> -> vector<4x96xf32>
    %212 = vector.broadcast %2 : vector<1x96xf32> to vector<4x96xf32>
    %213 = arith.addf %211, %212 : vector<4x96xf32>
    %214 = vector.extract_strided_slice %209 {offsets = [0, 0], sizes = [4, 32], strides = [1, 1]} : vector<4x96xf32> to vector<4x32xf32>
    %215 = vector.extract_strided_slice %213 {offsets = [0, 0], sizes = [4, 32], strides = [1, 1]} : vector<4x96xf32> to vector<4x32xf32>
    %216 = arith.addf %214, %215 : vector<4x32xf32>
    %217 = arith.negf %216 : vector<4x32xf32>
    %218 = math.exp %217 : vector<4x32xf32>
    %cst_33 = arith.constant 1.000000e+00 : f32
    %219 = vector.broadcast %cst_33 : f32 to vector<4x32xf32>
    %220 = arith.addf %219, %218 : vector<4x32xf32>
    %221 = arith.divf %219, %220 : vector<4x32xf32>
    %222 = vector.extract_strided_slice %209 {offsets = [0, 32], sizes = [4, 32], strides = [1, 1]} : vector<4x96xf32> to vector<4x32xf32>
    %223 = vector.extract_strided_slice %213 {offsets = [0, 32], sizes = [4, 32], strides = [1, 1]} : vector<4x96xf32> to vector<4x32xf32>
    %224 = arith.addf %222, %223 : vector<4x32xf32>
    %225 = arith.negf %224 : vector<4x32xf32>
    %226 = math.exp %225 : vector<4x32xf32>
    %cst_34 = arith.constant 1.000000e+00 : f32
    %227 = vector.broadcast %cst_34 : f32 to vector<4x32xf32>
    %228 = arith.addf %227, %226 : vector<4x32xf32>
    %229 = arith.divf %227, %228 : vector<4x32xf32>
    %230 = vector.extract_strided_slice %209 {offsets = [0, 64], sizes = [4, 32], strides = [1, 1]} : vector<4x96xf32> to vector<4x32xf32>
    %231 = vector.extract_strided_slice %213 {offsets = [0, 64], sizes = [4, 32], strides = [1, 1]} : vector<4x96xf32> to vector<4x32xf32>
    %232 = arith.mulf %221, %231 : vector<4x32xf32>
    %233 = arith.addf %230, %232 : vector<4x32xf32>
    %234 = math.tanh %233 : vector<4x32xf32>
    %cst_35 = arith.constant 1.000000e+00 : f32
    %235 = vector.broadcast %cst_35 : f32 to vector<4x32xf32>
    %236 = arith.subf %235, %229 : vector<4x32xf32>
    %237 = arith.mulf %236, %234 : vector<4x32xf32>
    %238 = arith.mulf %229, %208 : vector<4x32xf32>
    %239 = arith.addf %237, %238 : vector<4x32xf32>
    %240 = vector.extract_strided_slice %20 {offsets = [28, 0], sizes = [4, 96], strides = [1, 1]} : vector<32x96xf32> to vector<4x96xf32>
    %241 = arith.truncf %239 : vector<4x32xf32> to vector<4x32xbf16>
    %cst_36 = arith.constant dense<0.000000e+00> : vector<4x96xf32>
    %242 = tpu.matmul %241, %21, %cst_36 {dimension_numbers = #tpu.dot_dimension_numbers<[1], [0], [0], [1], [0, 0, 1, 1], [], []>} : vector<4x32xbf16>, vector<32x96xbf16>, vector<4x96xf32> -> vector<4x96xf32>
    %243 = vector.broadcast %2 : vector<1x96xf32> to vector<4x96xf32>
    %244 = arith.addf %242, %243 : vector<4x96xf32>
    %245 = vector.extract_strided_slice %240 {offsets = [0, 0], sizes = [4, 32], strides = [1, 1]} : vector<4x96xf32> to vector<4x32xf32>
    %246 = vector.extract_strided_slice %244 {offsets = [0, 0], sizes = [4, 32], strides = [1, 1]} : vector<4x96xf32> to vector<4x32xf32>
    %247 = arith.addf %245, %246 : vector<4x32xf32>
    %248 = arith.negf %247 : vector<4x32xf32>
    %249 = math.exp %248 : vector<4x32xf32>
    %cst_37 = arith.constant 1.000000e+00 : f32
    %250 = vector.broadcast %cst_37 : f32 to vector<4x32xf32>
    %251 = arith.addf %250, %249 : vector<4x32xf32>
    %252 = arith.divf %250, %251 : vector<4x32xf32>
    %253 = vector.extract_strided_slice %240 {offsets = [0, 32], sizes = [4, 32], strides = [1, 1]} : vector<4x96xf32> to vector<4x32xf32>
    %254 = vector.extract_strided_slice %244 {offsets = [0, 32], sizes = [4, 32], strides = [1, 1]} : vector<4x96xf32> to vector<4x32xf32>
    %255 = arith.addf %253, %254 : vector<4x32xf32>
    %256 = arith.negf %255 : vector<4x32xf32>
    %257 = math.exp %256 : vector<4x32xf32>
    %cst_38 = arith.constant 1.000000e+00 : f32
    %258 = vector.broadcast %cst_38 : f32 to vector<4x32xf32>
    %259 = arith.addf %258, %257 : vector<4x32xf32>
    %260 = arith.divf %258, %259 : vector<4x32xf32>
    %261 = vector.extract_strided_slice %240 {offsets = [0, 64], sizes = [4, 32], strides = [1, 1]} : vector<4x96xf32> to vector<4x32xf32>
    %262 = vector.extract_strided_slice %244 {offsets = [0, 64], sizes = [4, 32], strides = [1, 1]} : vector<4x96xf32> to vector<4x32xf32>
    %263 = arith.mulf %252, %262 : vector<4x32xf32>
    %264 = arith.addf %261, %263 : vector<4x32xf32>
    %265 = math.tanh %264 : vector<4x32xf32>
    %cst_39 = arith.constant 1.000000e+00 : f32
    %266 = vector.broadcast %cst_39 : f32 to vector<4x32xf32>
    %267 = arith.subf %266, %260 : vector<4x32xf32>
    %268 = arith.mulf %267, %265 : vector<4x32xf32>
    %269 = arith.mulf %260, %239 : vector<4x32xf32>
    %270 = arith.addf %268, %269 : vector<4x32xf32>
    %c0_40 = arith.constant 0 : index
    %c0_41 = arith.constant 0 : index
    %271 = vector.load %arg5[%c0_40, %c0_41] : memref<32x16xbf16, #tpu.memory_space<vmem>>, vector<32x16xbf16>
    %272 = arith.truncf %270 : vector<4x32xf32> to vector<4x32xbf16>
    %cst_42 = arith.constant dense<0.000000e+00> : vector<4x16xf32>
    %273 = tpu.matmul %272, %271, %cst_42 {dimension_numbers = #tpu.dot_dimension_numbers<[1], [0], [0], [1], [0, 0, 1, 1], [], []>} : vector<4x32xbf16>, vector<32x16xbf16>, vector<4x16xf32> -> vector<4x16xf32>
    %274 = vector.broadcast %3 : vector<1x16xf32> to vector<4x16xf32>
    %275 = arith.addf %273, %274 : vector<4x16xf32>
    %276 = math.tanh %275 : vector<4x16xf32>
    %cst_43 = arith.constant dense<0.000000e+00> : vector<16xf32>
    %277 = vector.multi_reduction <add>, %276, %cst_43 [0] : vector<4x16xf32> to vector<16xf32>
    %278 = vector.shape_cast %277 : vector<16xf32> to vector<1x16xf32>
    %cst_44 = arith.constant 4.000000e+00 : f32
    %279 = vector.broadcast %cst_44 : f32 to vector<1x16xf32>
    %280 = arith.divf %278, %279 : vector<1x16xf32>
    %281 = vector.broadcast %280 : vector<1x16xf32> to vector<4x16xf32>
    %282 = arith.subf %276, %281 : vector<4x16xf32>
    %283 = arith.mulf %282, %282 : vector<4x16xf32>
    %cst_45 = arith.constant dense<0.000000e+00> : vector<16xf32>
    %284 = vector.multi_reduction <add>, %283, %cst_45 [0] : vector<4x16xf32> to vector<16xf32>
    %285 = vector.shape_cast %284 : vector<16xf32> to vector<1x16xf32>
    %cst_46 = arith.constant 4.000000e+00 : f32
    %286 = vector.broadcast %cst_46 : f32 to vector<1x16xf32>
    %287 = arith.divf %285, %286 : vector<1x16xf32>
    %288 = vector.broadcast %280 : vector<1x16xf32> to vector<4x16xf32>
    %289 = arith.subf %276, %288 : vector<4x16xf32>
    %cst_47 = arith.constant 9.99999974E-6 : f32
    %290 = vector.broadcast %cst_47 : f32 to vector<1x16xf32>
    %291 = arith.addf %287, %290 : vector<1x16xf32>
    %292 = math.rsqrt %291 : vector<1x16xf32>
    %293 = vector.broadcast %292 : vector<1x16xf32> to vector<4x16xf32>
    %294 = arith.mulf %289, %293 : vector<4x16xf32>
    %295 = vector.broadcast %4 : vector<1x16xf32> to vector<4x16xf32>
    %296 = arith.mulf %294, %295 : vector<4x16xf32>
    %297 = vector.broadcast %5 : vector<1x16xf32> to vector<4x16xf32>
    %298 = arith.addf %296, %297 : vector<4x16xf32>
    %c0_48 = arith.constant 0 : index
    %c0_49 = arith.constant 0 : index
    %299 = vector.load %arg6[%c0_48, %c0_49] : memref<16x32xbf16, #tpu.memory_space<vmem>>, vector<16x32xbf16>
    %300 = arith.truncf %298 : vector<4x16xf32> to vector<4x16xbf16>
    %cst_50 = arith.constant dense<0.000000e+00> : vector<4x32xf32>
    %301 = tpu.matmul %300, %299, %cst_50 {dimension_numbers = #tpu.dot_dimension_numbers<[1], [0], [0], [1], [0, 0, 1, 1], [], []>} : vector<4x16xbf16>, vector<16x32xbf16>, vector<4x32xf32> -> vector<4x32xf32>
    %302 = vector.broadcast %6 : vector<1x32xf32> to vector<4x32xf32>
    %303 = arith.addf %301, %302 : vector<4x32xf32>
    %304 = math.tanh %303 : vector<4x32xf32>
    %305 = vector.extract_strided_slice %304 {offsets = [0, 0], sizes = [4, 16], strides = [1, 1]} : vector<4x32xf32> to vector<4x16xf32>
    %306 = vector.extract_strided_slice %304 {offsets = [0, 16], sizes = [4, 16], strides = [1, 1]} : vector<4x32xf32> to vector<4x16xf32>
    %c0_51 = arith.constant 0 : index
    %c0_52 = arith.constant 0 : index
    %307 = vector.load %arg1[%c0_51, %c0_52] : memref<4x16xf32, #tpu.memory_space<vmem>>, vector<4x16xf32>
    %308 = arith.mulf %306, %307 : vector<4x16xf32>
    %309 = arith.addf %305, %308 : vector<4x16xf32>
    %c0_53 = arith.constant 0 : index
    %c0_54 = arith.constant 0 : index
    %310 = vector.load %arg7[%c0_53, %c0_54] : memref<16x16xbf16, #tpu.memory_space<vmem>>, vector<16x16xbf16>
    %311 = arith.truncf %309 : vector<4x16xf32> to vector<4x16xbf16>
    %cst_55 = arith.constant dense<0.000000e+00> : vector<4x16xf32>
    %312 = tpu.matmul %311, %310, %cst_55 {dimension_numbers = #tpu.dot_dimension_numbers<[1], [0], [0], [1], [0, 0, 1, 1], [], []>} : vector<4x16xbf16>, vector<16x16xbf16>, vector<4x16xf32> -> vector<4x16xf32>
    %313 = vector.broadcast %7 : vector<1x16xf32> to vector<4x16xf32>
    %314 = arith.addf %312, %313 : vector<4x16xf32>
    %315 = math.tanh %314 : vector<4x16xf32>
    %cst_56 = arith.constant dense<0.000000e+00> : vector<16xf32>
    %316 = vector.multi_reduction <add>, %315, %cst_56 [0] : vector<4x16xf32> to vector<16xf32>
    %317 = vector.shape_cast %316 : vector<16xf32> to vector<1x16xf32>
    %cst_57 = arith.constant 4.000000e+00 : f32
    %318 = vector.broadcast %cst_57 : f32 to vector<1x16xf32>
    %319 = arith.divf %317, %318 : vector<1x16xf32>
    %320 = vector.broadcast %319 : vector<1x16xf32> to vector<4x16xf32>
    %321 = arith.subf %315, %320 : vector<4x16xf32>
    %322 = arith.mulf %321, %321 : vector<4x16xf32>
    %cst_58 = arith.constant dense<0.000000e+00> : vector<16xf32>
    %323 = vector.multi_reduction <add>, %322, %cst_58 [0] : vector<4x16xf32> to vector<16xf32>
    %324 = vector.shape_cast %323 : vector<16xf32> to vector<1x16xf32>
    %cst_59 = arith.constant 4.000000e+00 : f32
    %325 = vector.broadcast %cst_59 : f32 to vector<1x16xf32>
    %326 = arith.divf %324, %325 : vector<1x16xf32>
    %327 = vector.broadcast %319 : vector<1x16xf32> to vector<4x16xf32>
    %328 = arith.subf %315, %327 : vector<4x16xf32>
    %cst_60 = arith.constant 9.99999974E-6 : f32
    %329 = vector.broadcast %cst_60 : f32 to vector<1x16xf32>
    %330 = arith.addf %326, %329 : vector<1x16xf32>
    %331 = math.rsqrt %330 : vector<1x16xf32>
    %332 = vector.broadcast %331 : vector<1x16xf32> to vector<4x16xf32>
    %333 = arith.mulf %328, %332 : vector<4x16xf32>
    %334 = vector.broadcast %8 : vector<1x16xf32> to vector<4x16xf32>
    %335 = arith.mulf %333, %334 : vector<4x16xf32>
    %336 = vector.broadcast %9 : vector<1x16xf32> to vector<4x16xf32>
    %337 = arith.addf %335, %336 : vector<4x16xf32>
    %c0_61 = arith.constant 0 : index
    %c0_62 = arith.constant 0 : index
    %338 = vector.load %arg8[%c0_61, %c0_62] : memref<16x8xbf16, #tpu.memory_space<vmem>>, vector<16x8xbf16>
    %339 = arith.truncf %337 : vector<4x16xf32> to vector<4x16xbf16>
    %cst_63 = arith.constant dense<0.000000e+00> : vector<4x8xf32>
    %340 = tpu.matmul %339, %338, %cst_63 {dimension_numbers = #tpu.dot_dimension_numbers<[1], [0], [0], [1], [0, 0, 1, 1], [], []>} : vector<4x16xbf16>, vector<16x8xbf16>, vector<4x8xf32> -> vector<4x8xf32>
    %341 = vector.broadcast %10 : vector<1x8xf32> to vector<4x8xf32>
    %342 = arith.addf %340, %341 : vector<4x8xf32>
    %c0_64 = arith.constant 0 : index
    %c0_65 = arith.constant 0 : index
    %343 = vector.load %arg9[%c0_64, %c0_65] : memref<16x16xbf16, #tpu.memory_space<vmem>>, vector<16x16xbf16>
    %344 = arith.truncf %309 : vector<4x16xf32> to vector<4x16xbf16>
    %cst_66 = arith.constant dense<0.000000e+00> : vector<4x16xf32>
    %345 = tpu.matmul %344, %343, %cst_66 {dimension_numbers = #tpu.dot_dimension_numbers<[1], [0], [0], [1], [0, 0, 1, 1], [], []>} : vector<4x16xbf16>, vector<16x16xbf16>, vector<4x16xf32> -> vector<4x16xf32>
    %346 = vector.broadcast %11 : vector<1x16xf32> to vector<4x16xf32>
    %347 = arith.addf %345, %346 : vector<4x16xf32>
    %348 = math.tanh %347 : vector<4x16xf32>
    %cst_67 = arith.constant dense<0.000000e+00> : vector<16xf32>
    %349 = vector.multi_reduction <add>, %348, %cst_67 [0] : vector<4x16xf32> to vector<16xf32>
    %350 = vector.shape_cast %349 : vector<16xf32> to vector<1x16xf32>
    %cst_68 = arith.constant 4.000000e+00 : f32
    %351 = vector.broadcast %cst_68 : f32 to vector<1x16xf32>
    %352 = arith.divf %350, %351 : vector<1x16xf32>
    %353 = vector.broadcast %352 : vector<1x16xf32> to vector<4x16xf32>
    %354 = arith.subf %348, %353 : vector<4x16xf32>
    %355 = arith.mulf %354, %354 : vector<4x16xf32>
    %cst_69 = arith.constant dense<0.000000e+00> : vector<16xf32>
    %356 = vector.multi_reduction <add>, %355, %cst_69 [0] : vector<4x16xf32> to vector<16xf32>
    %357 = vector.shape_cast %356 : vector<16xf32> to vector<1x16xf32>
    %cst_70 = arith.constant 4.000000e+00 : f32
    %358 = vector.broadcast %cst_70 : f32 to vector<1x16xf32>
    %359 = arith.divf %357, %358 : vector<1x16xf32>
    %360 = vector.broadcast %352 : vector<1x16xf32> to vector<4x16xf32>
    %361 = arith.subf %348, %360 : vector<4x16xf32>
    %cst_71 = arith.constant 9.99999974E-6 : f32
    %362 = vector.broadcast %cst_71 : f32 to vector<1x16xf32>
    %363 = arith.addf %359, %362 : vector<1x16xf32>
    %364 = math.rsqrt %363 : vector<1x16xf32>
    %365 = vector.broadcast %364 : vector<1x16xf32> to vector<4x16xf32>
    %366 = arith.mulf %361, %365 : vector<4x16xf32>
    %367 = vector.broadcast %12 : vector<1x16xf32> to vector<4x16xf32>
    %368 = arith.mulf %366, %367 : vector<4x16xf32>
    %369 = vector.broadcast %13 : vector<1x16xf32> to vector<4x16xf32>
    %370 = arith.addf %368, %369 : vector<4x16xf32>
    %c0_72 = arith.constant 0 : index
    %c0_73 = arith.constant 0 : index
    %371 = vector.load %arg10[%c0_72, %c0_73] : memref<16x64xbf16, #tpu.memory_space<vmem>>, vector<16x64xbf16>
    %372 = arith.truncf %370 : vector<4x16xf32> to vector<4x16xbf16>
    %cst_74 = arith.constant dense<0.000000e+00> : vector<4x64xf32>
    %373 = tpu.matmul %372, %371, %cst_74 {dimension_numbers = #tpu.dot_dimension_numbers<[1], [0], [0], [1], [0, 0, 1, 1], [], []>} : vector<4x16xbf16>, vector<16x64xbf16>, vector<4x64xf32> -> vector<4x64xf32>
    %374 = vector.broadcast %14 : vector<1x64xf32> to vector<4x64xf32>
    %375 = arith.addf %373, %374 : vector<4x64xf32>
    %cst_75 = arith.constant 0.000000e+00 : f32
    %376 = vector.broadcast %cst_75 : f32 to vector<4x64xf32>
    %377 = arith.maximumf %375, %376 : vector<4x64xf32>
    %378 = vector.shape_cast %377 : vector<4x64xf32> to vector<4x8x8xf32>
    %379 = tpu.iota {dimensions = array<i32: 1>} : vector<1x8x8xi32>
    %380 = tpu.iota {dimensions = array<i32: 2>} : vector<1x8x8xi32>
    %381 = arith.cmpi eq, %379, %380 : vector<1x8x8xi32>
    %cst_76 = arith.constant 0.00999999977 : f32
    %cst_77 = arith.constant 0.000000e+00 : f32
    %382 = vector.broadcast %cst_76 : f32 to vector<1x8x8xf32>
    %383 = vector.broadcast %cst_77 : f32 to vector<1x8x8xf32>
    %384 = arith.select %381, %382, %383 : vector<1x8x8xi1>, vector<1x8x8xf32>
    "tpu.trace_start"() <{level = 10 : i32, message = "bij,bkj->bik"}> : () -> ()
    %cst_78 = arith.constant dense<0.000000e+00> : vector<4x8x8xf32>
    %385 = tpu.matmul %378, %378, %cst_78 {dimension_numbers = #tpu.dot_dimension_numbers<[2], [2], [1], [1], [0, 0, 0, 1, 1, 1], [0], [0]>} : vector<4x8x8xf32>, vector<4x8x8xf32>, vector<4x8x8xf32> -> vector<4x8x8xf32>
    "tpu.trace_stop"() : () -> ()
    %386 = vector.broadcast %384 : vector<1x8x8xf32> to vector<4x8x8xf32>
    %387 = arith.addf %385, %386 : vector<4x8x8xf32>
    %388 = tpu.iota {dimensions = array<i32: 2>} : vector<1x1x8xi32>
    %389 = tpu.iota {dimensions = array<i32: 1>} : vector<1x8x1xi32>
    %cst_79 = arith.constant 0.000000e+00 : f32
    %390 = vector.broadcast %cst_79 : f32 to vector<4x8x8xf32>
    %391 = vector.extract_strided_slice %387 {offsets = [0, 0, 0], sizes = [4, 1, 8], strides = [1, 1, 1]} : vector<4x8x8xf32> to vector<4x1x8xf32>
    %392 = vector.extract_strided_slice %390 {offsets = [0, 0, 0], sizes = [4, 8, 1], strides = [1, 1, 1]} : vector<4x8x8xf32> to vector<4x8x1xf32>
    %393 = vector.broadcast %392 : vector<4x8x1xf32> to vector<4x8x8xf32>
    %394 = arith.mulf %390, %393 : vector<4x8x8xf32>
    %cst_80 = arith.constant dense<0.000000e+00> : vector<4x8xf32>
    %395 = vector.multi_reduction <add>, %394, %cst_80 [1] : vector<4x8x8xf32> to vector<4x8xf32>
    %396 = vector.shape_cast %395 : vector<4x8xf32> to vector<4x1x8xf32>
    %397 = arith.subf %391, %396 : vector<4x1x8xf32>
    %398 = vector.extract_strided_slice %397 {offsets = [0, 0, 0], sizes = [4, 1, 1], strides = [1, 1, 1]} : vector<4x1x8xf32> to vector<4x1x1xf32>
    %cst_81 = arith.constant 9.99999996E-13 : f32
    %399 = vector.broadcast %cst_81 : f32 to vector<4x1x1xf32>
    %400 = arith.maximumf %398, %399 : vector<4x1x1xf32>
    %401 = math.sqrt %400 : vector<4x1x1xf32>
    %c0_i32 = arith.constant 0 : i32
    %402 = vector.broadcast %c0_i32 : i32 to vector<1x1x8xi32>
    %403 = arith.cmpi sge, %388, %402 : vector<1x1x8xi32>
    %404 = vector.broadcast %401 : vector<4x1x1xf32> to vector<4x1x8xf32>
    %405 = arith.divf %397, %404 : vector<4x1x8xf32>
    %cst_82 = arith.constant 0.000000e+00 : f32
    %406 = vector.shape_cast %403 : vector<1x1x8xi1> to vector<1x1x8xi1>
    %407 = vector.broadcast %406 : vector<1x1x8xi1> to vector<4x1x8xi1>
    %408 = vector.broadcast %cst_82 : f32 to vector<4x1x8xf32>
    %409 = arith.select %407, %405, %408 : vector<4x1x8xi1>, vector<4x1x8xf32>
    %c0_i32_83 = arith.constant 0 : i32
    %410 = vector.broadcast %c0_i32_83 : i32 to vector<1x8x1xi32>
    %411 = arith.cmpi eq, %389, %410 : vector<1x8x1xi32>
    %412 = arith.extui %411 : vector<1x8x1xi1> to vector<1x8x1xi32>
    %413 = arith.sitofp %412 : vector<1x8x1xi32> to vector<1x8x1xf32>
    %414 = vector.broadcast %409 : vector<4x1x8xf32> to vector<4x8x8xf32>
    %415 = vector.broadcast %413 : vector<1x8x1xf32> to vector<4x8x8xf32>
    %416 = arith.mulf %414, %415 : vector<4x8x8xf32>
    %417 = arith.addf %390, %416 : vector<4x8x8xf32>
    %418 = vector.extract_strided_slice %387 {offsets = [0, 1, 0], sizes = [4, 1, 8], strides = [1, 1, 1]} : vector<4x8x8xf32> to vector<4x1x8xf32>
    %419 = vector.extract_strided_slice %417 {offsets = [0, 0, 1], sizes = [4, 8, 1], strides = [1, 1, 1]} : vector<4x8x8xf32> to vector<4x8x1xf32>
    %420 = vector.broadcast %419 : vector<4x8x1xf32> to vector<4x8x8xf32>
    %421 = arith.mulf %417, %420 : vector<4x8x8xf32>
    %cst_84 = arith.constant dense<0.000000e+00> : vector<4x8xf32>
    %422 = vector.multi_reduction <add>, %421, %cst_84 [1] : vector<4x8x8xf32> to vector<4x8xf32>
    %423 = vector.shape_cast %422 : vector<4x8xf32> to vector<4x1x8xf32>
    %424 = arith.subf %418, %423 : vector<4x1x8xf32>
    %425 = vector.extract_strided_slice %424 {offsets = [0, 0, 1], sizes = [4, 1, 1], strides = [1, 1, 1]} : vector<4x1x8xf32> to vector<4x1x1xf32>
    %cst_85 = arith.constant 9.99999996E-13 : f32
    %426 = vector.broadcast %cst_85 : f32 to vector<4x1x1xf32>
    %427 = arith.maximumf %425, %426 : vector<4x1x1xf32>
    %428 = math.sqrt %427 : vector<4x1x1xf32>
    %c1_i32 = arith.constant 1 : i32
    %429 = vector.broadcast %c1_i32 : i32 to vector<1x1x8xi32>
    %430 = arith.cmpi sge, %388, %429 : vector<1x1x8xi32>
    %431 = vector.broadcast %428 : vector<4x1x1xf32> to vector<4x1x8xf32>
    %432 = arith.divf %424, %431 : vector<4x1x8xf32>
    %cst_86 = arith.constant 0.000000e+00 : f32
    %433 = vector.shape_cast %430 : vector<1x1x8xi1> to vector<1x1x8xi1>
    %434 = vector.broadcast %433 : vector<1x1x8xi1> to vector<4x1x8xi1>
    %435 = vector.broadcast %cst_86 : f32 to vector<4x1x8xf32>
    %436 = arith.select %434, %432, %435 : vector<4x1x8xi1>, vector<4x1x8xf32>
    %c1_i32_87 = arith.constant 1 : i32
    %437 = vector.broadcast %c1_i32_87 : i32 to vector<1x8x1xi32>
    %438 = arith.cmpi eq, %389, %437 : vector<1x8x1xi32>
    %439 = arith.extui %438 : vector<1x8x1xi1> to vector<1x8x1xi32>
    %440 = arith.sitofp %439 : vector<1x8x1xi32> to vector<1x8x1xf32>
    %441 = vector.broadcast %436 : vector<4x1x8xf32> to vector<4x8x8xf32>
    %442 = vector.broadcast %440 : vector<1x8x1xf32> to vector<4x8x8xf32>
    %443 = arith.mulf %441, %442 : vector<4x8x8xf32>
    %444 = arith.addf %417, %443 : vector<4x8x8xf32>
    %445 = vector.extract_strided_slice %387 {offsets = [0, 2, 0], sizes = [4, 1, 8], strides = [1, 1, 1]} : vector<4x8x8xf32> to vector<4x1x8xf32>
    %446 = vector.extract_strided_slice %444 {offsets = [0, 0, 2], sizes = [4, 8, 1], strides = [1, 1, 1]} : vector<4x8x8xf32> to vector<4x8x1xf32>
    %447 = vector.broadcast %446 : vector<4x8x1xf32> to vector<4x8x8xf32>
    %448 = arith.mulf %444, %447 : vector<4x8x8xf32>
    %cst_88 = arith.constant dense<0.000000e+00> : vector<4x8xf32>
    %449 = vector.multi_reduction <add>, %448, %cst_88 [1] : vector<4x8x8xf32> to vector<4x8xf32>
    %450 = vector.shape_cast %449 : vector<4x8xf32> to vector<4x1x8xf32>
    %451 = arith.subf %445, %450 : vector<4x1x8xf32>
    %452 = vector.extract_strided_slice %451 {offsets = [0, 0, 2], sizes = [4, 1, 1], strides = [1, 1, 1]} : vector<4x1x8xf32> to vector<4x1x1xf32>
    %cst_89 = arith.constant 9.99999996E-13 : f32
    %453 = vector.broadcast %cst_89 : f32 to vector<4x1x1xf32>
    %454 = arith.maximumf %452, %453 : vector<4x1x1xf32>
    %455 = math.sqrt %454 : vector<4x1x1xf32>
    %c2_i32 = arith.constant 2 : i32
    %456 = vector.broadcast %c2_i32 : i32 to vector<1x1x8xi32>
    %457 = arith.cmpi sge, %388, %456 : vector<1x1x8xi32>
    %458 = vector.broadcast %455 : vector<4x1x1xf32> to vector<4x1x8xf32>
    %459 = arith.divf %451, %458 : vector<4x1x8xf32>
    %cst_90 = arith.constant 0.000000e+00 : f32
    %460 = vector.shape_cast %457 : vector<1x1x8xi1> to vector<1x1x8xi1>
    %461 = vector.broadcast %460 : vector<1x1x8xi1> to vector<4x1x8xi1>
    %462 = vector.broadcast %cst_90 : f32 to vector<4x1x8xf32>
    %463 = arith.select %461, %459, %462 : vector<4x1x8xi1>, vector<4x1x8xf32>
    %c2_i32_91 = arith.constant 2 : i32
    %464 = vector.broadcast %c2_i32_91 : i32 to vector<1x8x1xi32>
    %465 = arith.cmpi eq, %389, %464 : vector<1x8x1xi32>
    %466 = arith.extui %465 : vector<1x8x1xi1> to vector<1x8x1xi32>
    %467 = arith.sitofp %466 : vector<1x8x1xi32> to vector<1x8x1xf32>
    %468 = vector.broadcast %463 : vector<4x1x8xf32> to vector<4x8x8xf32>
    %469 = vector.broadcast %467 : vector<1x8x1xf32> to vector<4x8x8xf32>
    %470 = arith.mulf %468, %469 : vector<4x8x8xf32>
    %471 = arith.addf %444, %470 : vector<4x8x8xf32>
    %472 = vector.extract_strided_slice %387 {offsets = [0, 3, 0], sizes = [4, 1, 8], strides = [1, 1, 1]} : vector<4x8x8xf32> to vector<4x1x8xf32>
    %473 = vector.extract_strided_slice %471 {offsets = [0, 0, 3], sizes = [4, 8, 1], strides = [1, 1, 1]} : vector<4x8x8xf32> to vector<4x8x1xf32>
    %474 = vector.broadcast %473 : vector<4x8x1xf32> to vector<4x8x8xf32>
    %475 = arith.mulf %471, %474 : vector<4x8x8xf32>
    %cst_92 = arith.constant dense<0.000000e+00> : vector<4x8xf32>
    %476 = vector.multi_reduction <add>, %475, %cst_92 [1] : vector<4x8x8xf32> to vector<4x8xf32>
    %477 = vector.shape_cast %476 : vector<4x8xf32> to vector<4x1x8xf32>
    %478 = arith.subf %472, %477 : vector<4x1x8xf32>
    %479 = vector.extract_strided_slice %478 {offsets = [0, 0, 3], sizes = [4, 1, 1], strides = [1, 1, 1]} : vector<4x1x8xf32> to vector<4x1x1xf32>
    %cst_93 = arith.constant 9.99999996E-13 : f32
    %480 = vector.broadcast %cst_93 : f32 to vector<4x1x1xf32>
    %481 = arith.maximumf %479, %480 : vector<4x1x1xf32>
    %482 = math.sqrt %481 : vector<4x1x1xf32>
    %c3_i32 = arith.constant 3 : i32
    %483 = vector.broadcast %c3_i32 : i32 to vector<1x1x8xi32>
    %484 = arith.cmpi sge, %388, %483 : vector<1x1x8xi32>
    %485 = vector.broadcast %482 : vector<4x1x1xf32> to vector<4x1x8xf32>
    %486 = arith.divf %478, %485 : vector<4x1x8xf32>
    %cst_94 = arith.constant 0.000000e+00 : f32
    %487 = vector.shape_cast %484 : vector<1x1x8xi1> to vector<1x1x8xi1>
    %488 = vector.broadcast %487 : vector<1x1x8xi1> to vector<4x1x8xi1>
    %489 = vector.broadcast %cst_94 : f32 to vector<4x1x8xf32>
    %490 = arith.select %488, %486, %489 : vector<4x1x8xi1>, vector<4x1x8xf32>
    %c3_i32_95 = arith.constant 3 : i32
    %491 = vector.broadcast %c3_i32_95 : i32 to vector<1x8x1xi32>
    %492 = arith.cmpi eq, %389, %491 : vector<1x8x1xi32>
    %493 = arith.extui %492 : vector<1x8x1xi1> to vector<1x8x1xi32>
    %494 = arith.sitofp %493 : vector<1x8x1xi32> to vector<1x8x1xf32>
    %495 = vector.broadcast %490 : vector<4x1x8xf32> to vector<4x8x8xf32>
    %496 = vector.broadcast %494 : vector<1x8x1xf32> to vector<4x8x8xf32>
    %497 = arith.mulf %495, %496 : vector<4x8x8xf32>
    %498 = arith.addf %471, %497 : vector<4x8x8xf32>
    %499 = vector.extract_strided_slice %387 {offsets = [0, 4, 0], sizes = [4, 1, 8], strides = [1, 1, 1]} : vector<4x8x8xf32> to vector<4x1x8xf32>
    %500 = vector.extract_strided_slice %498 {offsets = [0, 0, 4], sizes = [4, 8, 1], strides = [1, 1, 1]} : vector<4x8x8xf32> to vector<4x8x1xf32>
    %501 = vector.broadcast %500 : vector<4x8x1xf32> to vector<4x8x8xf32>
    %502 = arith.mulf %498, %501 : vector<4x8x8xf32>
    %cst_96 = arith.constant dense<0.000000e+00> : vector<4x8xf32>
    %503 = vector.multi_reduction <add>, %502, %cst_96 [1] : vector<4x8x8xf32> to vector<4x8xf32>
    %504 = vector.shape_cast %503 : vector<4x8xf32> to vector<4x1x8xf32>
    %505 = arith.subf %499, %504 : vector<4x1x8xf32>
    %506 = vector.extract_strided_slice %505 {offsets = [0, 0, 4], sizes = [4, 1, 1], strides = [1, 1, 1]} : vector<4x1x8xf32> to vector<4x1x1xf32>
    %cst_97 = arith.constant 9.99999996E-13 : f32
    %507 = vector.broadcast %cst_97 : f32 to vector<4x1x1xf32>
    %508 = arith.maximumf %506, %507 : vector<4x1x1xf32>
    %509 = math.sqrt %508 : vector<4x1x1xf32>
    %c4_i32 = arith.constant 4 : i32
    %510 = vector.broadcast %c4_i32 : i32 to vector<1x1x8xi32>
    %511 = arith.cmpi sge, %388, %510 : vector<1x1x8xi32>
    %512 = vector.broadcast %509 : vector<4x1x1xf32> to vector<4x1x8xf32>
    %513 = arith.divf %505, %512 : vector<4x1x8xf32>
    %cst_98 = arith.constant 0.000000e+00 : f32
    %514 = vector.shape_cast %511 : vector<1x1x8xi1> to vector<1x1x8xi1>
    %515 = vector.broadcast %514 : vector<1x1x8xi1> to vector<4x1x8xi1>
    %516 = vector.broadcast %cst_98 : f32 to vector<4x1x8xf32>
    %517 = arith.select %515, %513, %516 : vector<4x1x8xi1>, vector<4x1x8xf32>
    %c4_i32_99 = arith.constant 4 : i32
    %518 = vector.broadcast %c4_i32_99 : i32 to vector<1x8x1xi32>
    %519 = arith.cmpi eq, %389, %518 : vector<1x8x1xi32>
    %520 = arith.extui %519 : vector<1x8x1xi1> to vector<1x8x1xi32>
    %521 = arith.sitofp %520 : vector<1x8x1xi32> to vector<1x8x1xf32>
    %522 = vector.broadcast %517 : vector<4x1x8xf32> to vector<4x8x8xf32>
    %523 = vector.broadcast %521 : vector<1x8x1xf32> to vector<4x8x8xf32>
    %524 = arith.mulf %522, %523 : vector<4x8x8xf32>
    %525 = arith.addf %498, %524 : vector<4x8x8xf32>
    %526 = vector.extract_strided_slice %387 {offsets = [0, 5, 0], sizes = [4, 1, 8], strides = [1, 1, 1]} : vector<4x8x8xf32> to vector<4x1x8xf32>
    %527 = vector.extract_strided_slice %525 {offsets = [0, 0, 5], sizes = [4, 8, 1], strides = [1, 1, 1]} : vector<4x8x8xf32> to vector<4x8x1xf32>
    %528 = vector.broadcast %527 : vector<4x8x1xf32> to vector<4x8x8xf32>
    %529 = arith.mulf %525, %528 : vector<4x8x8xf32>
    %cst_100 = arith.constant dense<0.000000e+00> : vector<4x8xf32>
    %530 = vector.multi_reduction <add>, %529, %cst_100 [1] : vector<4x8x8xf32> to vector<4x8xf32>
    %531 = vector.shape_cast %530 : vector<4x8xf32> to vector<4x1x8xf32>
    %532 = arith.subf %526, %531 : vector<4x1x8xf32>
    %533 = vector.extract_strided_slice %532 {offsets = [0, 0, 5], sizes = [4, 1, 1], strides = [1, 1, 1]} : vector<4x1x8xf32> to vector<4x1x1xf32>
    %cst_101 = arith.constant 9.99999996E-13 : f32
    %534 = vector.broadcast %cst_101 : f32 to vector<4x1x1xf32>
    %535 = arith.maximumf %533, %534 : vector<4x1x1xf32>
    %536 = math.sqrt %535 : vector<4x1x1xf32>
    %c5_i32 = arith.constant 5 : i32
    %537 = vector.broadcast %c5_i32 : i32 to vector<1x1x8xi32>
    %538 = arith.cmpi sge, %388, %537 : vector<1x1x8xi32>
    %539 = vector.broadcast %536 : vector<4x1x1xf32> to vector<4x1x8xf32>
    %540 = arith.divf %532, %539 : vector<4x1x8xf32>
    %cst_102 = arith.constant 0.000000e+00 : f32
    %541 = vector.shape_cast %538 : vector<1x1x8xi1> to vector<1x1x8xi1>
    %542 = vector.broadcast %541 : vector<1x1x8xi1> to vector<4x1x8xi1>
    %543 = vector.broadcast %cst_102 : f32 to vector<4x1x8xf32>
    %544 = arith.select %542, %540, %543 : vector<4x1x8xi1>, vector<4x1x8xf32>
    %c5_i32_103 = arith.constant 5 : i32
    %545 = vector.broadcast %c5_i32_103 : i32 to vector<1x8x1xi32>
    %546 = arith.cmpi eq, %389, %545 : vector<1x8x1xi32>
    %547 = arith.extui %546 : vector<1x8x1xi1> to vector<1x8x1xi32>
    %548 = arith.sitofp %547 : vector<1x8x1xi32> to vector<1x8x1xf32>
    %549 = vector.broadcast %544 : vector<4x1x8xf32> to vector<4x8x8xf32>
    %550 = vector.broadcast %548 : vector<1x8x1xf32> to vector<4x8x8xf32>
    %551 = arith.mulf %549, %550 : vector<4x8x8xf32>
    %552 = arith.addf %525, %551 : vector<4x8x8xf32>
    %553 = vector.extract_strided_slice %387 {offsets = [0, 6, 0], sizes = [4, 1, 8], strides = [1, 1, 1]} : vector<4x8x8xf32> to vector<4x1x8xf32>
    %554 = vector.extract_strided_slice %552 {offsets = [0, 0, 6], sizes = [4, 8, 1], strides = [1, 1, 1]} : vector<4x8x8xf32> to vector<4x8x1xf32>
    %555 = vector.broadcast %554 : vector<4x8x1xf32> to vector<4x8x8xf32>
    %556 = arith.mulf %552, %555 : vector<4x8x8xf32>
    %cst_104 = arith.constant dense<0.000000e+00> : vector<4x8xf32>
    %557 = vector.multi_reduction <add>, %556, %cst_104 [1] : vector<4x8x8xf32> to vector<4x8xf32>
    %558 = vector.shape_cast %557 : vector<4x8xf32> to vector<4x1x8xf32>
    %559 = arith.subf %553, %558 : vector<4x1x8xf32>
    %560 = vector.extract_strided_slice %559 {offsets = [0, 0, 6], sizes = [4, 1, 1], strides = [1, 1, 1]} : vector<4x1x8xf32> to vector<4x1x1xf32>
    %cst_105 = arith.constant 9.99999996E-13 : f32
    %561 = vector.broadcast %cst_105 : f32 to vector<4x1x1xf32>
    %562 = arith.maximumf %560, %561 : vector<4x1x1xf32>
    %563 = math.sqrt %562 : vector<4x1x1xf32>
    %c6_i32 = arith.constant 6 : i32
    %564 = vector.broadcast %c6_i32 : i32 to vector<1x1x8xi32>
    %565 = arith.cmpi sge, %388, %564 : vector<1x1x8xi32>
    %566 = vector.broadcast %563 : vector<4x1x1xf32> to vector<4x1x8xf32>
    %567 = arith.divf %559, %566 : vector<4x1x8xf32>
    %cst_106 = arith.constant 0.000000e+00 : f32
    %568 = vector.shape_cast %565 : vector<1x1x8xi1> to vector<1x1x8xi1>
    %569 = vector.broadcast %568 : vector<1x1x8xi1> to vector<4x1x8xi1>
    %570 = vector.broadcast %cst_106 : f32 to vector<4x1x8xf32>
    %571 = arith.select %569, %567, %570 : vector<4x1x8xi1>, vector<4x1x8xf32>
    %c6_i32_107 = arith.constant 6 : i32
    %572 = vector.broadcast %c6_i32_107 : i32 to vector<1x8x1xi32>
    %573 = arith.cmpi eq, %389, %572 : vector<1x8x1xi32>
    %574 = arith.extui %573 : vector<1x8x1xi1> to vector<1x8x1xi32>
    %575 = arith.sitofp %574 : vector<1x8x1xi32> to vector<1x8x1xf32>
    %576 = vector.broadcast %571 : vector<4x1x8xf32> to vector<4x8x8xf32>
    %577 = vector.broadcast %575 : vector<1x8x1xf32> to vector<4x8x8xf32>
    %578 = arith.mulf %576, %577 : vector<4x8x8xf32>
    %579 = arith.addf %552, %578 : vector<4x8x8xf32>
    %580 = vector.extract_strided_slice %387 {offsets = [0, 7, 0], sizes = [4, 1, 8], strides = [1, 1, 1]} : vector<4x8x8xf32> to vector<4x1x8xf32>
    %581 = vector.extract_strided_slice %579 {offsets = [0, 0, 7], sizes = [4, 8, 1], strides = [1, 1, 1]} : vector<4x8x8xf32> to vector<4x8x1xf32>
    %582 = vector.broadcast %581 : vector<4x8x1xf32> to vector<4x8x8xf32>
    %583 = arith.mulf %579, %582 : vector<4x8x8xf32>
    %cst_108 = arith.constant dense<0.000000e+00> : vector<4x8xf32>
    %584 = vector.multi_reduction <add>, %583, %cst_108 [1] : vector<4x8x8xf32> to vector<4x8xf32>
    %585 = vector.shape_cast %584 : vector<4x8xf32> to vector<4x1x8xf32>
    %586 = arith.subf %580, %585 : vector<4x1x8xf32>
    %587 = vector.extract_strided_slice %586 {offsets = [0, 0, 7], sizes = [4, 1, 1], strides = [1, 1, 1]} : vector<4x1x8xf32> to vector<4x1x1xf32>
    %cst_109 = arith.constant 9.99999996E-13 : f32
    %588 = vector.broadcast %cst_109 : f32 to vector<4x1x1xf32>
    %589 = arith.maximumf %587, %588 : vector<4x1x1xf32>
    %590 = math.sqrt %589 : vector<4x1x1xf32>
    %c7_i32 = arith.constant 7 : i32
    %591 = vector.broadcast %c7_i32 : i32 to vector<1x1x8xi32>
    %592 = arith.cmpi sge, %388, %591 : vector<1x1x8xi32>
    %593 = vector.broadcast %590 : vector<4x1x1xf32> to vector<4x1x8xf32>
    %594 = arith.divf %586, %593 : vector<4x1x8xf32>
    %cst_110 = arith.constant 0.000000e+00 : f32
    %595 = vector.shape_cast %592 : vector<1x1x8xi1> to vector<1x1x8xi1>
    %596 = vector.broadcast %595 : vector<1x1x8xi1> to vector<4x1x8xi1>
    %597 = vector.broadcast %cst_110 : f32 to vector<4x1x8xf32>
    %598 = arith.select %596, %594, %597 : vector<4x1x8xi1>, vector<4x1x8xf32>
    %c7_i32_111 = arith.constant 7 : i32
    %599 = vector.broadcast %c7_i32_111 : i32 to vector<1x8x1xi32>
    %600 = arith.cmpi eq, %389, %599 : vector<1x8x1xi32>
    %601 = arith.extui %600 : vector<1x8x1xi1> to vector<1x8x1xi32>
    %602 = arith.sitofp %601 : vector<1x8x1xi32> to vector<1x8x1xf32>
    %603 = vector.broadcast %598 : vector<4x1x8xf32> to vector<4x8x8xf32>
    %604 = vector.broadcast %602 : vector<1x8x1xf32> to vector<4x8x8xf32>
    %605 = arith.mulf %603, %604 : vector<4x8x8xf32>
    %606 = arith.addf %579, %605 : vector<4x8x8xf32>
    %c0_112 = arith.constant 0 : index
    %c0_113 = arith.constant 0 : index
    %c0_114 = arith.constant 0 : index
    %607 = vector.load %arg2[%c0_112, %c0_113, %c0_114] : memref<4x8x1xf32, #tpu.memory_space<vmem>>, vector<4x8x1xf32>
    %608 = vector.broadcast %607 : vector<4x8x1xf32> to vector<4x8x8xf32>
    %609 = arith.mulf %606, %608 : vector<4x8x8xf32>
    %cst_115 = arith.constant dense<0.000000e+00> : vector<4x8xf32>
    %610 = vector.multi_reduction <add>, %609, %cst_115 [1] : vector<4x8x8xf32> to vector<4x8xf32>
    %611 = arith.addf %342, %610 : vector<4x8xf32>
    %cst_116 = arith.constant 0.000000e+00 : f32
    %612 = vector.broadcast %cst_116 : f32 to vector<4x128xf32>
    %c0_117 = arith.constant 0 : index
    %c0_118 = arith.constant 0 : index
    %613 = vector.load %arg12[%c0_117, %c0_118] : memref<4x128xf32, #tpu.memory_space<vmem>>, vector<4x128xf32>
    tpu.vector_store %arg12[%c0_117, %c0_118], %612 {strides = array<i32>} : memref<4x128xf32, #tpu.memory_space<vmem>>, vector<4x128xf32>,
    %c0_119 = arith.constant 0 : index
    %c0_120 = arith.constant 0 : index
    %614 = vector.load %arg12[%c0_119, %c0_120] : memref<4x128xf32, #tpu.memory_space<vmem>>, vector<4x8xf32>
    tpu.vector_store %arg12[%c0_119, %c0_120], %611 {strides = array<i32>} : memref<4x128xf32, #tpu.memory_space<vmem>>, vector<4x8xf32>,
    return
  }
}

</mosaic_0001>

<bundles_post_ra>
// kernel: joint_feature_generator_forward.3
= control target key start
LH: loop header
LB: loop body
LE: loop exit
PB: predicated region body
PF: predicated region fallthrough
CT: control target
= control target key end

     0   :  { %vm60_vm0 = vcmask 1043456   ;;  %vm53_vm1 = vcmask 64512   ;;  %s3906_s0 = inlined_call_operand.vmem [shape: f32[32,8], index: 0, kind: input, shape index: {}]   ;;  %s3907_s1 = inlined_call_operand.vmem [shape: f32[4,16], index: 1, kind: input, shape index: {}]   ;;  %s3908_s2 = inlined_call_operand.vmem [shape: f32[4,8,1], index: 2, kind: input, shape index: {}]   ;;  %s3909_s3 = inlined_call_operand.vmem [shape: bf16[8,96], index: 3, kind: input, shape index: {}]   ;;  %s3910_s4 = inlined_call_operand.vmem [shape: bf16[32,96], index: 4, kind: input, shape index: {}]   ;;  %s3911_s5 = inlined_call_operand.vmem [shape: bf16[32,16], index: 5, kind: input, shape index: {}]   ;;  %s3912_s6 = inlined_call_operand.vmem [shape: bf16[16,32], index: 6, kind: input, shape index: {}]   ;;  %s3913_s7 = inlined_call_operand.vmem [shape: bf16[16,16], index: 7, kind: input, shape index: {}]   ;;  %s3914_s8 = inlined_call_operand.vmem [shape: bf16[16,8], index: 8, kind: input, shape index: {}]   ;;  %s3915_s9 = inlined_call_operand.vmem [shape: bf16[16,16], index: 9, kind: input, shape index: {}]   ;;  %s3916_s10 = inlined_call_operand.vmem [shape: bf16[16,64], index: 10, kind: input, shape index: {}]   ;;  %s3917_s11 = inlined_call_operand.vmem [shape: f32[14,128], index: 11, kind: input, shape index: {}]   ;;  %s3918_s12 = inlined_call_operand.hbm [shape: f32[4,128], index: 12, kind: output, shape index: {}]  }
   0x1   :  { %v2860_v0 = vld [vmem:[%s3910_s4 + $0x8] sm:$0xff]  ;;  %v49_v1 = vld [vmem:[%s3909_s3] sm:$0xf] }
   0x2   :  { %v62_v2 = vsel %vm60_vm0, %v49_v1, 0  ;;  %v45_v3 = vld [vmem:[%s3906_s0] sm:$0xff]  ;;  %v46_v4 = vld [vmem:[%s3906_s0 + $0x8] sm:$0xff]  ;;  %110 = vmatpush.bf16.msra.mxu1 %v2860_v0 }
   0x3   :  { %71 = vmatpush.bf16.msra.mxu0 %v62_v2  ;;  %v2859_v5 = vld [vmem:[%s3910_s4] sm:$0xff]  ;;  %v50_v6 = vpack.c.bf16 %v46_v4, %v45_v3 }
   0x4   :  { %17 = vsyncpa [#allocation3], 0  ;;  %169 = vmatpush.bf16.msra.mxu2 %v2860_v0  ;;  %234 = vmatpush.bf16.msra.mxu3 %v2860_v0  ;;  %v3137_v7 = vmov 0   ;;  %v3247_v8 = vld [vmem:[%s3917_s11] sm:$0xff]  ;;  %s3138_s13 = smov 64   ;;  %s3139_s14 = smov 96  }
   0x5   :  { %2890 = vset.pattern.permute.xlu2 %v3137_v7  ;;  %2891 = vset.pattern.permute.xlu0 %v3137_v7  ;;  %v3250_v9 = vperm.slane %v3247_v8, 1  ;;  %v3255_v13 = vperm.slane %v3247_v8, 0  ;;  %vm100_vm6 = vcmask 261120   ;;  %s3141_s25 = smov 16   ;;  %s3144_s15 = smov 88  }
   0x6   :  { %2784 = vmatmul.msk.bf16.vlgmr.msra.gmra.mxu0 %vm53_vm1, %v50_v6  ;;  %111 = vmatpush.bf16.msra.mxu1 %v2859_v5  ;;  %s3145_s16 = smov 104   ;;  %s3146_s17 = smov 72  }
   0x7   :  { %488 = vmatpush.bf16.msrb.mxu0 %v2860_v0  ;;  %2892 = vset.pattern.permute.xlu1 %v3137_v7  ;;  %s3147_s18 = smov 120   ;;  %s2775_s27 = sshll.u32 %s3918_s12, 4  ;;  %s2776_s27 = int_to_ptr.hbm [resolvable:$true] %s2775_s27 }
   0x8   :  { %170 = vmatpush.bf16.msra.mxu2 %v2859_v5  ;;  %235 = vmatpush.bf16.msra.mxu3 %v2859_v5 }
   0x9   :  { %112 = vmatmul.bf16.vlgmr.msra.gmra.mxu1 %v3137_v7 }
   0xa   :  { %296 = vmatpush.bf16.msrb.mxu1 %v2860_v0 }
   0xb   :  { %489 = vmatpush.bf16.msrb.mxu0 %v2859_v5 }
   0xc   :  { %361 = vmatpush.bf16.msrb.mxu2 %v2860_v0  ;;  %423 = vmatpush.bf16.msrb.mxu3 %v2860_v0 }
   0xe   :  { %297 = vmatpush.bf16.msrb.mxu1 %v2859_v5 }
  0x10   :  { %362 = vmatpush.bf16.msrb.mxu2 %v2859_v5  ;;  %424 = vmatpush.bf16.msrb.mxu3 %v2859_v5 }
  0x12   :  { %550 = vmatpush.bf16.msra.mxu1 %v2860_v0 }
  0x16   :  { %551 = vmatpush.bf16.msra.mxu1 %v2859_v5 }
  0x83   :  { %v73_v14 = vpop.f32.mrf.mxu0 }
  0x84   :  { %v3258_v15 = vadd.f32 %v73_v14, %v3255_v13 }
  0x86   :  { %v113_v10 = vpop.f32.mrf.mxu1 }
  0x87   :  { %v114_v11 = vadd.f32 %v113_v10, %v3250_v9 }
  0x89   :  { %138 = vrot.lane.b32.xlu0 %v114_v11, %s3138_s13  ;;  %v117_v16 = vadd.f32 %v114_v11, %v3258_v15 }
  0x8b   :  { %v2794_v17 = vmul.f32 -1.442695, %v117_v16  ;;  %v75_v14 = vpop.f32.mrf.mxu0 }
  0x8d   :  { %2917 = vpow2.f32 %v2794_v17  ;;  %v3275_v17 = vadd.f32 %v75_v14, %v3255_v13 }
  0x8e   :  { %v115_v12 = vpop.f32.mrf.mxu1 }
  0x93   :  { %v2918_v18 = vpop.eup %2917 }
  0x94   :  { %v121_v19 = vadd.f32 1.0, %v2918_v18 }
  0x96   :  { %2919 = vrcp.f32 %v121_v19  ;;  %v133_v25 = vand.u32 2147483648, %v121_v19  ;;  %vm127_vm3 = vweird.f32 %v121_v19  ;;  %v131_v26 = vand.u32 2147483647, %v121_v19 }
  0x98   :  { %v134_v28 = vor.u32 1.1754944e-38, %v133_v25  ;;  %vm132_vm5 = vcmp.eq.f32.partialorder %v131_v26, 8.507059e+37 }
  0x9c   :  { %v2920_v20 = vpop.eup %2919 }
  0x9d   :  { %v123_v21 = vmul.f32 %v2920_v20, %v121_v19  ;;  %vm128_vm2 = vweird.f32 %v2920_v20 }
  0x9e   :  { %vm129_vm4 = vmor %vm127_vm3, %vm128_vm2 }
  0x9f   :  { %v124_v22 = vsub.f32 1.0, %v123_v21 }
  0xa1   :  { %v125_v23 = vmul.f32 %v2920_v20, %v124_v22 }
  0xa3   :  { %v126_v24 = vadd.f32 %v2920_v20, %v125_v23 }
  0xa5   :  { %v130_v27 = vsel %vm129_vm4, %v2920_v20, %v126_v24 }
  0xa6   :  { %v135_v30 = vsel %vm132_vm5, %v134_v28, %v130_v27 }
  0xa7   :  { %v148_v35 = vsub.f32 1.0, %v135_v30  ;;  %v154_v37 = vmul.f32 0.0, %v135_v30 }
  0xfb   :  { %v139_v29 = vpop.permute.xlu0 %138 }
  0xfc   :  { %v141_v31 = vmul.f32 %v139_v29, %v135_v30 }
  0xfe   :  { %143 = vrot.lane.b32.xlu0 %v141_v31, %s3138_s13 }
 0x170   :  { %v144_v32 = vpop.permute.xlu0 %143 }
 0x171   :  { %v146_v33 = vadd.f32 %v144_v32, %v3258_v15 }
 0x173   :  { %2921 = vtanh.f32 %v146_v33 }
 0x179   :  { %v2922_v34 = vpop.eup %2921 }
 0x17a   :  { %150 = vrot.lane.b32.xlu1 %v2922_v34, %s3139_s14 }
 0x1ec   :  { %v151_v36 = vpop.permute.xlu1 %150 }
 0x1ed   :  { %v153_v38 = vmul.f32 %v151_v36, %v148_v35 }
 0x1ef   :  { %v155_v39 = vadd.f32 %v154_v37, %v153_v38 }
 0x1f1   :  { %v156_v40 = vpack.c.bf16 %v155_v39, %v155_v39  ;;  %v216_v58 = vrot.slane %v155_v39, 4 }
 0x1f3   :  { %158 = vrot.lane.b32.xlu1 %v156_v40, %s3139_s14 }
 0x265   :  { %v159_v41 = vpop.permute.xlu1 %158 }
 0x266   :  { %2795 = vmatmul.msk.bf16.vlgmr.msra.gmra.mxu2 %vm100_vm6, %v159_v41 }
 0x2e9   :  { %v172_v42 = vpop.f32.mrf.mxu2 }
 0x2ea   :  { %v173_v43 = vadd.f32 %v172_v42, %v3250_v9 }
 0x2ec   :  { %v177_v44 = vrot.slane %v173_v43, 4 }
 0x2ee   :  { %v179_v45 = vadd.f32 %v177_v44, %v3258_v15  ;;  %199 = vrot.lane.b32.xlu2 %v177_v44, %s3138_s13 }
 0x2f0   :  { %v2796_v46 = vmul.f32 -1.442695, %v179_v45 }
 0x2f1   :  { %v174_v47 = vpop.f32.mrf.mxu2 }
 0x2f2   :  { %2923 = vpow2.f32 %v2796_v46 }
 0x2f8   :  { %v2924_v48 = vpop.eup %2923 }
 0x2f9   :  { %v183_v49 = vadd.f32 1.0, %v2924_v48 }
 0x2fb   :  { %2925 = vrcp.f32 %v183_v49  ;;  %v195_v53 = vand.u32 2147483648, %v183_v49  ;;  %v193_v55 = vand.u32 2147483647, %v183_v49  ;;  %vm189_vm8 = vweird.f32 %v183_v49 }
 0x2fd   :  { %v196_v57 = vor.u32 1.1754944e-38, %v195_v53  ;;  %vm194_vm10 = vcmp.eq.f32.partialorder %v193_v55, 8.507059e+37 }
 0x301   :  { %v2926_v50 = vpop.eup %2925 }
 0x302   :  { %v185_v51 = vmul.f32 %v2926_v50, %v183_v49  ;;  %vm190_vm7 = vweird.f32 %v2926_v50 }
 0x303   :  { %vm191_vm9 = vmor %vm189_vm8, %vm190_vm7 }
 0x304   :  { %v186_v52 = vsub.f32 1.0, %v185_v51 }
 0x306   :  { %v187_v54 = vmul.f32 %v2926_v50, %v186_v52 }
 0x308   :  { %v188_v56 = vadd.f32 %v2926_v50, %v187_v54 }
 0x30a   :  { %v192_v59 = vsel %vm191_vm9, %v2926_v50, %v188_v56 }
 0x30b   :  { %v197_v60 = vsel %vm194_vm10, %v196_v57, %v192_v59 }
 0x30c   :  { %v218_v61 = vmul.f32 %v216_v58, %v197_v60  ;;  %v209_v3 = vsub.f32 1.0, %v197_v60 }
 0x348   :  { %v200_v62 = vpop.permute.xlu2 %199 }
 0x349   :  { %v202_v63 = vmul.f32 %v200_v62, %v197_v60 }
 0x34b   :  { %204 = vrot.lane.b32.xlu2 %v202_v63, %s3138_s13 }
 0x3a5   :  { %v205_v0 = vpop.permute.xlu2 %204 }
 0x3a6   :  { %v207_v1 = vadd.f32 %v205_v0, %v3258_v15 }
 0x3a8   :  { %2927 = vtanh.f32 %v207_v1 }
 0x3ae   :  { %v2928_v2 = vpop.eup %2927 }
 0x3af   :  { %211 = vrot.lane.b32.xlu0 %v2928_v2, %s3139_s14 }
 0x421   :  { %v212_v4 = vpop.permute.xlu0 %211 }
 0x422   :  { %v214_v5 = vmul.f32 %v212_v4, %v209_v3 }
 0x424   :  { %v219_v6 = vadd.f32 %v218_v61, %v214_v5 }
 0x426   :  { %v220_v10 = vpack.c.bf16 %v219_v6, %v219_v6  ;;  %v279_v31 = vrot.slane %v219_v6, 4 }
 0x428   :  { %v222_v11 = vrot.slane %v220_v10, 2 }
 0x42a   :  { %223 = vrot.lane.b32.xlu1 %v222_v11, %s3139_s14 }
 0x49c   :  { %v224_v12 = vpop.permute.xlu1 %223 }
 0x49d   :  { %2797 = vmatmul.msk.bf16.vlgmr.msra.gmra.mxu3 %vm100_vm6, %v224_v12 }
 0x520   :  { %v237_v16 = vpop.f32.mrf.mxu3 }
 0x521   :  { %v238_v15 = vadd.f32 %v237_v16, %v3250_v9 }
 0x523   :  { %v241_v18 = vadd.f32 %v238_v15, %v3275_v17  ;;  %262 = vrot.lane.b32.xlu2 %v238_v15, %s3138_s13 }
 0x525   :  { %v2798_v19 = vmul.f32 -1.442695, %v241_v18  ;;  %v47_v18 = vld [vmem:[%s3906_s0 + $0x10] sm:$0xff] }
 0x527   :  { %2929 = vpow2.f32 %v2798_v19 }
 0x528   :  { %v239_v20 = vpop.f32.mrf.mxu3 }
 0x52d   :  { %v2930_v21 = vpop.eup %2929 }
 0x52e   :  { %v245_v22 = vadd.f32 1.0, %v2930_v21 }
 0x530   :  { %2931 = vrcp.f32 %v245_v22  ;;  %v257_v26 = vand.u32 2147483648, %v245_v22  ;;  %v255_v28 = vand.u32 2147483647, %v245_v22  ;;  %vm251_vm12 = vweird.f32 %v245_v22 }
 0x532   :  { %v258_v30 = vor.u32 1.1754944e-38, %v257_v26  ;;  %vm256_vm14 = vcmp.eq.f32.partialorder %v255_v28, 8.507059e+37 }
 0x536   :  { %v2932_v23 = vpop.eup %2931 }
 0x537   :  { %v247_v24 = vmul.f32 %v2932_v23, %v245_v22  ;;  %vm252_vm11 = vweird.f32 %v2932_v23 }
 0x538   :  { %vm253_vm13 = vmor %vm251_vm12, %vm252_vm11 }
 0x539   :  { %v248_v25 = vsub.f32 1.0, %v247_v24 }
 0x53b   :  { %v249_v27 = vmul.f32 %v2932_v23, %v248_v25 }
 0x53d   :  { %v250_v29 = vadd.f32 %v2932_v23, %v249_v27 }
 0x53f   :  { %v254_v32 = vsel %vm253_vm13, %v2932_v23, %v250_v29 }
 0x540   :  { %v259_v33 = vsel %vm256_vm14, %v258_v30, %v254_v32 }
 0x541   :  { %v281_v34 = vmul.f32 %v279_v31, %v259_v33  ;;  %v272_v40 = vsub.f32 1.0, %v259_v33 }
 0x57d   :  { %v263_v35 = vpop.permute.xlu2 %262 }
 0x57e   :  { %v265_v36 = vmul.f32 %v263_v35, %v259_v33 }
 0x580   :  { %267 = vrot.lane.b32.xlu0 %v265_v36, %s3138_s13 }
 0x5f2   :  { %v268_v37 = vpop.permute.xlu0 %267 }
 0x5f3   :  { %v270_v38 = vadd.f32 %v268_v37, %v3275_v17 }
 0x5f5   :  { %2933 = vtanh.f32 %v270_v38 }
 0x5fb   :  { %v2934_v39 = vpop.eup %2933 }
 0x5fc   :  { %274 = vrot.lane.b32.xlu1 %v2934_v39, %s3139_s14 }
 0x66e   :  { %v275_v41 = vpop.permute.xlu1 %274 }
 0x66f   :  { %v277_v42 = vmul.f32 %v275_v41, %v272_v40 }
 0x671   :  { %v282_v43 = vadd.f32 %v281_v34, %v277_v42 }
 0x673   :  { %v283_v44 = vpack.c.bf16 %v282_v43, %v282_v43  ;;  %v343_v5 = vrot.slane %v282_v43, 4 }
 0x675   :  { %285 = vrot.lane.b32.xlu2 %v283_v44, %s3139_s14 }
 0x6cf   :  { %v286_v45 = vpop.permute.xlu2 %285 }
 0x6d0   :  { %2799 = vmatmul.msk.bf16.vlgmr.msrb.gmra.mxu1 %vm100_vm6, %v286_v45 }
 0x74d   :  { %v299_v46 = vpop.f32.mrf.mxu1 }
 0x74e   :  { %v300_v47 = vadd.f32 %v299_v46, %v3250_v9 }
 0x750   :  { %v304_v48 = vrot.slane %v300_v47, 4 }
 0x752   :  { %326 = vrot.lane.b32.xlu0 %v304_v48, %s3138_s13  ;;  %v306_v50 = vadd.f32 %v304_v48, %v3275_v17 }
 0x754   :  { %v2800_v51 = vmul.f32 -1.442695, %v306_v50 }
 0x755   :  { %v301_v49 = vpop.f32.mrf.mxu1 }
 0x756   :  { %2935 = vpow2.f32 %v2800_v51 }
 0x75c   :  { %v2936_v52 = vpop.eup %2935 }
 0x75d   :  { %v310_v53 = vadd.f32 1.0, %v2936_v52 }
 0x75f   :  { %2937 = vrcp.f32 %v310_v53  ;;  %v322_v59 = vand.u32 2147483648, %v310_v53  ;;  %vm316_vm0 = vweird.f32 %v310_v53  ;;  %v320_v60 = vand.u32 2147483647, %v310_v53 }
 0x761   :  { %v323_v62 = vor.u32 1.1754944e-38, %v322_v59  ;;  %vm321_vm3 = vcmp.eq.f32.partialorder %v320_v60, 8.507059e+37 }
 0x765   :  { %v2938_v54 = vpop.eup %2937 }
 0x766   :  { %v312_v55 = vmul.f32 %v2938_v54, %v310_v53  ;;  %vm317_vm15 = vweird.f32 %v2938_v54 }
 0x767   :  { %vm318_vm2 = vmor %vm316_vm0, %vm317_vm15 }
 0x768   :  { %v313_v56 = vsub.f32 1.0, %v312_v55 }
 0x76a   :  { %v314_v57 = vmul.f32 %v2938_v54, %v313_v56 }
 0x76c   :  { %v315_v58 = vadd.f32 %v2938_v54, %v314_v57 }
 0x76e   :  { %v319_v61 = vsel %vm318_vm2, %v2938_v54, %v315_v58 }
 0x76f   :  { %v324_v0 = vsel %vm321_vm3, %v323_v62, %v319_v61 }
 0x770   :  { %v336_v6 = vsub.f32 1.0, %v324_v0  ;;  %v345_v11 = vmul.f32 %v343_v5, %v324_v0 }
 0x7c4   :  { %v327_v63 = vpop.permute.xlu0 %326 }
 0x7c5   :  { %v329_v1 = vmul.f32 %v327_v63, %v324_v0 }
 0x7c7   :  { %331 = vrot.lane.b32.xlu1 %v329_v1, %s3138_s13 }
 0x839   :  { %v332_v2 = vpop.permute.xlu1 %331 }
 0x83a   :  { %v334_v3 = vadd.f32 %v332_v2, %v3275_v17  ;;  %v48_v17 = vld [vmem:[%s3906_s0 + $0x18] sm:$0xff] }
 0x83b   :  { %v51_v19 = vpack.c.bf16 %v48_v17, %v47_v18 }
 0x83c   :  { %2939 = vtanh.f32 %v334_v3 }
 0x83d   :  { %2785 = vmatmul.msk.bf16.gmra.mxu0 %vm53_vm1, %v51_v19 }
 0x842   :  { %v2940_v4 = vpop.eup %2939 }
 0x843   :  { %338 = vrot.lane.b32.xlu2 %v2940_v4, %s3139_s14 }
 0x89d   :  { %v339_v10 = vpop.permute.xlu2 %338 }
 0x89e   :  { %v341_v12 = vmul.f32 %v339_v10, %v336_v6 }
 0x8a0   :  { %v346_v14 = vadd.f32 %v345_v11, %v341_v12 }
 0x8a2   :  { %v347_v16 = vpack.c.bf16 %v346_v14, %v346_v14  ;;  %v406_v45 = vrot.slane %v346_v14, 4 }
 0x8a4   :  { %v349_v15 = vrot.slane %v347_v16, 2 }
 0x8a6   :  { %350 = vrot.lane.b32.xlu0 %v349_v15, %s3139_s14 }
 0x8ba   :  { %v78_v24 = vpop.f32.mrf.mxu0 }
 0x8bb   :  { %v3303_v25 = vadd.f32 %v78_v24, %v3255_v13 }
 0x918   :  { %v351_v20 = vpop.permute.xlu0 %350 }
 0x919   :  { %2801 = vmatmul.msk.bf16.vlgmr.msrb.gmra.mxu2 %vm100_vm6, %v351_v20 }
 0x99c   :  { %v364_v21 = vpop.f32.mrf.mxu2 }
 0x99d   :  { %v365_v22 = vadd.f32 %v364_v21, %v3250_v9 }
 0x99f   :  { %389 = vrot.lane.b32.xlu1 %v365_v22, %s3138_s13  ;;  %v368_v26 = vadd.f32 %v365_v22, %v3303_v25 }
 0x9a1   :  { %v2802_v27 = vmul.f32 -1.442695, %v368_v26  ;;  %v80_v26 = vpop.f32.mrf.mxu0 }
 0x9a3   :  { %2941 = vpow2.f32 %v2802_v27 }
 0x9a4   :  { %v366_v23 = vpop.f32.mrf.mxu2 }
 0x9a9   :  { %v2942_v28 = vpop.eup %2941 }
 0x9aa   :  { %v372_v29 = vadd.f32 1.0, %v2942_v28 }
 0x9ac   :  { %2943 = vrcp.f32 %v372_v29  ;;  %v384_v35 = vand.u32 2147483648, %v372_v29  ;;  %vm378_vm5 = vweird.f32 %v372_v29  ;;  %v382_v36 = vand.u32 2147483647, %v372_v29 }
 0x9ae   :  { %v385_v38 = vor.u32 1.1754944e-38, %v384_v35  ;;  %vm383_vm8 = vcmp.eq.f32.partialorder %v382_v36, 8.507059e+37 }
 0x9b2   :  { %v2944_v30 = vpop.eup %2943 }
 0x9b3   :  { %v374_v31 = vmul.f32 %v2944_v30, %v372_v29  ;;  %vm379_vm4 = vweird.f32 %v2944_v30  ;;  %v3322_v29 = vadd.f32 %v80_v26, %v3255_v13 }
 0x9b4   :  { %vm380_vm7 = vmor %vm378_vm5, %vm379_vm4 }
 0x9b5   :  { %v375_v32 = vsub.f32 1.0, %v374_v31 }
 0x9b7   :  { %v376_v33 = vmul.f32 %v2944_v30, %v375_v32 }
 0x9b9   :  { %v377_v34 = vadd.f32 %v2944_v30, %v376_v33 }
 0x9bb   :  { %v381_v37 = vsel %vm380_vm7, %v2944_v30, %v377_v34  ;;  %vm640_vm7 = vcmask 125952  }
 0x9bc   :  { %v386_v40 = vsel %vm383_vm8, %v385_v38, %v381_v37 }
 0x9bd   :  { %v399_v46 = vsub.f32 1.0, %v386_v40  ;;  %v408_v48 = vmul.f32 %v406_v45, %v386_v40 }
 0xa11   :  { %v390_v39 = vpop.permute.xlu1 %389 }
 0xa12   :  { %v392_v41 = vmul.f32 %v390_v39, %v386_v40 }
 0xa14   :  { %394 = vrot.lane.b32.xlu2 %v392_v41, %s3138_s13 }
 0xa6e   :  { %v395_v42 = vpop.permute.xlu2 %394 }
 0xa6f   :  { %v397_v43 = vadd.f32 %v395_v42, %v3303_v25 }
 0xa71   :  { %2945 = vtanh.f32 %v397_v43 }
 0xa77   :  { %v2946_v44 = vpop.eup %2945 }
 0xa78   :  { %401 = vrot.lane.b32.xlu0 %v2946_v44, %s3139_s14 }
 0xaea   :  { %v402_v47 = vpop.permute.xlu0 %401 }
 0xaeb   :  { %v404_v49 = vmul.f32 %v402_v47, %v399_v46 }
 0xaed   :  { %v409_v50 = vadd.f32 %v408_v48, %v404_v49 }
 0xaef   :  { %v410_v51 = vpack.c.bf16 %v409_v50, %v409_v50  ;;  %v470_v5 = vrot.slane %v409_v50, 4 }
 0xaf1   :  { %412 = vrot.lane.b32.xlu1 %v410_v51, %s3139_s14 }
 0xb63   :  { %v413_v52 = vpop.permute.xlu1 %412 }
 0xb64   :  { %2803 = vmatmul.msk.bf16.vlgmr.msrb.gmra.mxu3 %vm100_vm6, %v413_v52 }
 0xbe7   :  { %v426_v53 = vpop.f32.mrf.mxu3 }
 0xbe8   :  { %v427_v54 = vadd.f32 %v426_v53, %v3250_v9 }
 0xbea   :  { %v431_v55 = vrot.slane %v427_v54, 4 }
 0xbec   :  { %v433_v56 = vadd.f32 %v431_v55, %v3303_v25  ;;  %453 = vrot.lane.b32.xlu2 %v431_v55, %s3138_s13 }
 0xbee   :  { %v2804_v57 = vmul.f32 -1.442695, %v433_v56 }
 0xbef   :  { %v428_v58 = vpop.f32.mrf.mxu3 }
 0xbf0   :  { %2947 = vpow2.f32 %v2804_v57 }
 0xbf6   :  { %v2948_v59 = vpop.eup %2947 }
 0xbf7   :  { %v437_v60 = vadd.f32 1.0, %v2948_v59 }
 0xbf9   :  { %2949 = vrcp.f32 %v437_v60  ;;  %v449_v0 = vand.u32 2147483648, %v437_v60  ;;  %v447_v2 = vand.u32 2147483647, %v437_v60  ;;  %vm443_vm10 = vweird.f32 %v437_v60 }
 0xbfb   :  { %v450_v4 = vor.u32 1.1754944e-38, %v449_v0  ;;  %vm448_vm12 = vcmp.eq.f32.partialorder %v447_v2, 8.507059e+37 }
 0xbff   :  { %v2950_v61 = vpop.eup %2949 }
 0xc00   :  { %v439_v62 = vmul.f32 %v2950_v61, %v437_v60  ;;  %vm444_vm9 = vweird.f32 %v2950_v61 }
 0xc01   :  { %vm445_vm11 = vmor %vm443_vm10, %vm444_vm9 }
 0xc02   :  { %v440_v63 = vsub.f32 1.0, %v439_v62 }
 0xc04   :  { %v441_v1 = vmul.f32 %v2950_v61, %v440_v63 }
 0xc06   :  { %v442_v3 = vadd.f32 %v2950_v61, %v441_v1 }
 0xc08   :  { %v446_v6 = vsel %vm445_vm11, %v2950_v61, %v442_v3  ;;  %vm692_vm11 = vcmask 130048  }
 0xc09   :  { %v451_v10 = vsel %vm448_vm12, %v450_v4, %v446_v6 }
 0xc0a   :  { %v472_v11 = vmul.f32 %v470_v5, %v451_v10  ;;  %v463_v17 = vsub.f32 1.0, %v451_v10 }
 0xc46   :  { %v454_v12 = vpop.permute.xlu2 %453 }
 0xc47   :  { %v456_v14 = vmul.f32 %v454_v12, %v451_v10 }
 0xc49   :  { %458 = vrot.lane.b32.xlu0 %v456_v14, %s3138_s13 }
 0xcbb   :  { %v459_v16 = vpop.permute.xlu0 %458 }
 0xcbc   :  { %v461_v15 = vadd.f32 %v459_v16, %v3303_v25 }
 0xcbe   :  { %2951 = vtanh.f32 %v461_v15 }
 0xcc4   :  { %v2952_v18 = vpop.eup %2951 }
 0xcc5   :  { %465 = vrot.lane.b32.xlu1 %v2952_v18, %s3139_s14 }
 0xd37   :  { %v466_v19 = vpop.permute.xlu1 %465 }
 0xd38   :  { %v468_v20 = vmul.f32 %v466_v19, %v463_v17  ;;  %v2862_v17 = vld [vmem:[%s3911_s5 + $0x8] sm:$0xff]  ;;  %v2861_v19 = vld [vmem:[%s3911_s5] sm:$0xff] }
 0xd39   :  { %632 = vmatpush.bf16.msra.mxu2 %v2862_v17 }
 0xd3a   :  { %v473_v21 = vadd.f32 %v472_v11, %v468_v20 }
 0xd3c   :  { %v474_v22 = vpack.c.bf16 %v473_v21, %v473_v21  ;;  %v533_v48 = vrot.slane %v473_v21, 4 }
 0xd3d   :  { %633 = vmatpush.bf16.msra.mxu2 %v2861_v19 }
 0xd3e   :  { %v476_v23 = vrot.slane %v474_v22, 2 }
 0xd40   :  { %477 = vrot.lane.b32.xlu2 %v476_v23, %s3139_s14 }
 0xd9a   :  { %v478_v24 = vpop.permute.xlu2 %477 }
 0xd9b   :  { %2805 = vmatmul.msk.bf16.vlgmr.msrb.gmra.mxu0 %vm100_vm6, %v478_v24 }
 0xe18   :  { %v491_v27 = vpop.f32.mrf.mxu0 }
 0xe19   :  { %v492_v28 = vadd.f32 %v491_v27, %v3250_v9 }
 0xe1b   :  { %516 = vrot.lane.b32.xlu0 %v492_v28, %s3138_s13  ;;  %v495_v30 = vadd.f32 %v492_v28, %v3322_v29 }
 0xe1d   :  { %v2806_v31 = vmul.f32 -1.442695, %v495_v30  ;;  %v606_v30 = vperm.slane %v3247_v8, 2 }
 0xe1f   :  { %2953 = vpow2.f32 %v2806_v31 }
 0xe20   :  { %v493_v25 = vpop.f32.mrf.mxu0 }
 0xe25   :  { %v2954_v32 = vpop.eup %2953 }
 0xe26   :  { %v499_v33 = vadd.f32 1.0, %v2954_v32 }
 0xe28   :  { %2955 = vrcp.f32 %v499_v33  ;;  %v511_v39 = vand.u32 2147483648, %v499_v33  ;;  %vm505_vm14 = vweird.f32 %v499_v33  ;;  %v509_v40 = vand.u32 2147483647, %v499_v33 }
 0xe2a   :  { %v512_v13 = vor.u32 1.1754944e-38, %v511_v39  ;;  %vm510_vm0 = vcmp.eq.f32.partialorder %v509_v40, 8.507059e+37 }
 0xe2e   :  { %v2956_v34 = vpop.eup %2955 }
 0xe2f   :  { %v501_v35 = vmul.f32 %v2956_v34, %v499_v33  ;;  %vm506_vm13 = vweird.f32 %v2956_v34 }
 0xe30   :  { %vm507_vm15 = vmor %vm505_vm14, %vm506_vm13 }
 0xe31   :  { %v502_v36 = vsub.f32 1.0, %v501_v35 }
 0xe33   :  { %v503_v37 = vmul.f32 %v2956_v34, %v502_v36 }
 0xe35   :  { %v504_v38 = vadd.f32 %v2956_v34, %v503_v37 }
 0xe37   :  { %v508_v41 = vsel %vm507_vm15, %v2956_v34, %v504_v38 }
 0xe38   :  { %v513_v43 = vsel %vm510_vm0, %v512_v13, %v508_v41 }
 0xe39   :  { %v526_v49 = vsub.f32 1.0, %v513_v43  ;;  %v535_v51 = vmul.f32 %v533_v48, %v513_v43 }
 0xe8d   :  { %v517_v42 = vpop.permute.xlu0 %516 }
 0xe8e   :  { %v519_v44 = vmul.f32 %v517_v42, %v513_v43 }
 0xe90   :  { %521 = vrot.lane.b32.xlu1 %v519_v44, %s3138_s13 }
 0xf02   :  { %v522_v45 = vpop.permute.xlu1 %521 }
 0xf03   :  { %v524_v46 = vadd.f32 %v522_v45, %v3322_v29 }
 0xf05   :  { %2957 = vtanh.f32 %v524_v46 }
 0xf0b   :  { %v2958_v47 = vpop.eup %2957 }
 0xf0c   :  { %528 = vrot.lane.b32.xlu2 %v2958_v47, %s3139_s14 }
 0xf66   :  { %v529_v50 = vpop.permute.xlu2 %528 }
 0xf67   :  { %v531_v52 = vmul.f32 %v529_v50, %v526_v49 }
 0xf69   :  { %v536_v53 = vadd.f32 %v535_v51, %v531_v52 }
 0xf6b   :  { %v537_v54 = vpack.c.bf16 %v536_v53, %v536_v53  ;;  %v597_v20 = vrot.slane %v536_v53, 4 }
 0xf6d   :  { %539 = vrot.lane.b32.xlu0 %v537_v54, %s3139_s14  ;;  %v2863_v54 = vld [vmem:[%s3912_s6] sm:$0xff] }
 0xf6e   :  { %703 = vmatpush.bf16.msra.mxu3 %v2863_v54 }
 0xfdf   :  { %v540_v55 = vpop.permute.xlu0 %539 }
 0xfe0   :  { %2807 = vmatmul.msk.bf16.vlgmr.msra.gmra.mxu1 %vm100_vm6, %v540_v55 }
0x105d   :  { %v553_v56 = vpop.f32.mrf.mxu1 }
0x105e   :  { %v554_v57 = vadd.f32 %v553_v56, %v3250_v9 }
0x1060   :  { %v558_v58 = vrot.slane %v554_v57, 4 }
0x1062   :  { %580 = vrot.lane.b32.xlu1 %v558_v58, %s3138_s13  ;;  %v560_v60 = vadd.f32 %v558_v58, %v3322_v29  ;;  %v710_v58 = vld [vmem:[%s3907_s1] sm:$0xf]  ;;  %s3142_s1 = smov 112  }
0x1064   :  { %v2808_v61 = vmul.f32 -1.442695, %v560_v60 }
0x1065   :  { %v555_v59 = vpop.f32.mrf.mxu1 }
0x1066   :  { %2959 = vpow2.f32 %v2808_v61 }
0x106c   :  { %v2960_v62 = vpop.eup %2959 }
0x106d   :  { %v564_v63 = vadd.f32 1.0, %v2960_v62 }
0x106f   :  { %2961 = vrcp.f32 %v564_v63  ;;  %v576_v5 = vand.u32 2147483648, %v564_v63  ;;  %vm570_vm3 = vweird.f32 %v564_v63  ;;  %v574_v9 = vand.u32 2147483647, %v564_v63 }
0x1071   :  { %v577_v10 = vor.u32 1.1754944e-38, %v576_v5  ;;  %vm575_vm5 = vcmp.eq.f32.partialorder %v574_v9, 8.507059e+37  ;;  %v680_v9 = vperm.slane %v3247_v8, 4 }
0x1075   :  { %v2962_v0 = vpop.eup %2961 }
0x1076   :  { %v566_v1 = vmul.f32 %v2962_v0, %v564_v63  ;;  %vm571_vm2 = vweird.f32 %v2962_v0 }
0x1077   :  { %vm572_vm4 = vmor %vm570_vm3, %vm571_vm2  ;;  %vm915_vm3 = vcmask 1047556  }
0x1078   :  { %v567_v2 = vsub.f32 1.0, %v566_v1 }
0x107a   :  { %v568_v3 = vmul.f32 %v2962_v0, %v567_v2 }
0x107c   :  { %v569_v4 = vadd.f32 %v2962_v0, %v568_v3  ;;  %v678_v3 = vperm.slane %v3247_v8, 3 }
0x107e   :  { %v573_v6 = vsel %vm572_vm4, %v2962_v0, %v569_v4 }
0x107f   :  { %v578_v12 = vsel %vm575_vm5, %v577_v10, %v573_v6 }
0x1080   :  { %v590_v21 = vsub.f32 1.0, %v578_v12  ;;  %v599_v23 = vmul.f32 %v597_v20, %v578_v12  ;;  %v2864_v20 = vld [vmem:[%s3913_s7] sm:$0xff] }
0x1081   :  { %741 = vmatpush.bf16.msra.mxu0 %v2864_v20 }
0x10d4   :  { %v581_v11 = vpop.permute.xlu1 %580 }
0x10d5   :  { %v583_v14 = vmul.f32 %v581_v11, %v578_v12  ;;  %v685_v12 = vperm.slane %v3247_v8, 5 }
0x10d7   :  { %585 = vrot.lane.b32.xlu2 %v583_v14, %s3138_s13  ;;  %s3143_s13 = smov 80  }
0x10df   :  { %712 = vrot.lane.b32.xlu2 %v710_v58, %s3141_s25  ;;  %s3158_s25 = smov [#allocation2]  }
0x1131   :  { %v586_v16 = vpop.permute.xlu2 %585 }
0x1132   :  { %v588_v15 = vadd.f32 %v586_v16, %v3322_v29  ;;  %v3140_v29 = vmov 4.0  }
0x1134   :  { %2963 = vtanh.f32 %v588_v15 }
0x1135   :  { %2965 = vrcp.f32 %v3140_v29 }
0x1139   :  { %v713_v15 = vpop.permute.xlu2 %712 }
0x113a   :  { %v2964_v18 = vpop.eup %2963 }
0x113b   :  { %592 = vrot.lane.b32.xlu0 %v2964_v18, %s3139_s14  ;;  %v2966_v32 = vpop.eup %2965 }
0x113c   :  { %v649_v34 = vmul.f32 4.0, %v2966_v32 }
0x113e   :  { %v650_v35 = vsub.f32 1.0, %v649_v34 }
0x1140   :  { %v651_v40 = vmul.f32 %v2966_v32, %v650_v35 }
0x1142   :  { %v652_v42 = vadd.f32 %v2966_v32, %v651_v40 }
0x11ad   :  { %v593_v22 = vpop.permute.xlu0 %592 }
0x11ae   :  { %v595_v24 = vmul.f32 %v593_v22, %v590_v21  ;;  %v2866_v21 = vld [vmem:[%s3915_s9] sm:$0xff] }
0x11af   :  { %824 = vmatpush.bf16.msrb.mxu2 %v2866_v21 }
0x11b0   :  { %v600_v26 = vadd.f32 %v599_v23, %v595_v24 }
0x11b2   :  { %v605_v27 = vpack.c.bf16 %v600_v26, %v600_v26  ;;  %v724_v26 = vperm.slane %v3247_v8, 6 }
0x11b4   :  { %v608_v28 = vrot.slane %v605_v27, 2 }
0x11b6   :  { %609 = vrot.lane.b32.xlu1 %v608_v28, %s3139_s14  ;;  %v3374_v28 = vld [vmem:[%s3917_s11 + $0x8] sm:$0x3f] }
0x11b7   :  { %v810_v29 = vperm.slane %v3374_v28, 2 }
0x1228   :  { %v610_v25 = vpop.permute.xlu1 %609 }
0x1229   :  { %2817 = vmatmul.msk.bf16.vlgmr.msra.gmra.mxu2 %vm100_vm6, %v610_v25  ;;  %vm653_vm6 = vweird.f32 %v2966_v32 }
0x122a   :  { %v3346_v45 = vsel %vm653_vm6, %v2966_v32, %v652_v42 }
0x12ac   :  { %v635_v31 = vpop.f32.mrf.mxu2 }
0x12ad   :  { %v636_v33 = vadd.f32 %v635_v31, %v606_v30 }
0x12af   :  { %2967 = vtanh.f32 %v636_v33 }
0x12b4   :  { %v637_v36 = vpop.f32.mrf.mxu2 }
0x12b5   :  { %v2968_v37 = vpop.eup %2967 }
0x12b6   :  { %v641_v38 = vsel %vm640_vm7, %v2968_v37, 0.0 }
0x12b7   :  { %v642_v39 = vrot.slane %v641_v38, 4 }
0x12b9   :  { %v643_v41 = vadd.f32 %v642_v39, %v641_v38 }
0x12bb   :  { %v644_v13 = vrot.slane %v643_v41, 2 }
0x12bd   :  { %v645_v43 = vadd.f32 %v644_v13, %v643_v41 }
0x12bf   :  { %v646_v44 = vrot.slane %v645_v43, 1 }
0x12c1   :  { %v647_v46 = vadd.f32 %v646_v44, %v645_v43 }
0x12c3   :  { %v655_v47 = vmul.f32 %v3346_v45, %v647_v46 }
0x12c5   :  { %v656_v48 = vsub.f32 %v2968_v37, %v655_v47 }
0x12c7   :  { %v657_v49 = vmul.f32 %v656_v48, %v656_v48 }
0x12c9   :  { %v658_v50 = vsel %vm640_vm7, %v657_v49, 0.0 }
0x12ca   :  { %v659_v51 = vrot.slane %v658_v50, 4 }
0x12cc   :  { %v660_v52 = vadd.f32 %v659_v51, %v658_v50 }
0x12ce   :  { %v661_v53 = vrot.slane %v660_v52, 2 }
0x12d0   :  { %v662_v55 = vadd.f32 %v661_v53, %v660_v52 }
0x12d2   :  { %v663_v56 = vrot.slane %v662_v55, 1 }
0x12d4   :  { %v664_v57 = vadd.f32 %v663_v56, %v662_v55 }
0x12d6   :  { %v665_v59 = vmul.f32 %v664_v57, %v3346_v45 }
0x12d8   :  { %v666_v60 = vadd.f32 1e-05, %v665_v59 }
0x12da   :  { %2969 = vrsqrt.f32 %v666_v60  ;;  %vm673_vm9 = vweird.f32 %v666_v60 }
0x12e0   :  { %v2970_v61 = vpop.eup %2969 }
0x12e1   :  { %v668_v62 = vmul.f32 %v2970_v61, %v666_v60  ;;  %vm674_vm8 = vweird.f32 %v2970_v61  ;;  %v2865_v60 = vld [vmem:[%s3914_s8] sm:$0xff] }
0x12e2   :  { %vm675_vm10 = vmor %vm673_vm9, %vm674_vm8  ;;  %802 = vmatpush.bf16.msrb.mxu1 %v2865_v60 }
0x12e3   :  { %v669_v63 = vmul.f32 %v2970_v61, %v668_v62 }
0x12e5   :  { %v670_v0 = vmul.f32 0.5, %v669_v63 }
0x12e7   :  { %v671_v1 = vsub.f32 1.5, %v670_v0 }
0x12e9   :  { %v672_v2 = vmul.f32 %v2970_v61, %v671_v1 }
0x12eb   :  { %v676_v4 = vsel %vm675_vm10, %v2970_v61, %v672_v2 }
0x12ec   :  { %v677_v5 = vmul.f32 %v676_v4, %v656_v48 }
0x12ee   :  { %v679_v6 = vmul.f32 %v678_v3, %v677_v5  ;;  %v2867_v3 = vld [vmem:[%s3916_s10] sm:$0xff] }
0x12ef   :  { %885 = vmatpush.bf16.msrb.mxu3 %v2867_v3 }
0x12f0   :  { %v681_v10 = vadd.f32 %v680_v9, %v679_v6 }
0x12f2   :  { %v684_v11 = vpack.c.bf16 %v681_v10, %v681_v10 }
0x12f4   :  { %2822 = vmatmul.msk.bf16.vlgmr.msra.gmra.mxu3 %vm692_vm11, %v684_v11 }
0x1377   :  { %v705_v14 = vpop.f32.mrf.mxu3 }
0x1378   :  { %v706_v16 = vadd.f32 %v705_v14, %v685_v12 }
0x137a   :  { %2971 = vtanh.f32 %v706_v16 }
0x137f   :  { %v707_v18 = vpop.f32.mrf.mxu3 }
0x1380   :  { %v2972_v17 = vpop.eup %2971 }
0x1381   :  { %v715_v19 = vmul.f32 %v2972_v17, %v713_v15 }
0x1383   :  { %717 = vrot.lane.b32.xlu0 %v715_v19, %s3142_s1 }
0x13f5   :  { %v718_v22 = vpop.permute.xlu0 %717 }
0x13f6   :  { %v720_v23 = vadd.f32 %v2972_v17, %v718_v22 }
0x13f8   :  { %v723_v24 = vpack.c.bf16 %v720_v23, %v720_v23  ;;  %v3109_v23 = vld [vmem:[%s3917_s11] sm:$0xff] }
0x13fa   :  { %2827 = vmatmul.msk.bf16.vlgmr.msra.gmra.mxu0 %vm692_vm11, %v723_v24  ;;  %2837 = vmatmul.msk.bf16.vlgmr.msrb.gmra.mxu2 %vm692_vm11, %v723_v24  ;;  %v778_v24 = vperm.slane %v3109_v23, 7 }
0x1477   :  { %v743_v27 = vpop.f32.mrf.mxu0 }
0x1478   :  { %v744_v25 = vadd.f32 %v743_v27, %v724_v26 }
0x147a   :  { %2973 = vtanh.f32 %v744_v25  ;;  %v780_v25 = vperm.slane %v3374_v28, 0 }
0x147d   :  { %v826_v30 = vpop.f32.mrf.mxu2 }
0x147e   :  { %v827_v31 = vadd.f32 %v826_v30, %v810_v29 }
0x147f   :  { %v745_v32 = vpop.f32.mrf.mxu0 }
0x1480   :  { %v2974_v33 = vpop.eup %2973  ;;  %2975 = vtanh.f32 %v827_v31  ;;  %v861_v32 = vperm.slane %v3374_v28, 3 }
0x1481   :  { %v748_v34 = vsel %vm640_vm7, %v2974_v33, 0.0 }
0x1482   :  { %v749_v35 = vrot.slane %v748_v34, 4 }
0x1484   :  { %v750_v36 = vadd.f32 %v749_v35, %v748_v34 }
0x1485   :  { %v828_v8 = vpop.f32.mrf.mxu2 }
0x1486   :  { %v2976_v37 = vpop.eup %2975  ;;  %v751_v38 = vrot.slane %v750_v36, 2  ;;  %v863_v8 = vperm.slane %v3374_v28, 4 }
0x1487   :  { %v831_v39 = vsel %vm640_vm7, %v2976_v37, 0.0 }
0x1488   :  { %v752_v40 = vadd.f32 %v751_v38, %v750_v36  ;;  %v832_v41 = vrot.slane %v831_v39, 4 }
0x148a   :  { %v753_v13 = vrot.slane %v752_v40, 1  ;;  %v833_v42 = vadd.f32 %v832_v41, %v831_v39 }
0x148c   :  { %v754_v43 = vadd.f32 %v753_v13, %v752_v40  ;;  %v834_v44 = vrot.slane %v833_v42, 2  ;;  %v868_v13 = vperm.slane %v3374_v28, 5 }
0x148e   :  { %v755_v46 = vmul.f32 %v754_v43, %v3346_v45  ;;  %v835_v47 = vadd.f32 %v834_v44, %v833_v42 }
0x1490   :  { %v756_v48 = vsub.f32 %v2974_v33, %v755_v46  ;;  %v836_v49 = vrot.slane %v835_v47, 1 }
0x1492   :  { %v757_v50 = vmul.f32 %v756_v48, %v756_v48  ;;  %v837_v51 = vadd.f32 %v836_v49, %v835_v47 }
0x1494   :  { %v758_v52 = vsel %vm640_vm7, %v757_v50, 0.0  ;;  %v838_v53 = vmul.f32 %v837_v51, %v3346_v45  ;;  %v3149_v50 = vmov 1983009808  }
0x1495   :  { %v759_v54 = vrot.slane %v758_v52, 4  ;;  %v918_v51 = vunpack.c.l.s4 %v3149_v50 }
0x1496   :  { %v839_v55 = vsub.f32 %v2976_v37, %v838_v53 }
0x1497   :  { %v760_v56 = vadd.f32 %v759_v54, %v758_v52  ;;  %v919_v54 = vunpack.c.0.s8 %v918_v51 }
0x1498   :  { %v840_v57 = vmul.f32 %v839_v55, %v839_v55 }
0x1499   :  { %v761_v58 = vrot.slane %v760_v56, 2 }
0x149a   :  { %v841_v59 = vsel %vm640_vm7, %v840_v57, 0.0 }
0x149b   :  { %v762_v61 = vadd.f32 %v761_v58, %v760_v56  ;;  %v842_v62 = vrot.slane %v841_v59, 4  ;;  %v3150_v58 = vmov 1934713408  }
0x149d   :  { %v763_v63 = vrot.slane %v762_v61, 1  ;;  %v843_v0 = vadd.f32 %v842_v62, %v841_v59  ;;  %v944_v59 = vunpack.c.l.s4 %v3150_v58 }
0x149f   :  { %v764_v1 = vadd.f32 %v763_v63, %v762_v61  ;;  %v844_v2 = vrot.slane %v843_v0, 2  ;;  %v945_v3 = vunpack.c.0.s8 %v944_v59 }
0x14a1   :  { %v765_v4 = vmul.f32 %v764_v1, %v3346_v45  ;;  %v845_v5 = vadd.f32 %v844_v2, %v843_v0 }
0x14a3   :  { %v766_v9 = vadd.f32 1e-05, %v765_v4  ;;  %v846_v6 = vrot.slane %v845_v5, 1 }
0x14a5   :  { %2977 = vrsqrt.f32 %v766_v9  ;;  %v847_v10 = vadd.f32 %v846_v6, %v845_v5  ;;  %vm773_vm13 = vweird.f32 %v766_v9 }
0x14a7   :  { %v848_v11 = vmul.f32 %v847_v10, %v3346_v45 }
0x14a9   :  { %v849_v12 = vadd.f32 1e-05, %v848_v11 }
0x14ab   :  { %v2978_v14 = vpop.eup %2977  ;;  %2979 = vrsqrt.f32 %v849_v12  ;;  %vm856_vm0 = vweird.f32 %v849_v12 }
0x14ac   :  { %v768_v16 = vmul.f32 %v2978_v14, %v766_v9  ;;  %vm774_vm12 = vweird.f32 %v2978_v14 }
0x14ad   :  { %vm775_vm14 = vmor %vm773_vm13, %vm774_vm12 }
0x14ae   :  { %v769_v15 = vmul.f32 %v2978_v14, %v768_v16 }
0x14b0   :  { %v770_v18 = vmul.f32 0.5, %v769_v15 }
0x14b1   :  { %v2980_v17 = vpop.eup %2979 }
0x14b2   :  { %v771_v19 = vsub.f32 1.5, %v770_v18  ;;  %v851_v20 = vmul.f32 %v2980_v17, %v849_v12  ;;  %vm857_vm15 = vweird.f32 %v2980_v17 }
0x14b3   :  { %vm858_vm2 = vmor %vm856_vm0, %vm857_vm15 }
0x14b4   :  { %v772_v21 = vmul.f32 %v2978_v14, %v771_v19  ;;  %v852_v22 = vmul.f32 %v2980_v17, %v851_v20 }
0x14b6   :  { %v776_v45 = vsel %vm775_vm14, %v2978_v14, %v772_v21  ;;  %v853_v26 = vmul.f32 0.5, %v852_v22 }
0x14b7   :  { %v777_v27 = vmul.f32 %v776_v45, %v756_v48  ;;  %v3148_v48 = vmov 0.0  }
0x14b8   :  { %v854_v29 = vsub.f32 1.5, %v853_v26  ;;  %2765 = vst [vmem:[#allocation2] sm:$0xf] %v3148_v48 }
0x14b9   :  { %v779_v30 = vmul.f32 %v778_v24, %v777_v27 }
0x14ba   :  { %v855_v31 = vmul.f32 %v2980_v17, %v854_v29 }
0x14bb   :  { %v781_v33 = vadd.f32 %v780_v25, %v779_v30 }
0x14bc   :  { %v859_v34 = vsel %vm858_vm2, %v2980_v17, %v855_v31  ;;  %v971_v31 = vlaneseq }
0x14bd   :  { %v860_v35 = vmul.f32 %v859_v34, %v839_v55  ;;  %v784_v36 = vpack.c.bf16 %v781_v33, %v781_v33 }
0x14be   :  { %v3427_v33 = vand.u32 127, %v971_v31 }
0x14bf   :  { %v862_v37 = vmul.f32 %v861_v32, %v860_v35  ;;  %2832 = vmatmul.msk.bf16.vlgmr.msrb.gmra.mxu1 %vm692_vm11, %v784_v36  ;;  %v3425_v32 = vshrl.u32 %v971_v31, 7 }
0x14c1   :  { %v864_v38 = vadd.f32 %v863_v8, %v862_v37  ;;  %vm975_vm4 = vcmp.eq.s32.totalorder %v3425_v32, %v3427_v33  ;;  %vm1212_vm2 = vcmp.eq.s32.totalorder %v3425_v32, 0 }
0x14c2   :  { %v976_v34 = vsel %vm975_vm4, 0.01, %v3148_v48 }
0x14c3   :  { %v867_v39 = vpack.c.bf16 %v864_v38, %v864_v38 }
0x14c5   :  { %2842 = vmatmul.msk.bf16.vlgmr.msrb.gmra.mxu3 %vm692_vm11, %v867_v39 }
0x153c   :  { %v3399_v40 = vpop.f32.mrf.mxu1 }
0x1544   :  { %v806_v41 = vpop.f32.mrf.mxu1 }
0x1548   :  { %v887_v42 = vpop.f32.mrf.mxu3 }
0x1549   :  { %v888_v43 = vadd.f32 %v887_v42, %v868_v13 }
0x154b   :  { %v891_v44 = vmax.f32 %v888_v43, 0.0 }
0x154d   :  { %902 = vrot.lane.b32.xlu0 %v891_v44, %s3139_s14  ;;  %896 = vrot.lane.b32.xlu2 %v891_v44, %s3142_s1  ;;  %s2773_s1 = sshll.u32 %s3158_s25, 4  ;;  %s2774_s1 = int_to_ptr.vmem [resolvable:$true] %s2773_s1 }
0x154e   :  { %908 = vrot.lane.b32.xlu1 %v891_v44, %s3143_s13 }
0x1550   :  { %v889_v46 = vpop.f32.mrf.mxu3 }
0x1555   :  { %905 = vrot.lane.b32.xlu0 %v891_v44, %s3144_s15  ;;  %899 = vrot.lane.b32.xlu2 %v891_v44, %s3145_s16 }
0x1556   :  { %911 = vrot.lane.b32.xlu1 %v891_v44, %s3146_s17 }
0x155e   :  { %893 = vrot.lane.b32.xlu1 %v891_v44, %s3147_s18 }
0x15a7   :  { %v897_v52 = vpop.permute.xlu2 %896 }
0x15a8   :  { %v914_v55 = vrot.slane %v897_v52, 4 }
0x15aa   :  { %v916_v62 = vsel %vm915_vm3, %v914_v55, %v891_v44 }
0x15ab   :  { %v920_v4 = vperm.slane %v916_v62, %v919_v54 }
0x15ad   :  { %v941_v16 = vrot.slane %v920_v4, 4 }
0x15af   :  { %v900_v0 = vpop.permute.xlu2 %899 }
0x15b0   :  { %v921_v6 = vrot.slane %v900_v0, 4 }
0x15bf   :  { %v903_v47 = vpop.permute.xlu0 %902 }
0x15c0   :  { %v909_v28 = vpop.permute.xlu1 %908 }
0x15c1   :  { %v927_v49 = vrot.slane %v909_v28, 4 }
0x15c3   :  { %v928_v53 = vsel %vm915_vm3, %v927_v49, %v903_v47 }
0x15c4   :  { %v932_v56 = vperm.slane %v928_v53, %v919_v54 }
0x15c6   :  { %v953_v1 = vrot.slane %v932_v56, 4 }
0x15c7   :  { %v906_v61 = vpop.permute.xlu0 %905 }
0x15c8   :  { %v912_v57 = vpop.permute.xlu1 %911 }
0x15c9   :  { %v933_v60 = vrot.slane %v912_v57, 4 }
0x15cb   :  { %v934_v63 = vsel %vm915_vm3, %v933_v60, %v906_v61 }
0x15cc   :  { %v938_v2 = vperm.slane %v934_v63, %v919_v54 }
0x15ce   :  { %v951_v5 = vrot.slane %v938_v2, 4  ;;  %v954_v9 = vsel %vm915_vm3, %v938_v2, %v953_v1 }
0x15cf   :  { %v962_v12 = vperm.slane %v954_v9, %v945_v3 }
0x15d0   :  { %v952_v10 = vsel %vm915_vm3, %v951_v5, %v932_v56  ;;  %v894_v11 = vpop.permute.xlu1 %893 }
0x15d1   :  { %v922_v14 = vsel %vm915_vm3, %v921_v6, %v894_v11  ;;  %v958_v18 = vperm.slane %v952_v10, %v945_v3  ;;  %v967_v21 = vrot.slane %v962_v12, 4 }
0x15d2   :  { %v926_v15 = vperm.slane %v922_v14, %v919_v54 }
0x15d3   :  { %v963_v45 = vrot.slane %v958_v18, 4 }
0x15d4   :  { %v939_v17 = vrot.slane %v926_v15, 4  ;;  %v942_v19 = vsel %vm915_vm3, %v926_v15, %v941_v16 }
0x15d5   :  { %v950_v20 = vperm.slane %v942_v19, %v945_v3 }
0x15d6   :  { %v940_v22 = vsel %vm915_vm3, %v939_v17, %v920_v4 }
0x15d7   :  { %v968_v23 = vsel %vm915_vm3, %v967_v21, %v950_v20  ;;  %v946_v24 = vperm.slane %v940_v22, %v945_v3  ;;  %v969_v26 = vrot.slane %v950_v20, 4 }
0x15d8   :  { %2847 = vmatpush.xpose.msk.msra.mxu2 %vm53_vm1, %v968_v23 }
0x15d9   :  { %v964_v27 = vsel %vm915_vm3, %v963_v45, %v946_v24  ;;  %v970_v25 = vsel %vm915_vm3, %v962_v12, %v969_v26  ;;  %v965_v29 = vrot.slane %v946_v24, 4  ;;  %v3151_v26 = vmov 1  }
0x15da   :  { %2843 = vmatpush.xpose.msk.msrb.mxu0 %vm53_vm1, %v964_v27  ;;  %2849 = vmatpush.xpose.msk.msra.mxu3 %vm53_vm1, %v970_v25 }
0x15db   :  { %2848 = vmatmul.msk.f32.vlgmr.msra.gmra.mxu2 %vm53_vm1, %v968_v23  ;;  %v966_v30 = vsel %vm915_vm3, %v958_v18, %v965_v29 }
0x15dc   :  { %2845 = vmatpush.xpose.msk.msra.mxu1 %vm53_vm1, %v966_v30 }
0x15dd   :  { %2844 = vmatmul.msk.f32.vlgmr.msrb.gmra.mxu0 %vm53_vm1, %v964_v27  ;;  %2850 = vmatmul.msk.f32.vlgmr.msra.gmra.mxu3 %vm53_vm1, %v970_v25 }
0x15df   :  { %2846 = vmatmul.msk.f32.vlgmr.msra.gmra.mxu1 %vm53_vm1, %v966_v30 }
0x165a   :  { %v997_v35 = vpop.f32.mrf.mxu0 }
0x165b   :  { %v3432_v36 = vadd.f32 %v997_v35, %v976_v34 }
0x165c   :  { %v1020_v8 = vpop.f32.mrf.mxu1 }
0x165d   :  { %v3434_v37 = vadd.f32 %v1020_v8, %v976_v34  ;;  %v1073_v38 = vmax.f32 %v3432_v36, 1e-12 }
0x165e   :  { %v1043_v39 = vpop.f32.mrf.mxu2 }
0x165f   :  { %v3437_v41 = vadd.f32 %v1043_v39, %v976_v34  ;;  %2981 = vrsqrt.f32 %v1073_v38  ;;  %v1074_v42 = vmax.f32 %v3434_v37, 1e-12  ;;  %vm1084_vm5 = vcmp.eq.f32.partialorder %v1073_v38, inf }
0x1660   :  { %v1066_v13 = vpop.f32.mrf.mxu3  ;;  %v1087_v3 = vand.u32 2147483648, %v1073_v38  ;;  %vm1086_vm7 = vcmp.eq.f32.partialorder %v1073_v38, 0.0 }
0x1661   :  { %v3440_v43 = vadd.f32 %v1066_v13, %v976_v34  ;;  %v1075_v44 = vmax.f32 %v3437_v41, 1e-12  ;;  %2983 = vrsqrt.f32 %v1074_v42  ;;  %vm1096_vm6 = vcmp.eq.f32.partialorder %v1074_v42, inf }
0x1662   :  { %vm1098_vm8 = vcmp.eq.f32.partialorder %v1074_v42, 0.0  ;;  %v1099_v14 = vand.u32 2147483648, %v1074_v42 }
0x1663   :  { %2985 = vrsqrt.f32 %v1075_v44  ;;  %v1076_v46 = vmax.f32 %v3440_v43, 1e-12  ;;  %vm1108_vm9 = vcmp.eq.f32.partialorder %v1075_v44, inf  ;;  %v1111_v18 = vand.u32 2147483648, %v1075_v44 }
0x1664   :  { %vm1110_vm10 = vcmp.eq.f32.partialorder %v1075_v44, 0.0 }
0x1665   :  { %v2982_v47 = vpop.eup %2981  ;;  %2987 = vrsqrt.f32 %v1076_v46  ;;  %vm1120_vm11 = vcmp.eq.f32.partialorder %v1076_v46, inf  ;;  %v1123_v24 = vand.u32 2147483648, %v1076_v46  ;;  %vm1122_vm12 = vcmp.eq.f32.partialorder %v1076_v46, 0.0 }
0x1666   :  { %v1078_v28 = vmul.f32 %v2982_v47, %v1073_v38 }
0x1667   :  { %v2984_v49 = vpop.eup %2983 }
0x1668   :  { %v1079_v50 = vmul.f32 %v2982_v47, %v1078_v28  ;;  %v1090_v52 = vmul.f32 %v2984_v49, %v1074_v42 }
0x1669   :  { %v2986_v51 = vpop.eup %2985 }
0x166a   :  { %v1080_v53 = vmul.f32 0.5, %v1079_v50  ;;  %v1102_v54 = vmul.f32 %v2986_v51, %v1075_v44  ;;  %v1091_v55 = vmul.f32 %v2984_v49, %v1090_v52  ;;  %v2851_v50 = vsel %vm1212_vm2, 1.0, %v3148_v48 }
0x166b   :  { %v2988_v56 = vpop.eup %2987 }
0x166c   :  { %v1081_v57 = vsub.f32 1.5, %v1080_v53  ;;  %v1103_v58 = vmul.f32 %v2986_v51, %v1102_v54  ;;  %v1092_v59 = vmul.f32 0.5, %v1091_v55  ;;  %v1114_v60 = vmul.f32 %v2988_v56, %v1076_v46 }
0x166e   :  { %v1082_v61 = vmul.f32 %v2982_v47, %v1081_v57  ;;  %v1104_v62 = vmul.f32 0.5, %v1103_v58  ;;  %v1093_v63 = vsub.f32 1.5, %v1092_v59  ;;  %v1115_v0 = vmul.f32 %v2988_v56, %v1114_v60 }
0x1670   :  { %v1083_v1 = vmul.f32 %v1082_v61, %v1073_v38  ;;  %v1105_v2 = vsub.f32 1.5, %v1104_v62  ;;  %v1094_v4 = vmul.f32 %v2984_v49, %v1093_v63  ;;  %v1116_v5 = vmul.f32 0.5, %v1115_v0 }
0x1672   :  { %v1085_v9 = vsel %vm1084_vm5, %v1073_v38, %v1083_v1  ;;  %v1106_v6 = vmul.f32 %v2986_v51, %v1105_v2  ;;  %v1095_v11 = vmul.f32 %v1094_v4, %v1074_v42  ;;  %v1117_v12 = vsub.f32 1.5, %v1116_v5 }
0x1673   :  { %v1088_v10 = vsel %vm1086_vm7, %v1087_v3, %v1085_v9 }
0x1674   :  { %1128 = vperm.xlu2 %2890, %v1088_v10   ;;  %v1107_v16 = vmul.f32 %v1106_v6, %v1075_v44  ;;  %v1097_v15 = vsel %vm1096_vm6, %v1074_v42, %v1095_v11  ;;  %v1118_v17 = vmul.f32 %v2988_v56, %v1117_v12 }
0x1675   :  { %v1100_v19 = vsel %vm1098_vm8, %v1099_v14, %v1097_v15 }
0x1676   :  { %v1109_v20 = vsel %vm1108_vm9, %v1075_v44, %v1107_v16  ;;  %1133 = vperm.xlu0 %2891, %v1100_v19   ;;  %v1119_v22 = vmul.f32 %v1118_v17, %v1076_v46 }
0x1677   :  { %v1112_v21 = vsel %vm1110_vm10, %v1111_v18, %v1109_v20 }
0x1678   :  { %1138 = vperm.xlu1 %2892, %v1112_v21   ;;  %v1121_v23 = vsel %vm1120_vm11, %v1076_v46, %v1119_v22 }
0x1679   :  { %v1124_v45 = vsel %vm1122_vm12, %v1123_v24, %v1121_v23 }
0x167c   :  { %1143 = vperm.xlu2 %2890, %v1124_v45  }
0x167e   :  { %2895 = vset.pattern.permute.xlu0 %v3151_v26 }
0x1680   :  { %2893 = vset.pattern.permute.xlu1 %v3151_v26 }
0x1684   :  { %2894 = vset.pattern.permute.xlu2 %v3151_v26 }
0x16ce   :  { %v1129_v27 = vpop.permute.xlu2 %1128 }
0x16cf   :  { %2989 = vrcp.f32 %v1129_v27  ;;  %v1157_v34 = vand.u32 2147483648, %v1129_v27  ;;  %v1155_v8 = vand.u32 2147483647, %v1129_v27  ;;  %vm1151_vm14 = vweird.f32 %v1129_v27 }
0x16d1   :  { %v1158_v13 = vor.u32 1.1754944e-38, %v1157_v34  ;;  %vm1156_vm0 = vcmp.eq.f32.partialorder %v1155_v8, 8.507059e+37 }
0x16d5   :  { %v2990_v25 = vpop.eup %2989 }
0x16d6   :  { %v1147_v29 = vmul.f32 %v2990_v25, %v1129_v27  ;;  %v1144_v30 = vpop.permute.xlu2 %1143  ;;  %vm1152_vm13 = vweird.f32 %v2990_v25 }
0x16d7   :  { %2991 = vrcp.f32 %v1144_v30  ;;  %vm1153_vm15 = vmor %vm1151_vm14, %vm1152_vm13  ;;  %v1202_v49 = vand.u32 2147483648, %v1144_v30  ;;  %v1200_v52 = vand.u32 2147483647, %v1144_v30  ;;  %vm1196_vm4 = vweird.f32 %v1144_v30 }
0x16d8   :  { %v1148_v31 = vsub.f32 1.0, %v1147_v29 }
0x16d9   :  { %v1203_v56 = vor.u32 1.1754944e-38, %v1202_v49  ;;  %vm1201_vm7 = vcmp.eq.f32.partialorder %v1200_v52, 8.507059e+37 }
0x16da   :  { %v1149_v35 = vmul.f32 %v2990_v25, %v1148_v31 }
0x16dc   :  { %v1150_v38 = vadd.f32 %v2990_v25, %v1149_v35 }
0x16dd   :  { %v2992_v39 = vpop.eup %2991 }
0x16de   :  { %v1192_v42 = vmul.f32 %v2992_v39, %v1144_v30  ;;  %v1154_v44 = vsel %vm1153_vm15, %v2990_v25, %v1150_v38  ;;  %vm1197_vm3 = vweird.f32 %v2992_v39 }
0x16df   :  { %v1159_v46 = vsel %vm1156_vm0, %v1158_v13, %v1154_v44  ;;  %vm1198_vm5 = vmor %vm1196_vm4, %vm1197_vm3 }
0x16e0   :  { %v1193_v47 = vsub.f32 1.0, %v1192_v42  ;;  %v1160_v28 = vmul.f32 %v1159_v46, %v3432_v36 }
0x16e2   :  { %v1194_v51 = vmul.f32 %v2992_v39, %v1193_v47  ;;  %v1215_v53 = vperm.slane %v1160_v28, 0 }
0x16e4   :  { %v1195_v54 = vadd.f32 %v2992_v39, %v1194_v51  ;;  %v3447_v55 = vmul.f32 %v2851_v50, %v1215_v53 }
0x16e6   :  { %1229 = vperm.xlu1 %2893, %v3447_v55   ;;  %v1199_v57 = vsel %vm1198_vm5, %v2992_v39, %v1195_v54 }
0x16e7   :  { %v1204_v58 = vsel %vm1201_vm7, %v1203_v56, %v1199_v57 }
0x16e8   :  { %v1205_v59 = vmul.f32 %v1204_v58, %v3440_v43  ;;  %v1134_v60 = vpop.permute.xlu0 %1133 }
0x16e9   :  { %2993 = vrcp.f32 %v1134_v60  ;;  %v1172_v5 = vand.u32 2147483648, %v1134_v60  ;;  %v1170_v10 = vand.u32 2147483647, %v1134_v60  ;;  %vm1166_vm9 = vweird.f32 %v1134_v60 }
0x16ea   :  { %v1139_v61 = vpop.permute.xlu1 %1138  ;;  %v1218_v62 = vperm.slane %v1205_v59, 0 }
0x16eb   :  { %2995 = vrcp.f32 %v1139_v61  ;;  %v1187_v11 = vand.u32 2147483648, %v1139_v61  ;;  %v1185_v14 = vand.u32 2147483647, %v1139_v61  ;;  %v1173_v15 = vor.u32 1.1754944e-38, %v1172_v5 }
0x16ec   :  { %v3451_v63 = vmul.f32 %v2851_v50, %v1218_v62  ;;  %vm1181_vm11 = vweird.f32 %v1139_v61  ;;  %vm1171_vm12 = vcmp.eq.f32.partialorder %v1170_v10, 8.507059e+37 }
0x16ed   :  { %v1188_v17 = vor.u32 1.1754944e-38, %v1187_v11  ;;  %vm1186_vm14 = vcmp.eq.f32.partialorder %v1185_v14, 8.507059e+37 }
0x16ee   :  { %1244 = vperm.xlu1 %2893, %v3451_v63  }
0x16ef   :  { %v2994_v0 = vpop.eup %2993 }
0x16f0   :  { %v1162_v2 = vmul.f32 %v2994_v0, %v1134_v60  ;;  %vm1167_vm6 = vweird.f32 %v2994_v0 }
0x16f1   :  { %v2996_v1 = vpop.eup %2995  ;;  %vm1168_vm10 = vmor %vm1166_vm9, %vm1167_vm6 }
0x16f2   :  { %v1177_v3 = vmul.f32 %v2996_v1, %v1139_v61  ;;  %v1163_v4 = vsub.f32 1.0, %v1162_v2  ;;  %vm1182_vm8 = vweird.f32 %v2996_v1 }
0x16f3   :  { %vm1183_vm13 = vmor %vm1181_vm11, %vm1182_vm8 }
0x16f4   :  { %v1178_v9 = vsub.f32 1.0, %v1177_v3  ;;  %v1164_v6 = vmul.f32 %v2994_v0, %v1163_v4 }
0x16f6   :  { %v1179_v12 = vmul.f32 %v2996_v1, %v1178_v9  ;;  %v1165_v16 = vadd.f32 %v2994_v0, %v1164_v6 }
0x16f8   :  { %v1180_v18 = vadd.f32 %v2996_v1, %v1179_v12  ;;  %v1169_v19 = vsel %vm1168_vm10, %v2994_v0, %v1165_v16 }
0x16f9   :  { %v1174_v20 = vsel %vm1171_vm12, %v1173_v15, %v1169_v19  ;;  %vm1335_vm12 = vcmp.ge.s32.totalorder %v3427_v33, 1 }
0x16fa   :  { %v1184_v21 = vsel %vm1183_vm13, %v2996_v1, %v1180_v18  ;;  %v1175_v22 = vmul.f32 %v1174_v20, %v3434_v37  ;;  %vm1422_vm13 = vcmp.eq.s32.totalorder %v3425_v32, 1 }
0x16fb   :  { %v1189_v23 = vsel %vm1186_vm14, %v1188_v17, %v1184_v21 }
0x16fc   :  { %v1190_v24 = vmul.f32 %v1189_v23, %v3437_v41  ;;  %v1216_v45 = vperm.slane %v1175_v22, 0 }
0x16fe   :  { %v1217_v26 = vperm.slane %v1190_v24, 0  ;;  %v3456_v27 = vmul.f32 %v2851_v50, %v1216_v45 }
0x1700   :  { %v3458_v25 = vmul.f32 %v2851_v50, %v1217_v26  ;;  %1234 = vperm.xlu2 %2894, %v3456_v27  }
0x1702   :  { %1239 = vperm.xlu0 %2895, %v3458_v25  }
0x1758   :  { %v1230_v29 = vpop.permute.xlu1 %1229 }
0x1759   :  { %v1247_v30 = vmul.f32 %v1230_v29, %v3447_v55 }
0x175a   :  { %v1235_v34 = vpop.permute.xlu2 %1234 }
0x175b   :  { %v1251_v31 = vsel %vm53_vm1, %v1247_v30, 0.0  ;;  %v1248_v8 = vmul.f32 %v1235_v34, %v3456_v27 }
0x175c   :  { %v1252_v35 = vrot.slane %v1251_v31, 4 }
0x175d   :  { %v1258_v39 = vsel %vm53_vm1, %v1248_v8, 0.0 }
0x175e   :  { %v1253_v38 = vadd.f32 %v1252_v35, %v1251_v31  ;;  %v1259_v13 = vrot.slane %v1258_v39, 4 }
0x1760   :  { %v1254_v42 = vrot.slane %v1253_v38, 2  ;;  %v1260_v44 = vadd.f32 %v1259_v13, %v1258_v39  ;;  %v1245_v47 = vpop.permute.xlu1 %1244 }
0x1761   :  { %v1250_v49 = vmul.f32 %v1245_v47, %v3451_v63 }
0x1762   :  { %v1255_v46 = vadd.f32 %v1254_v42, %v1253_v38  ;;  %v1261_v28 = vrot.slane %v1260_v44, 2 }
0x1763   :  { %v1272_v52 = vsel %vm53_vm1, %v1250_v49, 0.0 }
0x1764   :  { %v1256_v50 = vrot.slane %v1255_v46, 1  ;;  %v1262_v51 = vadd.f32 %v1261_v28, %v1260_v44  ;;  %v1273_v54 = vrot.slane %v1272_v52, 4 }
0x1766   :  { %v1257_v53 = vadd.f32 %v1256_v50, %v1255_v46  ;;  %v1263_v56 = vrot.slane %v1262_v51, 1  ;;  %v1274_v58 = vadd.f32 %v1273_v54, %v1272_v52 }
0x1768   :  { %v3469_v57 = vsub.f32 %v3432_v36, %v1257_v53  ;;  %v1264_v59 = vadd.f32 %v1263_v56, %v1262_v51  ;;  %v1275_v61 = vrot.slane %v1274_v58, 2 }
0x176a   :  { %v1283_v60 = vmax.f32 %v3469_v57, 1e-12  ;;  %v3473_v62 = vsub.f32 %v3434_v37, %v1264_v59  ;;  %v1276_v0 = vadd.f32 %v1275_v61, %v1274_v58 }
0x176c   :  { %2997 = vrsqrt.f32 %v1283_v60  ;;  %v1284_v1 = vmax.f32 %v3473_v62, 1e-12  ;;  %v1277_v2 = vrot.slane %v1276_v0, 1  ;;  %vm1294_vm15 = vcmp.eq.f32.partialorder %v1283_v60, inf }
0x176d   :  { %v1297_v34 = vand.u32 2147483648, %v1283_v60  ;;  %vm1296_vm0 = vcmp.eq.f32.partialorder %v1283_v60, 0.0 }
0x176e   :  { %2999 = vrsqrt.f32 %v1284_v1  ;;  %v1278_v3 = vadd.f32 %v1277_v2, %v1276_v0  ;;  %vm1306_vm2 = vcmp.eq.f32.partialorder %v1284_v1, inf  ;;  %v1309_v44 = vand.u32 2147483648, %v1284_v1 }
0x176f   :  { %vm1308_vm3 = vcmp.eq.f32.partialorder %v1284_v1, 0.0 }
0x1770   :  { %v3477_v5 = vsub.f32 %v3440_v43, %v1278_v3 }
0x1772   :  { %v2998_v4 = vpop.eup %2997  ;;  %v1286_v6 = vmax.f32 %v3477_v5, 1e-12 }
0x1773   :  { %v1288_v9 = vmul.f32 %v2998_v4, %v1283_v60 }
0x1774   :  { %v1240_v10 = vpop.permute.xlu0 %1239  ;;  %v3000_v11 = vpop.eup %2999  ;;  %3001 = vrsqrt.f32 %v1286_v6  ;;  %vm1330_vm4 = vcmp.eq.f32.partialorder %v1286_v6, inf  ;;  %v1333_v56 = vand.u32 2147483648, %v1286_v6  ;;  %vm1332_vm5 = vcmp.eq.f32.partialorder %v1286_v6, 0.0 }
0x1775   :  { %v1249_v12 = vmul.f32 %v1240_v10, %v3458_v25  ;;  %v1289_v14 = vmul.f32 %v2998_v4, %v1288_v9  ;;  %v1300_v16 = vmul.f32 %v3000_v11, %v1284_v1 }
0x1777   :  { %v1265_v15 = vsel %vm53_vm1, %v1249_v12, 0.0  ;;  %v1290_v18 = vmul.f32 0.5, %v1289_v14  ;;  %v1301_v19 = vmul.f32 %v3000_v11, %v1300_v16  ;;  %v3152_v12 = vmov 2  }
0x1778   :  { %v1266_v17 = vrot.slane %v1265_v15, 4 }
0x1779   :  { %v1291_v20 = vsub.f32 1.5, %v1290_v18  ;;  %v1302_v22 = vmul.f32 0.5, %v1301_v19 }
0x177a   :  { %v1267_v21 = vadd.f32 %v1266_v17, %v1265_v15  ;;  %v3002_v24 = vpop.eup %3001 }
0x177b   :  { %v1292_v23 = vmul.f32 %v2998_v4, %v1291_v20  ;;  %v1303_v26 = vsub.f32 1.5, %v1302_v22  ;;  %v1324_v30 = vmul.f32 %v3002_v24, %v1286_v6 }
0x177c   :  { %v1268_v45 = vrot.slane %v1267_v21, 2 }
0x177d   :  { %v1293_v29 = vmul.f32 %v1292_v23, %v1283_v60  ;;  %v1304_v35 = vmul.f32 %v3000_v11, %v1303_v26  ;;  %v1325_v38 = vmul.f32 %v3002_v24, %v1324_v30  ;;  %v3492_v26 = vsel %vm1422_vm13, 1.0, %v3148_v48 }
0x177e   :  { %v1269_v31 = vadd.f32 %v1268_v45, %v1267_v21 }
0x177f   :  { %v1295_v8 = vsel %vm1294_vm15, %v1283_v60, %v1293_v29  ;;  %v1305_v42 = vmul.f32 %v1304_v35, %v1284_v1  ;;  %v1326_v46 = vmul.f32 0.5, %v1325_v38 }
0x1780   :  { %v1270_v39 = vrot.slane %v1269_v31, 1  ;;  %v1298_v13 = vsel %vm1296_vm0, %v1297_v34, %v1295_v8 }
0x1781   :  { %1338 = vperm.xlu2 %2894, %v1298_v13   ;;  %v1307_v28 = vsel %vm1306_vm2, %v1284_v1, %v1305_v42  ;;  %v1327_v50 = vsub.f32 1.5, %v1326_v46 }
0x1782   :  { %v1271_v47 = vadd.f32 %v1270_v39, %v1269_v31  ;;  %v1310_v49 = vsel %vm1308_vm3, %v1309_v44, %v1307_v28 }
0x1783   :  { %1343 = vperm.xlu1 %2893, %v1310_v49   ;;  %v1328_v52 = vmul.f32 %v3002_v24, %v1327_v50 }
0x1784   :  { %v3483_v51 = vsub.f32 %v3437_v41, %v1271_v47 }
0x1785   :  { %v1329_v54 = vmul.f32 %v1328_v52, %v1286_v6 }
0x1786   :  { %v1285_v53 = vmax.f32 %v3483_v51, 1e-12 }
0x1787   :  { %v1331_v58 = vsel %vm1330_vm4, %v1286_v6, %v1329_v54 }
0x1788   :  { %3003 = vrsqrt.f32 %v1285_v53  ;;  %v1334_v59 = vsel %vm1332_vm5, %v1333_v56, %v1331_v58  ;;  %vm1318_vm7 = vcmp.eq.f32.partialorder %v1285_v53, inf  ;;  %v1321_v9 = vand.u32 2147483648, %v1285_v53 }
0x1789   :  { %1353 = vperm.xlu0 %2895, %v1334_v59   ;;  %vm1320_vm6 = vcmp.eq.f32.partialorder %v1285_v53, 0.0 }
0x178b   :  { %2896 = vset.pattern.permute.xlu1 %v3152_v12 }
0x178e   :  { %v3004_v60 = vpop.eup %3003 }
0x178f   :  { %v1312_v61 = vmul.f32 %v3004_v60, %v1285_v53 }
0x1791   :  { %v1313_v0 = vmul.f32 %v3004_v60, %v1312_v61  ;;  %2898 = vset.pattern.permute.xlu0 %v3152_v12 }
0x1793   :  { %v1314_v1 = vmul.f32 0.5, %v1313_v0 }
0x1795   :  { %v1315_v2 = vsub.f32 1.5, %v1314_v1 }
0x1797   :  { %v1316_v3 = vmul.f32 %v3004_v60, %v1315_v2 }
0x1799   :  { %v1317_v4 = vmul.f32 %v1316_v3, %v1285_v53 }
0x179b   :  { %v1319_v10 = vsel %vm1318_vm7, %v1285_v53, %v1317_v4 }
0x179c   :  { %v1322_v11 = vsel %vm1320_vm6, %v1321_v9, %v1319_v10 }
0x179d   :  { %1348 = vperm.xlu2 %2894, %v1322_v11  }
0x17a5   :  { %2897 = vset.pattern.permute.xlu2 %v3152_v12 }
0x17db   :  { %v1339_v6 = vpop.permute.xlu2 %1338 }
0x17dc   :  { %3005 = vrcp.f32 %v1339_v6  ;;  %v1367_v18 = vand.u32 2147483648, %v1339_v6  ;;  %v1365_v19 = vand.u32 2147483647, %v1339_v6  ;;  %vm1361_vm9 = vweird.f32 %v1339_v6 }
0x17de   :  { %v1368_v21 = vor.u32 1.1754944e-38, %v1367_v18  ;;  %vm1366_vm11 = vcmp.eq.f32.partialorder %v1365_v19, 8.507059e+37 }
0x17e2   :  { %v3006_v14 = vpop.eup %3005 }
0x17e3   :  { %v1357_v16 = vmul.f32 %v3006_v14, %v1339_v6  ;;  %vm1362_vm8 = vweird.f32 %v3006_v14 }
0x17e4   :  { %vm1363_vm10 = vmor %vm1361_vm9, %vm1362_vm8 }
0x17e5   :  { %v1358_v15 = vsub.f32 1.0, %v1357_v16 }
0x17e7   :  { %v1359_v17 = vmul.f32 %v3006_v14, %v1358_v15 }
0x17e9   :  { %v1360_v20 = vadd.f32 %v3006_v14, %v1359_v17 }
0x17eb   :  { %v1364_v22 = vsel %vm1363_vm10, %v3006_v14, %v1360_v20 }
0x17ec   :  { %v1369_v23 = vsel %vm1366_vm11, %v1368_v21, %v1364_v22 }
0x17ed   :  { %v1370_v24 = vmul.f32 %v1369_v23, %v3469_v57 }
0x17ef   :  { %v1418_v45 = vsel %vm1335_vm12, %v1370_v24, 0.0 }
0x17f0   :  { %v1425_v29 = vperm.slane %v1418_v45, 1 }
0x17f2   :  { %v1429_v30 = vmul.f32 %v3492_v26, %v1425_v29 }
0x17f4   :  { %v3496_v31 = vadd.f32 %v1429_v30, %v3447_v55 }
0x17f5   :  { %v1344_v34 = vpop.permute.xlu1 %1343 }
0x17f6   :  { %1439 = vperm.xlu1 %2896, %v3496_v31   ;;  %3007 = vrcp.f32 %v1344_v34  ;;  %v1382_v44 = vand.u32 2147483648, %v1344_v34  ;;  %v1380_v28 = vand.u32 2147483647, %v1344_v34  ;;  %vm1376_vm0 = vweird.f32 %v1344_v34 }
0x17f7   :  { %v1349_v35 = vpop.permute.xlu2 %1348 }
0x17f8   :  { %3009 = vrcp.f32 %v1349_v35  ;;  %v1397_v55 = vand.u32 2147483648, %v1349_v35  ;;  %v1395_v50 = vand.u32 2147483647, %v1349_v35  ;;  %v1383_v54 = vor.u32 1.1754944e-38, %v1382_v44 }
0x17f9   :  { %vm1391_vm3 = vweird.f32 %v1349_v35  ;;  %vm1381_vm4 = vcmp.eq.f32.partialorder %v1380_v28, 8.507059e+37 }
0x17fa   :  { %v1398_v60 = vor.u32 1.1754944e-38, %v1397_v55  ;;  %vm1396_vm7 = vcmp.eq.f32.partialorder %v1395_v50, 8.507059e+37 }
0x17fb   :  { %v1354_v57 = vpop.permute.xlu0 %1353 }
0x17fc   :  { %v3008_v8 = vpop.eup %3007  ;;  %3011 = vrcp.f32 %v1354_v57  ;;  %v1412_v2 = vand.u32 2147483648, %v1354_v57  ;;  %v1410_v10 = vand.u32 2147483647, %v1354_v57  ;;  %vm1406_vm8 = vweird.f32 %v1354_v57 }
0x17fd   :  { %v1372_v39 = vmul.f32 %v3008_v8, %v1344_v34  ;;  %vm1377_vm14 = vweird.f32 %v3008_v8 }
0x17fe   :  { %v3010_v38 = vpop.eup %3009  ;;  %vm1378_vm2 = vmor %vm1376_vm0, %vm1377_vm14  ;;  %v1413_v15 = vor.u32 1.1754944e-38, %v1412_v2  ;;  %vm1411_vm10 = vcmp.eq.f32.partialorder %v1410_v10, 8.507059e+37 }
0x17ff   :  { %v1387_v13 = vmul.f32 %v3010_v38, %v1349_v35  ;;  %v1373_v42 = vsub.f32 1.0, %v1372_v39  ;;  %vm1392_vm15 = vweird.f32 %v3010_v38 }
0x1800   :  { %vm1393_vm5 = vmor %vm1391_vm3, %vm1392_vm15 }
0x1801   :  { %v1388_v46 = vsub.f32 1.0, %v1387_v13  ;;  %v1374_v47 = vmul.f32 %v3008_v8, %v1373_v42 }
0x1802   :  { %v3012_v52 = vpop.eup %3011 }
0x1803   :  { %v1389_v49 = vmul.f32 %v3010_v38, %v1388_v46  ;;  %v1375_v53 = vadd.f32 %v3008_v8, %v1374_v47  ;;  %v1402_v58 = vmul.f32 %v3012_v52, %v1354_v57  ;;  %vm1407_vm6 = vweird.f32 %v3012_v52 }
0x1804   :  { %vm1408_vm9 = vmor %vm1406_vm8, %vm1407_vm6  ;;  %vm1545_vm8 = vcmp.ge.s32.totalorder %v3427_v33, 2 }
0x1805   :  { %v1390_v56 = vadd.f32 %v3010_v38, %v1389_v49  ;;  %v1379_v59 = vsel %vm1378_vm2, %v3008_v8, %v1375_v53  ;;  %v1403_v0 = vsub.f32 1.0, %v1402_v58 }
0x1806   :  { %v1384_v1 = vsel %vm1381_vm4, %v1383_v54, %v1379_v59 }
0x1807   :  { %v1394_v61 = vsel %vm1393_vm5, %v3010_v38, %v1390_v56  ;;  %v1385_v3 = vmul.f32 %v1384_v1, %v3473_v62  ;;  %v1404_v9 = vmul.f32 %v3012_v52, %v1403_v0 }
0x1808   :  { %v1399_v4 = vsel %vm1396_vm7, %v1398_v60, %v1394_v61 }
0x1809   :  { %v1400_v11 = vmul.f32 %v1399_v4, %v3483_v51  ;;  %v1419_v12 = vsel %vm1335_vm12, %v1385_v3, 0.0  ;;  %v1405_v6 = vadd.f32 %v3012_v52, %v1404_v9 }
0x180a   :  { %v1426_v14 = vperm.slane %v1419_v12, 1 }
0x180b   :  { %v1420_v16 = vsel %vm1335_vm12, %v1400_v11, 0.0  ;;  %v1409_v17 = vsel %vm1408_vm9, %v3012_v52, %v1405_v6  ;;  %vm1632_vm9 = vcmp.eq.s32.totalorder %v3425_v32, 2 }
0x180c   :  { %v1427_v18 = vperm.slane %v1420_v16, 1  ;;  %v1430_v62 = vmul.f32 %v3492_v26, %v1426_v14  ;;  %v1414_v20 = vsel %vm1411_vm10, %v1413_v15, %v1409_v17 }
0x180d   :  { %v1415_v21 = vmul.f32 %v1414_v20, %v3477_v5 }
0x180e   :  { %v1431_v19 = vmul.f32 %v3492_v26, %v1427_v18  ;;  %v3508_v51 = vadd.f32 %v1430_v62, %v3456_v27 }
0x180f   :  { %v1421_v23 = vsel %vm1335_vm12, %v1415_v21, 0.0 }
0x1810   :  { %v3512_v22 = vadd.f32 %v1431_v19, %v3458_v25  ;;  %1444 = vperm.xlu2 %2897, %v3508_v51   ;;  %v1428_v24 = vperm.slane %v1421_v23, 1 }
0x1812   :  { %1449 = vperm.xlu0 %2898, %v3512_v22   ;;  %v1432_v45 = vmul.f32 %v3492_v26, %v1428_v24 }
0x1814   :  { %v3520_v29 = vadd.f32 %v1432_v45, %v3451_v63 }
0x1816   :  { %1454 = vperm.xlu1 %2896, %v3520_v29  }
0x1868   :  { %v1440_v27 = vpop.permute.xlu1 %1439 }
0x1869   :  { %v1457_v5 = vmul.f32 %v1440_v27, %v3496_v31 }
0x186a   :  { %v1445_v30 = vpop.permute.xlu2 %1444 }
0x186b   :  { %v1461_v25 = vsel %vm53_vm1, %v1457_v5, 0.0  ;;  %v1458_v35 = vmul.f32 %v1445_v30, %v3508_v51 }
0x186c   :  { %v1462_v34 = vrot.slane %v1461_v25, 4 }
0x186d   :  { %v1468_v57 = vsel %vm53_vm1, %v1458_v35, 0.0 }
0x186e   :  { %v1463_v8 = vadd.f32 %v1462_v34, %v1461_v25  ;;  %v1469_v38 = vrot.slane %v1468_v57, 4 }
0x1870   :  { %v1464_v39 = vrot.slane %v1463_v8, 2  ;;  %v1470_v26 = vadd.f32 %v1469_v38, %v1468_v57 }
0x1872   :  { %v1465_v13 = vadd.f32 %v1464_v39, %v1463_v8  ;;  %v1471_v63 = vrot.slane %v1470_v26, 2 }
0x1874   :  { %v1466_v42 = vrot.slane %v1465_v13, 1  ;;  %v1472_v44 = vadd.f32 %v1471_v63, %v1470_v26 }
0x1876   :  { %v1467_v46 = vadd.f32 %v1466_v42, %v1465_v13  ;;  %v1473_v47 = vrot.slane %v1472_v44, 1 }
0x1878   :  { %v3528_v28 = vsub.f32 %v3432_v36, %v1467_v46  ;;  %v1474_v55 = vadd.f32 %v1473_v47, %v1472_v44 }
0x187a   :  { %v1493_v49 = vmax.f32 %v3528_v28, 1e-12  ;;  %v3532_v50 = vsub.f32 %v3434_v37, %v1474_v55 }
0x187c   :  { %3013 = vrsqrt.f32 %v1493_v49  ;;  %v1494_v52 = vmax.f32 %v3532_v50, 1e-12  ;;  %vm1504_vm11 = vcmp.eq.f32.partialorder %v1493_v49, inf  ;;  %v1507_v19 = vand.u32 2147483648, %v1493_v49 }
0x187d   :  { %vm1506_vm12 = vcmp.eq.f32.partialorder %v1493_v49, 0.0 }
0x187e   :  { %3015 = vrsqrt.f32 %v1494_v52  ;;  %vm1516_vm13 = vcmp.eq.f32.partialorder %v1494_v52, inf  ;;  %v1519_v5 = vand.u32 2147483648, %v1494_v52  ;;  %vm1518_vm14 = vcmp.eq.f32.partialorder %v1494_v52, 0.0 }
0x1882   :  { %v3014_v53 = vpop.eup %3013 }
0x1883   :  { %v1498_v54 = vmul.f32 %v3014_v53, %v1493_v49 }
0x1884   :  { %v1450_v56 = vpop.permute.xlu0 %1449  ;;  %v3016_v58 = vpop.eup %3015 }
0x1885   :  { %v1459_v59 = vmul.f32 %v1450_v56, %v3512_v22  ;;  %v1499_v60 = vmul.f32 %v3014_v53, %v1498_v54  ;;  %v1510_v61 = vmul.f32 %v3016_v58, %v1494_v52 }
0x1887   :  { %v1475_v0 = vsel %vm53_vm1, %v1459_v59, 0.0  ;;  %v1500_v1 = vmul.f32 0.5, %v1499_v60  ;;  %v1511_v3 = vmul.f32 %v3016_v58, %v1510_v61 }
0x1888   :  { %v1476_v2 = vrot.slane %v1475_v0, 4  ;;  %v1455_v10 = vpop.permute.xlu1 %1454 }
0x1889   :  { %v1501_v4 = vsub.f32 1.5, %v1500_v1  ;;  %v1512_v11 = vmul.f32 0.5, %v1511_v3  ;;  %v1460_v12 = vmul.f32 %v1455_v10, %v3520_v29  ;;  %v3153_v10 = vmov 3  }
0x188a   :  { %v1477_v9 = vadd.f32 %v1476_v2, %v1475_v0 }
0x188b   :  { %v1502_v6 = vmul.f32 %v3014_v53, %v1501_v4  ;;  %v1513_v16 = vsub.f32 1.5, %v1512_v11  ;;  %v1482_v15 = vsel %vm53_vm1, %v1460_v12, 0.0 }
0x188c   :  { %v1478_v14 = vrot.slane %v1477_v9, 2  ;;  %v1483_v62 = vrot.slane %v1482_v15, 4 }
0x188d   :  { %v1503_v18 = vmul.f32 %v1502_v6, %v1493_v49  ;;  %v1514_v20 = vmul.f32 %v3016_v58, %v1513_v16 }
0x188e   :  { %v1479_v17 = vadd.f32 %v1478_v14, %v1477_v9  ;;  %v1484_v24 = vadd.f32 %v1483_v62, %v1482_v15 }
0x188f   :  { %v1505_v21 = vsel %vm1504_vm11, %v1493_v49, %v1503_v18  ;;  %v1515_v27 = vmul.f32 %v1514_v20, %v1494_v52 }
0x1890   :  { %v1480_v23 = vrot.slane %v1479_v17, 1  ;;  %v1508_v45 = vsel %vm1506_vm12, %v1507_v19, %v1505_v21  ;;  %v1485_v30 = vrot.slane %v1484_v24, 2 }
0x1891   :  { %1548 = vperm.xlu2 %2897, %v1508_v45   ;;  %v1517_v34 = vsel %vm1516_vm13, %v1494_v52, %v1515_v27 }
0x1892   :  { %v1481_v25 = vadd.f32 %v1480_v23, %v1479_v17  ;;  %v1520_v35 = vsel %vm1518_vm14, %v1519_v5, %v1517_v34  ;;  %v1486_v57 = vadd.f32 %v1485_v30, %v1484_v24  ;;  %v3553_v24 = vsel %vm1632_vm9, 1.0, %v3148_v48 }
0x1893   :  { %1553 = vperm.xlu1 %2896, %v1520_v35  }
0x1894   :  { %v3540_v8 = vsub.f32 %v3437_v41, %v1481_v25  ;;  %v1487_v39 = vrot.slane %v1486_v57, 1 }
0x1896   :  { %v1495_v38 = vmax.f32 %v3540_v8, 1e-12  ;;  %v1488_v26 = vadd.f32 %v1487_v39, %v1486_v57 }
0x1898   :  { %3017 = vrsqrt.f32 %v1495_v38  ;;  %v3544_v13 = vsub.f32 %v3440_v43, %v1488_v26  ;;  %vm1528_vm15 = vcmp.eq.f32.partialorder %v1495_v38, inf  ;;  %v1531_v59 = vand.u32 2147483648, %v1495_v38 }
0x1899   :  { %vm1530_vm0 = vcmp.eq.f32.partialorder %v1495_v38, 0.0 }
0x189a   :  { %v1496_v63 = vmax.f32 %v3544_v13, 1e-12 }
0x189b   :  { %2899 = vset.pattern.permute.xlu1 %v3153_v10 }
0x189c   :  { %3019 = vrsqrt.f32 %v1496_v63  ;;  %vm1540_vm2 = vcmp.eq.f32.partialorder %v1496_v63, inf  ;;  %v1543_v3 = vand.u32 2147483648, %v1496_v63  ;;  %vm1542_vm3 = vcmp.eq.f32.partialorder %v1496_v63, 0.0 }
0x189e   :  { %v3018_v42 = vpop.eup %3017 }
0x189f   :  { %v1522_v44 = vmul.f32 %v3018_v42, %v1495_v38 }
0x18a1   :  { %v1523_v46 = vmul.f32 %v3018_v42, %v1522_v44 }
0x18a2   :  { %v3020_v55 = vpop.eup %3019 }
0x18a3   :  { %v1524_v47 = vmul.f32 0.5, %v1523_v46  ;;  %v1534_v52 = vmul.f32 %v3020_v55, %v1496_v63 }
0x18a5   :  { %v1525_v49 = vsub.f32 1.5, %v1524_v47  ;;  %v1535_v54 = vmul.f32 %v3020_v55, %v1534_v52 }
0x18a7   :  { %v1526_v53 = vmul.f32 %v3018_v42, %v1525_v49  ;;  %v1536_v58 = vmul.f32 0.5, %v1535_v54 }
0x18a9   :  { %v1527_v56 = vmul.f32 %v1526_v53, %v1495_v38  ;;  %v1537_v61 = vsub.f32 1.5, %v1536_v58 }
0x18ab   :  { %v1529_v60 = vsel %vm1528_vm15, %v1495_v38, %v1527_v56  ;;  %v1538_v1 = vmul.f32 %v3020_v55, %v1537_v61 }
0x18ac   :  { %v1532_v0 = vsel %vm1530_vm0, %v1531_v59, %v1529_v60 }
0x18ad   :  { %1558 = vperm.xlu2 %2897, %v1532_v0   ;;  %v1539_v2 = vmul.f32 %v1538_v1, %v1496_v63 }
0x18af   :  { %v1541_v4 = vsel %vm1540_vm2, %v1496_v63, %v1539_v2 }
0x18b0   :  { %v1544_v9 = vsel %vm1542_vm3, %v1543_v3, %v1541_v4 }
0x18b1   :  { %1563 = vperm.xlu0 %2898, %v1544_v9  }
0x18b5   :  { %2900 = vset.pattern.permute.xlu2 %v3153_v10 }
0x18b9   :  { %2901 = vset.pattern.permute.xlu0 %v3153_v10 }
0x18eb   :  { %v1549_v11 = vpop.permute.xlu2 %1548 }
0x18ec   :  { %3021 = vrcp.f32 %v1549_v11  ;;  %v1577_v16 = vand.u32 2147483648, %v1549_v11  ;;  %v1575_v18 = vand.u32 2147483647, %v1549_v11  ;;  %vm1571_vm5 = vweird.f32 %v1549_v11 }
0x18ee   :  { %v1578_v62 = vor.u32 1.1754944e-38, %v1577_v16  ;;  %vm1576_vm6 = vcmp.eq.f32.partialorder %v1575_v18, 8.507059e+37 }
0x18f2   :  { %v3022_v12 = vpop.eup %3021 }
0x18f3   :  { %v1567_v6 = vmul.f32 %v3022_v12, %v1549_v11  ;;  %vm1572_vm4 = vweird.f32 %v3022_v12 }
0x18f4   :  { %vm1573_vm7 = vmor %vm1571_vm5, %vm1572_vm4 }
0x18f5   :  { %v1568_v14 = vsub.f32 1.0, %v1567_v6 }
0x18f7   :  { %v1569_v15 = vmul.f32 %v3022_v12, %v1568_v14 }
0x18f9   :  { %v1570_v17 = vadd.f32 %v3022_v12, %v1569_v15 }
0x18fb   :  { %v1574_v19 = vsel %vm1573_vm7, %v3022_v12, %v1570_v17 }
0x18fc   :  { %v1579_v20 = vsel %vm1576_vm6, %v1578_v62, %v1574_v19 }
0x18fd   :  { %v1580_v21 = vmul.f32 %v1579_v20, %v3528_v28 }
0x18ff   :  { %v1628_v23 = vsel %vm1545_vm8, %v1580_v21, 0.0 }
0x1900   :  { %v1635_v45 = vperm.slane %v1628_v23, 2 }
0x1902   :  { %v1639_v27 = vmul.f32 %v3553_v24, %v1635_v45 }
0x1904   :  { %v3557_v5 = vadd.f32 %v1639_v27, %v3496_v31 }
0x1905   :  { %v1554_v25 = vpop.permute.xlu1 %1553 }
0x1906   :  { %1649 = vperm.xlu1 %2899, %v3557_v5   ;;  %3023 = vrcp.f32 %v1554_v25  ;;  %v1592_v39 = vand.u32 2147483648, %v1554_v25  ;;  %v1590_v42 = vand.u32 2147483647, %v1554_v25  ;;  %vm1586_vm12 = vweird.f32 %v1554_v25 }
0x1907   :  { %v1559_v30 = vpop.permute.xlu2 %1558 }
0x1908   :  { %3025 = vrcp.f32 %v1559_v30  ;;  %v1607_v44 = vand.u32 2147483648, %v1559_v30  ;;  %v1605_v31 = vand.u32 2147483647, %v1559_v30  ;;  %v1593_v55 = vor.u32 1.1754944e-38, %v1592_v39 }
0x1909   :  { %vm1601_vm14 = vweird.f32 %v1559_v30  ;;  %vm1591_vm15 = vcmp.eq.f32.partialorder %v1590_v42, 8.507059e+37 }
0x190a   :  { %v1608_v53 = vor.u32 1.1754944e-38, %v1607_v44  ;;  %vm1606_vm2 = vcmp.eq.f32.partialorder %v1605_v31, 8.507059e+37 }
0x190c   :  { %v3024_v34 = vpop.eup %3023 }
0x190d   :  { %v1582_v35 = vmul.f32 %v3024_v34, %v1554_v25  ;;  %vm1587_vm10 = vweird.f32 %v3024_v34 }
0x190e   :  { %v3026_v28 = vpop.eup %3025  ;;  %vm1588_vm13 = vmor %vm1586_vm12, %vm1587_vm10 }
0x190f   :  { %v1597_v57 = vmul.f32 %v3026_v28, %v1559_v30  ;;  %v1583_v38 = vsub.f32 1.0, %v1582_v35  ;;  %vm1602_vm11 = vweird.f32 %v3026_v28 }
0x1910   :  { %vm1603_vm0 = vmor %vm1601_vm14, %vm1602_vm11 }
0x1911   :  { %v1598_v26 = vsub.f32 1.0, %v1597_v57  ;;  %v1584_v63 = vmul.f32 %v3024_v34, %v1583_v38 }
0x1913   :  { %v1599_v46 = vmul.f32 %v3026_v28, %v1598_v26  ;;  %v1585_v47 = vadd.f32 %v3024_v34, %v1584_v63 }
0x1915   :  { %v1600_v49 = vadd.f32 %v3026_v28, %v1599_v46  ;;  %v1589_v52 = vsel %vm1588_vm13, %v3024_v34, %v1585_v47 }
0x1916   :  { %v1594_v56 = vsel %vm1591_vm15, %v1593_v55, %v1589_v52 }
0x1917   :  { %v1604_v54 = vsel %vm1603_vm0, %v3026_v28, %v1600_v49  ;;  %v1595_v58 = vmul.f32 %v1594_v56, %v3532_v50 }
0x1918   :  { %v1609_v59 = vsel %vm1606_vm2, %v1608_v53, %v1604_v54 }
0x1919   :  { %v1610_v60 = vmul.f32 %v1609_v59, %v3540_v8  ;;  %v1629_v61 = vsel %vm1545_vm8, %v1595_v58, 0.0 }
0x191a   :  { %v1636_v0 = vperm.slane %v1629_v61, 2 }
0x191b   :  { %v1630_v1 = vsel %vm1545_vm8, %v1610_v60, 0.0 }
0x191c   :  { %v1637_v2 = vperm.slane %v1630_v1, 2  ;;  %v1640_v3 = vmul.f32 %v3553_v24, %v1636_v0 }
0x191e   :  { %v1641_v4 = vmul.f32 %v3553_v24, %v1637_v2  ;;  %v3569_v9 = vadd.f32 %v1640_v3, %v3508_v51 }
0x1920   :  { %v3572_v50 = vadd.f32 %v1641_v4, %v3512_v22  ;;  %1654 = vperm.xlu2 %2900, %v3569_v9  }
0x1922   :  { %1659 = vperm.xlu0 %2901, %v3572_v50  }
0x1923   :  { %v1564_v8 = vpop.permute.xlu0 %1563 }
0x1924   :  { %3027 = vrcp.f32 %v1564_v8  ;;  %v1622_v6 = vand.u32 2147483648, %v1564_v8  ;;  %v1620_v16 = vand.u32 2147483647, %v1564_v8  ;;  %vm1616_vm4 = vweird.f32 %v1564_v8 }
0x1926   :  { %v1623_v51 = vor.u32 1.1754944e-38, %v1622_v6  ;;  %vm1621_vm7 = vcmp.eq.f32.partialorder %v1620_v16, 8.507059e+37 }
0x192a   :  { %v3028_v10 = vpop.eup %3027 }
0x192b   :  { %v1612_v11 = vmul.f32 %v3028_v10, %v1564_v8  ;;  %vm1617_vm3 = vweird.f32 %v3028_v10 }
0x192c   :  { %vm1618_vm5 = vmor %vm1616_vm4, %vm1617_vm3  ;;  %vm1755_vm4 = vcmp.ge.s32.totalorder %v3427_v33, 3 }
0x192d   :  { %v1613_v12 = vsub.f32 1.0, %v1612_v11 }
0x192f   :  { %v1614_v14 = vmul.f32 %v3028_v10, %v1613_v12 }
0x1931   :  { %v1615_v15 = vadd.f32 %v3028_v10, %v1614_v14 }
0x1933   :  { %v1619_v18 = vsel %vm1618_vm5, %v3028_v10, %v1615_v15  ;;  %vm1842_vm5 = vcmp.eq.s32.totalorder %v3425_v32, 3 }
0x1934   :  { %v1624_v22 = vsel %vm1621_vm7, %v1623_v51, %v1619_v18 }
0x1935   :  { %v1625_v17 = vmul.f32 %v1624_v22, %v3544_v13 }
0x1937   :  { %v1631_v62 = vsel %vm1545_vm8, %v1625_v17, 0.0 }
0x1938   :  { %v1638_v19 = vperm.slane %v1631_v62, 2 }
0x193a   :  { %v1642_v20 = vmul.f32 %v3553_v24, %v1638_v19 }
0x193c   :  { %v3581_v21 = vadd.f32 %v1642_v20, %v3520_v29 }
0x193e   :  { %1664 = vperm.xlu1 %2899, %v3581_v21  }
0x1978   :  { %v1650_v23 = vpop.permute.xlu1 %1649 }
0x1979   :  { %v1667_v45 = vmul.f32 %v1650_v23, %v3557_v5 }
0x197a   :  { %v1655_v25 = vpop.permute.xlu2 %1654 }
0x197b   :  { %v1671_v27 = vsel %vm53_vm1, %v1667_v45, 0.0  ;;  %v1668_v13 = vmul.f32 %v1655_v25, %v3569_v9 }
0x197c   :  { %v1672_v30 = vrot.slane %v1671_v27, 4 }
0x197d   :  { %v1678_v28 = vsel %vm53_vm1, %v1668_v13, 0.0 }
0x197e   :  { %v1673_v34 = vadd.f32 %v1672_v30, %v1671_v27  ;;  %v1679_v35 = vrot.slane %v1678_v28, 4 }
0x1980   :  { %v1674_v57 = vrot.slane %v1673_v34, 2  ;;  %v1680_v24 = vadd.f32 %v1679_v35, %v1678_v28 }
0x1982   :  { %v1675_v38 = vadd.f32 %v1674_v57, %v1673_v34  ;;  %v1681_v29 = vrot.slane %v1680_v24, 2 }
0x1984   :  { %v1676_v39 = vrot.slane %v1675_v38, 1  ;;  %v1682_v26 = vadd.f32 %v1681_v29, %v1680_v24 }
0x1986   :  { %v1677_v63 = vadd.f32 %v1676_v39, %v1675_v38  ;;  %v1683_v42 = vrot.slane %v1682_v26, 1 }
0x1988   :  { %v3589_v44 = vsub.f32 %v3432_v36, %v1677_v63  ;;  %v1684_v46 = vadd.f32 %v1683_v42, %v1682_v26 }
0x198a   :  { %v1703_v31 = vmax.f32 %v3589_v44, 1e-12  ;;  %v3593_v47 = vsub.f32 %v3434_v37, %v1684_v46 }
0x198c   :  { %3029 = vrsqrt.f32 %v1703_v31  ;;  %v1704_v55 = vmax.f32 %v3593_v47, 1e-12  ;;  %vm1714_vm6 = vcmp.eq.f32.partialorder %v1703_v31, inf  ;;  %v1717_v14 = vand.u32 2147483648, %v1703_v31 }
0x198d   :  { %vm1716_vm8 = vcmp.eq.f32.partialorder %v1703_v31, 0.0 }
0x198e   :  { %3031 = vrsqrt.f32 %v1704_v55  ;;  %vm1726_vm9 = vcmp.eq.f32.partialorder %v1704_v55, inf  ;;  %v1729_v17 = vand.u32 2147483648, %v1704_v55  ;;  %vm1728_vm10 = vcmp.eq.f32.partialorder %v1704_v55, 0.0 }
0x1992   :  { %v3030_v49 = vpop.eup %3029 }
0x1993   :  { %v1708_v52 = vmul.f32 %v3030_v49, %v1703_v31 }
0x1994   :  { %v1660_v53 = vpop.permute.xlu0 %1659  ;;  %v3032_v54 = vpop.eup %3031 }
0x1995   :  { %v1669_v56 = vmul.f32 %v1660_v53, %v3572_v50  ;;  %v1709_v58 = vmul.f32 %v3030_v49, %v1708_v52  ;;  %v1720_v59 = vmul.f32 %v3032_v54, %v1704_v55 }
0x1997   :  { %v1685_v60 = vsel %vm53_vm1, %v1669_v56, 0.0  ;;  %v1710_v61 = vmul.f32 0.5, %v1709_v58  ;;  %v1721_v1 = vmul.f32 %v3032_v54, %v1720_v59 }
0x1998   :  { %v1686_v0 = vrot.slane %v1685_v60, 4 }
0x1999   :  { %v1711_v2 = vsub.f32 1.5, %v1710_v61  ;;  %v1722_v4 = vmul.f32 0.5, %v1721_v1 }
0x199a   :  { %v1687_v3 = vadd.f32 %v1686_v0, %v1685_v60 }
0x199b   :  { %v1712_v8 = vmul.f32 %v3030_v49, %v1711_v2  ;;  %v1723_v11 = vsub.f32 1.5, %v1722_v4  ;;  %v3154_v4 = vmov 4  }
0x199c   :  { %v1688_v10 = vrot.slane %v1687_v3, 2 }
0x199d   :  { %v1713_v12 = vmul.f32 %v1712_v8, %v1703_v31  ;;  %v1724_v16 = vmul.f32 %v3032_v54, %v1723_v11 }
0x199e   :  { %v1689_v6 = vadd.f32 %v1688_v10, %v1687_v3 }
0x199f   :  { %v1715_v15 = vsel %vm1714_vm6, %v1703_v31, %v1713_v12  ;;  %v1725_v22 = vmul.f32 %v1724_v16, %v1704_v55 }
0x19a0   :  { %v1690_v51 = vrot.slane %v1689_v6, 1  ;;  %v1718_v18 = vsel %vm1716_vm8, %v1717_v14, %v1715_v15 }
0x19a1   :  { %1758 = vperm.xlu2 %2900, %v1718_v18   ;;  %v1727_v19 = vsel %vm1726_vm9, %v1704_v55, %v1725_v22 }
0x19a2   :  { %v1691_v62 = vadd.f32 %v1690_v51, %v1689_v6  ;;  %v1730_v20 = vsel %vm1728_vm10, %v1729_v17, %v1727_v19  ;;  %v3614_v19 = vsel %vm1842_vm5, 1.0, %v3148_v48 }
0x19a3   :  { %1763 = vperm.xlu1 %2899, %v1730_v20  }
0x19a4   :  { %v3599_v23 = vsub.f32 %v3437_v41, %v1691_v62 }
0x19a6   :  { %v1705_v45 = vmax.f32 %v3599_v23, 1e-12 }
0x19a8   :  { %3033 = vrsqrt.f32 %v1705_v45  ;;  %vm1738_vm11 = vcmp.eq.f32.partialorder %v1705_v45, inf  ;;  %v1741_v63 = vand.u32 2147483648, %v1705_v45  ;;  %vm1740_vm12 = vcmp.eq.f32.partialorder %v1705_v45, 0.0 }
0x19ab   :  { %2902 = vset.pattern.permute.xlu1 %v3154_v4 }
0x19ae   :  { %v3034_v27 = vpop.eup %3033 }
0x19af   :  { %v1732_v25 = vmul.f32 %v3034_v27, %v1705_v45 }
0x19b0   :  { %v1665_v13 = vpop.permute.xlu1 %1664 }
0x19b1   :  { %v1733_v30 = vmul.f32 %v3034_v27, %v1732_v25  ;;  %v1670_v34 = vmul.f32 %v1665_v13, %v3581_v21 }
0x19b3   :  { %v1734_v28 = vmul.f32 0.5, %v1733_v30  ;;  %v1692_v35 = vsel %vm53_vm1, %v1670_v34, 0.0 }
0x19b4   :  { %v1693_v24 = vrot.slane %v1692_v35, 4 }
0x19b5   :  { %v1735_v57 = vsub.f32 1.5, %v1734_v28 }
0x19b6   :  { %v1694_v29 = vadd.f32 %v1693_v24, %v1692_v35 }
0x19b7   :  { %v1736_v38 = vmul.f32 %v3034_v27, %v1735_v57 }
0x19b8   :  { %v1695_v26 = vrot.slane %v1694_v29, 2 }
0x19b9   :  { %v1737_v39 = vmul.f32 %v1736_v38, %v1705_v45 }
0x19ba   :  { %v1696_v46 = vadd.f32 %v1695_v26, %v1694_v29 }
0x19bb   :  { %v1739_v42 = vsel %vm1738_vm11, %v1705_v45, %v1737_v39 }
0x19bc   :  { %v1742_v31 = vsel %vm1740_vm12, %v1741_v63, %v1739_v42  ;;  %v1697_v55 = vrot.slane %v1696_v46, 1 }
0x19bd   :  { %1768 = vperm.xlu2 %2900, %v1742_v31  }
0x19be   :  { %v1698_v49 = vadd.f32 %v1697_v55, %v1696_v46 }
0x19c0   :  { %v3605_v52 = vsub.f32 %v3440_v43, %v1698_v49 }
0x19c2   :  { %v1706_v53 = vmax.f32 %v3605_v52, 1e-12 }
0x19c4   :  { %3035 = vrsqrt.f32 %v1706_v53  ;;  %vm1750_vm13 = vcmp.eq.f32.partialorder %v1706_v53, inf  ;;  %v1753_v1 = vand.u32 2147483648, %v1706_v53  ;;  %vm1752_vm14 = vcmp.eq.f32.partialorder %v1706_v53, 0.0 }
0x19c5   :  { %2903 = vset.pattern.permute.xlu2 %v3154_v4 }
0x19ca   :  { %v3036_v54 = vpop.eup %3035 }
0x19cb   :  { %v1744_v56 = vmul.f32 %v3036_v54, %v1706_v53 }
0x19cd   :  { %v1745_v58 = vmul.f32 %v3036_v54, %v1744_v56 }
0x19cf   :  { %v1746_v59 = vmul.f32 0.5, %v1745_v58 }
0x19d1   :  { %v1747_v60 = vsub.f32 1.5, %v1746_v59 }
0x19d3   :  { %v1748_v61 = vmul.f32 %v3036_v54, %v1747_v60 }
0x19d5   :  { %v1749_v0 = vmul.f32 %v1748_v61, %v1706_v53 }
0x19d7   :  { %v1751_v2 = vsel %vm1750_vm13, %v1706_v53, %v1749_v0 }
0x19d8   :  { %v1754_v3 = vsel %vm1752_vm14, %v1753_v1, %v1751_v2 }
0x19d9   :  { %1773 = vperm.xlu0 %2901, %v1754_v3  }
0x19e1   :  { %2904 = vset.pattern.permute.xlu0 %v3154_v4 }
0x19fb   :  { %v1759_v8 = vpop.permute.xlu2 %1758 }
0x19fc   :  { %3037 = vrcp.f32 %v1759_v8  ;;  %v1787_v6 = vand.u32 2147483648, %v1759_v8  ;;  %v1785_v16 = vand.u32 2147483647, %v1759_v8  ;;  %vm1781_vm0 = vweird.f32 %v1759_v8 }
0x19fe   :  { %v1788_v51 = vor.u32 1.1754944e-38, %v1787_v6  ;;  %vm1786_vm3 = vcmp.eq.f32.partialorder %v1785_v16, 8.507059e+37 }
0x1a02   :  { %v3038_v10 = vpop.eup %3037 }
0x1a03   :  { %v1777_v11 = vmul.f32 %v3038_v10, %v1759_v8  ;;  %vm1782_vm15 = vweird.f32 %v3038_v10 }
0x1a04   :  { %vm1783_vm2 = vmor %vm1781_vm0, %vm1782_vm15 }
0x1a05   :  { %v1778_v12 = vsub.f32 1.0, %v1777_v11 }
0x1a07   :  { %v1779_v14 = vmul.f32 %v3038_v10, %v1778_v12 }
0x1a09   :  { %v1780_v15 = vadd.f32 %v3038_v10, %v1779_v14 }
0x1a0b   :  { %v1784_v18 = vsel %vm1783_vm2, %v3038_v10, %v1780_v15 }
0x1a0c   :  { %v1789_v22 = vsel %vm1786_vm3, %v1788_v51, %v1784_v18 }
0x1a0d   :  { %v1790_v17 = vmul.f32 %v1789_v22, %v3589_v44 }
0x1a0f   :  { %v1838_v62 = vsel %vm1755_vm4, %v1790_v17, 0.0 }
0x1a10   :  { %v1845_v20 = vperm.slane %v1838_v62, 3 }
0x1a12   :  { %v1849_v45 = vmul.f32 %v3614_v19, %v1845_v20 }
0x1a14   :  { %v3618_v27 = vadd.f32 %v1849_v45, %v3557_v5 }
0x1a15   :  { %v1764_v25 = vpop.permute.xlu1 %1763 }
0x1a16   :  { %1859 = vperm.xlu1 %2902, %v3618_v27   ;;  %3039 = vrcp.f32 %v1764_v25  ;;  %v1802_v57 = vand.u32 2147483648, %v1764_v25  ;;  %v1800_v29 = vand.u32 2147483647, %v1764_v25  ;;  %vm1796_vm8 = vweird.f32 %v1764_v25 }
0x1a17   :  { %v1769_v30 = vpop.permute.xlu2 %1768 }
0x1a18   :  { %3041 = vrcp.f32 %v1769_v30  ;;  %v1817_v39 = vand.u32 2147483648, %v1769_v30  ;;  %v1815_v5 = vand.u32 2147483647, %v1769_v30  ;;  %v1803_v42 = vor.u32 1.1754944e-38, %v1802_v57 }
0x1a19   :  { %vm1811_vm10 = vweird.f32 %v1769_v30  ;;  %vm1801_vm11 = vcmp.eq.f32.partialorder %v1800_v29, 8.507059e+37 }
0x1a1a   :  { %v1818_v55 = vor.u32 1.1754944e-38, %v1817_v39  ;;  %vm1816_vm13 = vcmp.eq.f32.partialorder %v1815_v5, 8.507059e+37 }
0x1a1c   :  { %v3040_v13 = vpop.eup %3039 }
0x1a1d   :  { %v1792_v34 = vmul.f32 %v3040_v13, %v1764_v25  ;;  %vm1797_vm7 = vweird.f32 %v3040_v13 }
0x1a1e   :  { %v3042_v44 = vpop.eup %3041  ;;  %vm1798_vm9 = vmor %vm1796_vm8, %vm1797_vm7 }
0x1a1f   :  { %v1807_v28 = vmul.f32 %v3042_v44, %v1769_v30  ;;  %v1793_v35 = vsub.f32 1.0, %v1792_v34  ;;  %vm1812_vm6 = vweird.f32 %v3042_v44 }
0x1a20   :  { %vm1813_vm12 = vmor %vm1811_vm10, %vm1812_vm6 }
0x1a21   :  { %v1808_v24 = vsub.f32 1.0, %v1807_v28  ;;  %v1794_v38 = vmul.f32 %v3040_v13, %v1793_v35 }
0x1a23   :  { %v1809_v26 = vmul.f32 %v3042_v44, %v1808_v24  ;;  %v1795_v63 = vadd.f32 %v3040_v13, %v1794_v38 }
0x1a25   :  { %v1810_v46 = vadd.f32 %v3042_v44, %v1809_v26  ;;  %v1799_v31 = vsel %vm1798_vm9, %v3040_v13, %v1795_v63 }
0x1a26   :  { %v1804_v53 = vsel %vm1801_vm11, %v1803_v42, %v1799_v31 }
0x1a27   :  { %v1814_v49 = vsel %vm1813_vm12, %v3042_v44, %v1810_v46  ;;  %v1805_v54 = vmul.f32 %v1804_v53, %v3593_v47 }
0x1a28   :  { %v1819_v56 = vsel %vm1816_vm13, %v1818_v55, %v1814_v49 }
0x1a29   :  { %v1820_v58 = vmul.f32 %v1819_v56, %v3599_v23  ;;  %v1839_v59 = vsel %vm1755_vm4, %v1805_v54, 0.0 }
0x1a2a   :  { %v1846_v60 = vperm.slane %v1839_v59, 3 }
0x1a2b   :  { %v1840_v61 = vsel %vm1755_vm4, %v1820_v58, 0.0 }
0x1a2c   :  { %v1847_v0 = vperm.slane %v1840_v61, 3  ;;  %v1850_v1 = vmul.f32 %v3614_v19, %v1846_v60 }
0x1a2e   :  { %v1851_v2 = vmul.f32 %v3614_v19, %v1847_v0  ;;  %v3630_v3 = vadd.f32 %v1850_v1, %v3569_v9 }
0x1a30   :  { %v3633_v47 = vadd.f32 %v1851_v2, %v3572_v50  ;;  %1864 = vperm.xlu2 %2903, %v3630_v3  }
0x1a32   :  { %1869 = vperm.xlu0 %2904, %v3633_v47  }
0x1a4b   :  { %v1774_v23 = vpop.permute.xlu0 %1773 }
0x1a4c   :  { %3043 = vrcp.f32 %v1774_v23  ;;  %v1832_v11 = vand.u32 2147483648, %v1774_v23  ;;  %v1830_v6 = vand.u32 2147483647, %v1774_v23  ;;  %vm1826_vm15 = vweird.f32 %v1774_v23 }
0x1a4e   :  { %v1833_v9 = vor.u32 1.1754944e-38, %v1832_v11  ;;  %vm1831_vm2 = vcmp.eq.f32.partialorder %v1830_v6, 8.507059e+37 }
0x1a52   :  { %v3044_v4 = vpop.eup %3043 }
0x1a53   :  { %v1822_v8 = vmul.f32 %v3044_v4, %v1774_v23  ;;  %vm1827_vm14 = vweird.f32 %v3044_v4 }
0x1a54   :  { %vm1828_vm0 = vmor %vm1826_vm15, %vm1827_vm14  ;;  %vm1965_vm15 = vcmp.ge.s32.totalorder %v3427_v33, 4 }
0x1a55   :  { %v1823_v10 = vsub.f32 1.0, %v1822_v8 }
0x1a57   :  { %v1824_v12 = vmul.f32 %v3044_v4, %v1823_v10 }
0x1a59   :  { %v1825_v14 = vadd.f32 %v3044_v4, %v1824_v12 }
0x1a5b   :  { %v1829_v16 = vsel %vm1828_vm0, %v3044_v4, %v1825_v14  ;;  %vm2052_vm0 = vcmp.eq.s32.totalorder %v3425_v32, 4 }
0x1a5c   :  { %v1834_v50 = vsel %vm1831_vm2, %v1833_v9, %v1829_v16 }
0x1a5d   :  { %v1835_v15 = vmul.f32 %v1834_v50, %v3605_v52 }
0x1a5f   :  { %v1841_v51 = vsel %vm1755_vm4, %v1835_v15, 0.0 }
0x1a60   :  { %v1848_v18 = vperm.slane %v1841_v51, 3 }
0x1a62   :  { %v1852_v22 = vmul.f32 %v3614_v19, %v1848_v18 }
0x1a64   :  { %v3642_v17 = vadd.f32 %v1852_v22, %v3581_v21 }
0x1a66   :  { %1874 = vperm.xlu1 %2902, %v3642_v17  }
0x1a88   :  { %v1860_v62 = vpop.permute.xlu1 %1859 }
0x1a89   :  { %v1877_v20 = vmul.f32 %v1860_v62, %v3618_v27 }
0x1a8a   :  { %v1865_v25 = vpop.permute.xlu2 %1864 }
0x1a8b   :  { %v1881_v45 = vsel %vm53_vm1, %v1877_v20, 0.0  ;;  %v1878_v52 = vmul.f32 %v1865_v25, %v3630_v3 }
0x1a8c   :  { %v1882_v30 = vrot.slane %v1881_v45, 4 }
0x1a8d   :  { %v1888_v44 = vsel %vm53_vm1, %v1878_v52, 0.0 }
0x1a8e   :  { %v1883_v13 = vadd.f32 %v1882_v30, %v1881_v45  ;;  %v1889_v34 = vrot.slane %v1888_v44, 4 }
0x1a90   :  { %v1884_v28 = vrot.slane %v1883_v13, 2  ;;  %v1890_v19 = vadd.f32 %v1889_v34, %v1888_v44 }
0x1a92   :  { %v1885_v35 = vadd.f32 %v1884_v28, %v1883_v13  ;;  %v1891_v21 = vrot.slane %v1890_v19, 2 }
0x1a94   :  { %v1886_v57 = vrot.slane %v1885_v35, 1  ;;  %v1892_v24 = vadd.f32 %v1891_v21, %v1890_v19 }
0x1a96   :  { %v1887_v38 = vadd.f32 %v1886_v57, %v1885_v35  ;;  %v1893_v29 = vrot.slane %v1892_v24, 1 }
0x1a98   :  { %v3650_v39 = vsub.f32 %v3432_v36, %v1887_v38  ;;  %v1894_v26 = vadd.f32 %v1893_v29, %v1892_v24 }
0x1a9a   :  { %v1913_v5 = vmax.f32 %v3650_v39, 1e-12  ;;  %v3654_v63 = vsub.f32 %v3434_v37, %v1894_v26 }
0x1a9c   :  { %3045 = vrsqrt.f32 %v1913_v5  ;;  %v1914_v42 = vmax.f32 %v3654_v63, 1e-12  ;;  %vm1924_vm3 = vcmp.eq.f32.partialorder %v1913_v5, inf  ;;  %v1927_v12 = vand.u32 2147483648, %v1913_v5 }
0x1a9d   :  { %vm1926_vm4 = vcmp.eq.f32.partialorder %v1913_v5, 0.0 }
0x1a9e   :  { %3047 = vrsqrt.f32 %v1914_v42  ;;  %vm1936_vm5 = vcmp.eq.f32.partialorder %v1914_v42, inf  ;;  %v1939_v15 = vand.u32 2147483648, %v1914_v42  ;;  %vm1938_vm7 = vcmp.eq.f32.partialorder %v1914_v42, 0.0 }
0x1aa2   :  { %v3046_v46 = vpop.eup %3045 }
0x1aa3   :  { %v1918_v31 = vmul.f32 %v3046_v46, %v1913_v5 }
0x1aa4   :  { %v1870_v55 = vpop.permute.xlu0 %1869  ;;  %v3048_v49 = vpop.eup %3047 }
0x1aa5   :  { %v1879_v53 = vmul.f32 %v1870_v55, %v3633_v47  ;;  %v1919_v54 = vmul.f32 %v3046_v46, %v1918_v31  ;;  %v1930_v56 = vmul.f32 %v3048_v49, %v1914_v42 }
0x1aa7   :  { %v1895_v58 = vsel %vm53_vm1, %v1879_v53, 0.0  ;;  %v1920_v59 = vmul.f32 0.5, %v1919_v54  ;;  %v1931_v61 = vmul.f32 %v3048_v49, %v1930_v56 }
0x1aa8   :  { %v1896_v60 = vrot.slane %v1895_v58, 4 }
0x1aa9   :  { %v1921_v0 = vsub.f32 1.5, %v1920_v59  ;;  %v1932_v2 = vmul.f32 0.5, %v1931_v61  ;;  %v3155_v59 = vmov 5  }
0x1aaa   :  { %v1897_v1 = vadd.f32 %v1896_v60, %v1895_v58 }
0x1aab   :  { %v1922_v23 = vmul.f32 %v3046_v46, %v1921_v0  ;;  %v1933_v8 = vsub.f32 1.5, %v1932_v2 }
0x1aac   :  { %v1898_v4 = vrot.slane %v1897_v1, 2 }
0x1aad   :  { %v1923_v10 = vmul.f32 %v1922_v23, %v1913_v5  ;;  %v1934_v6 = vmul.f32 %v3048_v49, %v1933_v8 }
0x1aae   :  { %v1899_v11 = vadd.f32 %v1898_v4, %v1897_v1 }
0x1aaf   :  { %v1925_v14 = vsel %vm1924_vm3, %v1913_v5, %v1923_v10  ;;  %v1935_v50 = vmul.f32 %v1934_v6, %v1914_v42 }
0x1ab0   :  { %v1900_v9 = vrot.slane %v1899_v11, 1  ;;  %v1928_v16 = vsel %vm1926_vm4, %v1927_v12, %v1925_v14 }
0x1ab1   :  { %1968 = vperm.xlu2 %2903, %v1928_v16   ;;  %v1937_v18 = vsel %vm1936_vm5, %v1914_v42, %v1935_v50 }
0x1ab2   :  { %v1901_v51 = vadd.f32 %v1900_v9, %v1899_v11  ;;  %v1940_v22 = vsel %vm1938_vm7, %v1939_v15, %v1937_v18  ;;  %v3675_v18 = vsel %vm2052_vm0, 1.0, %v3148_v48 }
0x1ab3   :  { %1973 = vperm.xlu1 %2902, %v1940_v22  }
0x1ab4   :  { %v3660_v62 = vsub.f32 %v3437_v41, %v1901_v51 }
0x1ab6   :  { %v1915_v20 = vmax.f32 %v3660_v62, 1e-12 }
0x1ab8   :  { %3049 = vrsqrt.f32 %v1915_v20  ;;  %vm1948_vm6 = vcmp.eq.f32.partialorder %v1915_v20, inf  ;;  %v1951_v28 = vand.u32 2147483648, %v1915_v20  ;;  %vm1950_vm8 = vcmp.eq.f32.partialorder %v1915_v20, 0.0 }
0x1abb   :  { %2905 = vset.pattern.permute.xlu1 %v3155_v59 }
0x1abe   :  { %v3050_v45 = vpop.eup %3049 }
0x1abf   :  { %v1942_v25 = vmul.f32 %v3050_v45, %v1915_v20 }
0x1ac1   :  { %v1943_v30 = vmul.f32 %v3050_v45, %v1942_v25 }
0x1ac3   :  { %v1944_v52 = vmul.f32 0.5, %v1943_v30 }
0x1ac5   :  { %v1945_v13 = vsub.f32 1.5, %v1944_v52 }
0x1ac7   :  { %v1946_v44 = vmul.f32 %v3050_v45, %v1945_v13 }
0x1ac9   :  { %v1947_v34 = vmul.f32 %v1946_v44, %v1915_v20 }
0x1acb   :  { %v1949_v19 = vsel %vm1948_vm6, %v1915_v20, %v1947_v34 }
0x1acc   :  { %v1952_v35 = vsel %vm1950_vm8, %v1951_v28, %v1949_v19 }
0x1acd   :  { %1978 = vperm.xlu2 %2903, %v1952_v35  }
0x1ad5   :  { %2906 = vset.pattern.permute.xlu2 %v3155_v59 }
0x1ad8   :  { %v1875_v21 = vpop.permute.xlu1 %1874 }
0x1ad9   :  { %v1880_v57 = vmul.f32 %v1875_v21, %v3642_v17 }
0x1adb   :  { %v1902_v24 = vsel %vm53_vm1, %v1880_v57, 0.0 }
0x1adc   :  { %v1903_v38 = vrot.slane %v1902_v24, 4 }
0x1ade   :  { %v1904_v29 = vadd.f32 %v1903_v38, %v1902_v24 }
0x1ae0   :  { %v1905_v26 = vrot.slane %v1904_v29, 2 }
0x1ae2   :  { %v1906_v5 = vadd.f32 %v1905_v26, %v1904_v29 }
0x1ae4   :  { %v1907_v42 = vrot.slane %v1906_v5, 1 }
0x1ae6   :  { %v1908_v46 = vadd.f32 %v1907_v42, %v1906_v5 }
0x1ae8   :  { %v3666_v31 = vsub.f32 %v3440_v43, %v1908_v46 }
0x1aea   :  { %v1916_v55 = vmax.f32 %v3666_v31, 1e-12 }
0x1aec   :  { %3051 = vrsqrt.f32 %v1916_v55  ;;  %vm1960_vm9 = vcmp.eq.f32.partialorder %v1916_v55, inf  ;;  %v1963_v0 = vand.u32 2147483648, %v1916_v55  ;;  %vm1962_vm10 = vcmp.eq.f32.partialorder %v1916_v55, 0.0 }
0x1af2   :  { %v3052_v49 = vpop.eup %3051 }
0x1af3   :  { %v1954_v53 = vmul.f32 %v3052_v49, %v1916_v55 }
0x1af5   :  { %v1955_v54 = vmul.f32 %v3052_v49, %v1954_v53 }
0x1af7   :  { %v1956_v56 = vmul.f32 0.5, %v1955_v54 }
0x1af9   :  { %v1957_v58 = vsub.f32 1.5, %v1956_v56 }
0x1afb   :  { %v1958_v60 = vmul.f32 %v3052_v49, %v1957_v58 }
0x1afd   :  { %v1959_v61 = vmul.f32 %v1958_v60, %v1916_v55 }
0x1aff   :  { %v1961_v1 = vsel %vm1960_vm9, %v1916_v55, %v1959_v61 }
0x1b00   :  { %v1964_v2 = vsel %vm1962_vm10, %v1963_v0, %v1961_v1 }
0x1b01   :  { %1983 = vperm.xlu0 %2904, %v1964_v2  }
0x1b09   :  { %2907 = vset.pattern.permute.xlu0 %v3155_v59 }
0x1b0b   :  { %v1969_v23 = vpop.permute.xlu2 %1968 }
0x1b0c   :  { %3053 = vrcp.f32 %v1969_v23  ;;  %v1997_v11 = vand.u32 2147483648, %v1969_v23  ;;  %v1995_v6 = vand.u32 2147483647, %v1969_v23  ;;  %vm1991_vm12 = vweird.f32 %v1969_v23 }
0x1b0e   :  { %v1998_v9 = vor.u32 1.1754944e-38, %v1997_v11  ;;  %vm1996_vm14 = vcmp.eq.f32.partialorder %v1995_v6, 8.507059e+37 }
0x1b12   :  { %v3054_v4 = vpop.eup %3053 }
0x1b13   :  { %v1987_v8 = vmul.f32 %v3054_v4, %v1969_v23  ;;  %vm1992_vm11 = vweird.f32 %v3054_v4 }
0x1b14   :  { %vm1993_vm13 = vmor %vm1991_vm12, %vm1992_vm11 }
0x1b15   :  { %v1988_v10 = vsub.f32 1.0, %v1987_v8 }
0x1b17   :  { %v1989_v12 = vmul.f32 %v3054_v4, %v1988_v10 }
0x1b19   :  { %v1990_v14 = vadd.f32 %v3054_v4, %v1989_v12 }
0x1b1b   :  { %v1994_v16 = vsel %vm1993_vm13, %v3054_v4, %v1990_v14 }
0x1b1c   :  { %v1999_v50 = vsel %vm1996_vm14, %v1998_v9, %v1994_v16 }
0x1b1d   :  { %v2000_v15 = vmul.f32 %v1999_v50, %v3650_v39 }
0x1b1f   :  { %v2048_v51 = vsel %vm1965_vm15, %v2000_v15, 0.0 }
0x1b20   :  { %v2055_v22 = vperm.slane %v2048_v51, 4 }
0x1b22   :  { %v2059_v20 = vmul.f32 %v3675_v18, %v2055_v22 }
0x1b24   :  { %v3679_v45 = vadd.f32 %v2059_v20, %v3618_v27 }
0x1b25   :  { %v1974_v25 = vpop.permute.xlu1 %1973 }
0x1b26   :  { %2069 = vperm.xlu1 %2905, %v3679_v45   ;;  %3055 = vrcp.f32 %v1974_v25  ;;  %v2012_v28 = vand.u32 2147483648, %v1974_v25  ;;  %v2010_v21 = vand.u32 2147483647, %v1974_v25  ;;  %vm2006_vm4 = vweird.f32 %v1974_v25 }
0x1b27   :  { %v1979_v30 = vpop.permute.xlu2 %1978 }
0x1b28   :  { %3057 = vrcp.f32 %v1979_v30  ;;  %v2027_v57 = vand.u32 2147483648, %v1979_v30  ;;  %v2025_v27 = vand.u32 2147483647, %v1979_v30  ;;  %v2013_v29 = vor.u32 1.1754944e-38, %v2012_v28 }
0x1b29   :  { %vm2021_vm7 = vweird.f32 %v1979_v30  ;;  %vm2011_vm6 = vcmp.eq.f32.partialorder %v2010_v21, 8.507059e+37 }
0x1b2a   :  { %v2028_v42 = vor.u32 1.1754944e-38, %v2027_v57  ;;  %vm2026_vm9 = vcmp.eq.f32.partialorder %v2025_v27, 8.507059e+37 }
0x1b2c   :  { %v3056_v52 = vpop.eup %3055 }
0x1b2d   :  { %v2002_v13 = vmul.f32 %v3056_v52, %v1974_v25  ;;  %vm2007_vm2 = vweird.f32 %v3056_v52 }
0x1b2e   :  { %v3058_v39 = vpop.eup %3057  ;;  %vm2008_vm5 = vmor %vm2006_vm4, %vm2007_vm2 }
0x1b2f   :  { %v2017_v44 = vmul.f32 %v3058_v39, %v1979_v30  ;;  %v2003_v34 = vsub.f32 1.0, %v2002_v13  ;;  %vm2022_vm3 = vweird.f32 %v3058_v39 }
0x1b30   :  { %vm2023_vm8 = vmor %vm2021_vm7, %vm2022_vm3 }
0x1b31   :  { %v2018_v19 = vsub.f32 1.0, %v2017_v44  ;;  %v2004_v35 = vmul.f32 %v3056_v52, %v2003_v34 }
0x1b33   :  { %v2019_v24 = vmul.f32 %v3058_v39, %v2018_v19  ;;  %v2005_v38 = vadd.f32 %v3056_v52, %v2004_v35 }
0x1b35   :  { %v2020_v26 = vadd.f32 %v3058_v39, %v2019_v24  ;;  %v2009_v5 = vsel %vm2008_vm5, %v3056_v52, %v2005_v38 }
0x1b36   :  { %v2014_v55 = vsel %vm2011_vm6, %v2013_v29, %v2009_v5 }
0x1b37   :  { %v2024_v46 = vsel %vm2023_vm8, %v3058_v39, %v2020_v26  ;;  %v2015_v49 = vmul.f32 %v2014_v55, %v3654_v63 }
0x1b38   :  { %v2029_v53 = vsel %vm2026_vm9, %v2028_v42, %v2024_v46 }
0x1b39   :  { %v2030_v54 = vmul.f32 %v2029_v53, %v3660_v62  ;;  %v2049_v56 = vsel %vm1965_vm15, %v2015_v49, 0.0 }
0x1b3a   :  { %v2056_v58 = vperm.slane %v2049_v56, 4 }
0x1b3b   :  { %v2050_v59 = vsel %vm1965_vm15, %v2030_v54, 0.0 }
0x1b3c   :  { %v2057_v60 = vperm.slane %v2050_v59, 4  ;;  %v2060_v61 = vmul.f32 %v3675_v18, %v2056_v58 }
0x1b3e   :  { %v2061_v0 = vmul.f32 %v3675_v18, %v2057_v60  ;;  %v3691_v1 = vadd.f32 %v2060_v61, %v3630_v3 }
0x1b40   :  { %v3694_v63 = vadd.f32 %v2061_v0, %v3633_v47  ;;  %2074 = vperm.xlu2 %2906, %v3691_v1  }
0x1b42   :  { %2079 = vperm.xlu0 %2907, %v3694_v63  }
0x1b73   :  { %v1984_v62 = vpop.permute.xlu0 %1983 }
0x1b74   :  { %3059 = vrcp.f32 %v1984_v62  ;;  %v2042_v8 = vand.u32 2147483648, %v1984_v62  ;;  %v2040_v11 = vand.u32 2147483647, %v1984_v62  ;;  %vm2036_vm11 = vweird.f32 %v1984_v62 }
0x1b76   :  { %v2043_v3 = vor.u32 1.1754944e-38, %v2042_v8  ;;  %vm2041_vm13 = vcmp.eq.f32.partialorder %v2040_v11, 8.507059e+37 }
0x1b7a   :  { %v3060_v2 = vpop.eup %3059 }
0x1b7b   :  { %v2032_v23 = vmul.f32 %v3060_v2, %v1984_v62  ;;  %vm2037_vm10 = vweird.f32 %v3060_v2 }
0x1b7c   :  { %vm2038_vm12 = vmor %vm2036_vm11, %vm2037_vm10  ;;  %vm2175_vm11 = vcmp.ge.s32.totalorder %v3427_v33, 5 }
0x1b7d   :  { %v2033_v4 = vsub.f32 1.0, %v2032_v23 }
0x1b7f   :  { %v2034_v10 = vmul.f32 %v3060_v2, %v2033_v4 }
0x1b81   :  { %v2035_v12 = vadd.f32 %v3060_v2, %v2034_v10 }
0x1b83   :  { %v2039_v6 = vsel %vm2038_vm12, %v3060_v2, %v2035_v12  ;;  %vm2262_vm12 = vcmp.eq.s32.totalorder %v3425_v32, 5 }
0x1b84   :  { %v2044_v47 = vsel %vm2041_vm13, %v2043_v3, %v2039_v6 }
0x1b85   :  { %v2045_v14 = vmul.f32 %v2044_v47, %v3666_v31 }
0x1b87   :  { %v2051_v9 = vsel %vm1965_vm15, %v2045_v14, 0.0 }
0x1b88   :  { %v2058_v16 = vperm.slane %v2051_v9, 4 }
0x1b8a   :  { %v2062_v50 = vmul.f32 %v3675_v18, %v2058_v16 }
0x1b8c   :  { %v3703_v15 = vadd.f32 %v2062_v50, %v3642_v17 }
0x1b8e   :  { %2084 = vperm.xlu1 %2905, %v3703_v15  }
0x1b98   :  { %v2070_v51 = vpop.permute.xlu1 %2069 }
0x1b99   :  { %v2087_v22 = vmul.f32 %v2070_v51, %v3679_v45 }
0x1b9a   :  { %v2075_v25 = vpop.permute.xlu2 %2074 }
0x1b9b   :  { %v2091_v20 = vsel %vm53_vm1, %v2087_v22, 0.0  ;;  %v2088_v31 = vmul.f32 %v2075_v25, %v3691_v1 }
0x1b9c   :  { %v2092_v30 = vrot.slane %v2091_v20, 4 }
0x1b9d   :  { %v2098_v39 = vsel %vm53_vm1, %v2088_v31, 0.0 }
0x1b9e   :  { %v2093_v52 = vadd.f32 %v2092_v30, %v2091_v20  ;;  %v2099_v13 = vrot.slane %v2098_v39, 4 }
0x1ba0   :  { %v2094_v44 = vrot.slane %v2093_v52, 2  ;;  %v2100_v18 = vadd.f32 %v2099_v13, %v2098_v39 }
0x1ba2   :  { %v2095_v34 = vadd.f32 %v2094_v44, %v2093_v52  ;;  %v2101_v17 = vrot.slane %v2100_v18, 2 }
0x1ba4   :  { %v2096_v28 = vrot.slane %v2095_v34, 1  ;;  %v2102_v19 = vadd.f32 %v2101_v17, %v2100_v18 }
0x1ba6   :  { %v2097_v35 = vadd.f32 %v2096_v28, %v2095_v34  ;;  %v2103_v21 = vrot.slane %v2102_v19, 1 }
0x1ba8   :  { %v3711_v57 = vsub.f32 %v3432_v36, %v2097_v35  ;;  %v2104_v24 = vadd.f32 %v2103_v21, %v2102_v19 }
0x1baa   :  { %v2123_v27 = vmax.f32 %v3711_v57, 1e-12  ;;  %v3715_v38 = vsub.f32 %v3434_v37, %v2104_v24 }
0x1bac   :  { %3061 = vrsqrt.f32 %v2123_v27  ;;  %v2124_v29 = vmax.f32 %v3715_v38, 1e-12  ;;  %vm2134_vm14 = vcmp.eq.f32.partialorder %v2123_v27, inf  ;;  %v2137_v10 = vand.u32 2147483648, %v2123_v27 }
0x1bad   :  { %vm2136_vm15 = vcmp.eq.f32.partialorder %v2123_v27, 0.0 }
0x1bae   :  { %3063 = vrsqrt.f32 %v2124_v29  ;;  %vm2146_vm0 = vcmp.eq.f32.partialorder %v2124_v29, inf  ;;  %v2149_v14 = vand.u32 2147483648, %v2124_v29  ;;  %vm2148_vm2 = vcmp.eq.f32.partialorder %v2124_v29, 0.0 }
0x1bb2   :  { %v3062_v26 = vpop.eup %3061 }
0x1bb3   :  { %v2128_v5 = vmul.f32 %v3062_v26, %v2123_v27 }
0x1bb4   :  { %v2080_v42 = vpop.permute.xlu0 %2079  ;;  %v3064_v46 = vpop.eup %3063 }
0x1bb5   :  { %v2089_v55 = vmul.f32 %v2080_v42, %v3694_v63  ;;  %v2129_v49 = vmul.f32 %v3062_v26, %v2128_v5  ;;  %v2140_v53 = vmul.f32 %v3064_v46, %v2124_v29 }
0x1bb7   :  { %v2105_v54 = vsel %vm53_vm1, %v2089_v55, 0.0  ;;  %v2130_v56 = vmul.f32 0.5, %v2129_v49  ;;  %v2141_v59 = vmul.f32 %v3064_v46, %v2140_v53 }
0x1bb8   :  { %v2106_v58 = vrot.slane %v2105_v54, 4 }
0x1bb9   :  { %v2131_v60 = vsub.f32 1.5, %v2130_v56  ;;  %v2142_v0 = vmul.f32 0.5, %v2141_v59 }
0x1bba   :  { %v2107_v61 = vadd.f32 %v2106_v58, %v2105_v54 }
0x1bbb   :  { %v2132_v62 = vmul.f32 %v3062_v26, %v2131_v60  ;;  %v2143_v23 = vsub.f32 1.5, %v2142_v0 }
0x1bbc   :  { %v2108_v2 = vrot.slane %v2107_v61, 2 }
0x1bbd   :  { %v2133_v4 = vmul.f32 %v2132_v62, %v2123_v27  ;;  %v2144_v11 = vmul.f32 %v3064_v46, %v2143_v23 }
0x1bbe   :  { %v2109_v8 = vadd.f32 %v2108_v2, %v2107_v61 }
0x1bbf   :  { %v2135_v12 = vsel %vm2134_vm14, %v2123_v27, %v2133_v4  ;;  %v2145_v47 = vmul.f32 %v2144_v11, %v2124_v29 }
0x1bc0   :  { %v2110_v3 = vrot.slane %v2109_v8, 1  ;;  %v2138_v6 = vsel %vm2136_vm15, %v2137_v10, %v2135_v12 }
0x1bc1   :  { %2178 = vperm.xlu2 %2906, %v2138_v6   ;;  %v2147_v16 = vsel %vm2146_vm0, %v2124_v29, %v2145_v47  ;;  %v3156_v29 = vmov 6  }
0x1bc2   :  { %v2111_v9 = vadd.f32 %v2110_v3, %v2109_v8  ;;  %v2150_v50 = vsel %vm2148_vm2, %v2149_v14, %v2147_v16  ;;  %v3736_v16 = vsel %vm2262_vm12, 1.0, %v3148_v48 }
0x1bc3   :  { %2183 = vperm.xlu1 %2905, %v2150_v50  }
0x1bc4   :  { %v3721_v51 = vsub.f32 %v3437_v41, %v2111_v9 }
0x1bc6   :  { %v2125_v22 = vmax.f32 %v3721_v51, 1e-12 }
0x1bc8   :  { %3065 = vrsqrt.f32 %v2125_v22  ;;  %vm2158_vm3 = vcmp.eq.f32.partialorder %v2125_v22, inf  ;;  %v2161_v44 = vand.u32 2147483648, %v2125_v22  ;;  %vm2160_vm4 = vcmp.eq.f32.partialorder %v2125_v22, 0.0 }
0x1bcb   :  { %2908 = vset.pattern.permute.xlu1 %v3156_v29 }
0x1bce   :  { %v3066_v20 = vpop.eup %3065 }
0x1bcf   :  { %v2152_v25 = vmul.f32 %v3066_v20, %v2125_v22 }
0x1bd1   :  { %v2153_v30 = vmul.f32 %v3066_v20, %v2152_v25 }
0x1bd3   :  { %v2154_v31 = vmul.f32 0.5, %v2153_v30 }
0x1bd5   :  { %v2155_v52 = vsub.f32 1.5, %v2154_v31 }
0x1bd7   :  { %v2156_v39 = vmul.f32 %v3066_v20, %v2155_v52 }
0x1bd9   :  { %v2157_v13 = vmul.f32 %v2156_v39, %v2125_v22 }
0x1bdb   :  { %v2159_v18 = vsel %vm2158_vm3, %v2125_v22, %v2157_v13 }
0x1bdc   :  { %v2162_v34 = vsel %vm2160_vm4, %v2161_v44, %v2159_v18 }
0x1bdd   :  { %2188 = vperm.xlu2 %2906, %v2162_v34  }
0x1be5   :  { %2909 = vset.pattern.permute.xlu2 %v3156_v29 }
0x1c00   :  { %v2085_v17 = vpop.permute.xlu1 %2084 }
0x1c01   :  { %v2090_v28 = vmul.f32 %v2085_v17, %v3703_v15 }
0x1c03   :  { %v2112_v19 = vsel %vm53_vm1, %v2090_v28, 0.0 }
0x1c04   :  { %v2113_v35 = vrot.slane %v2112_v19, 4 }
0x1c06   :  { %v2114_v21 = vadd.f32 %v2113_v35, %v2112_v19 }
0x1c08   :  { %v2115_v24 = vrot.slane %v2114_v21, 2 }
0x1c0a   :  { %v2116_v27 = vadd.f32 %v2115_v24, %v2114_v21 }
0x1c0c   :  { %v2117_v26 = vrot.slane %v2116_v27, 1 }
0x1c0e   :  { %v2118_v5 = vadd.f32 %v2117_v26, %v2116_v27 }
0x1c10   :  { %v3727_v42 = vsub.f32 %v3440_v43, %v2118_v5 }
0x1c12   :  { %v2126_v46 = vmax.f32 %v3727_v42, 1e-12 }
0x1c14   :  { %3067 = vrsqrt.f32 %v2126_v46  ;;  %vm2170_vm7 = vcmp.eq.f32.partialorder %v2126_v46, inf  ;;  %v2173_v8 = vand.u32 2147483648, %v2126_v46  ;;  %vm2172_vm8 = vcmp.eq.f32.partialorder %v2126_v46, 0.0 }
0x1c1a   :  { %v3068_v49 = vpop.eup %3067 }
0x1c1b   :  { %v2179_v55 = vpop.permute.xlu2 %2178  ;;  %v2164_v53 = vmul.f32 %v3068_v49, %v2126_v46 }
0x1c1c   :  { %3069 = vrcp.f32 %v2179_v55  ;;  %v2207_v62 = vand.u32 2147483648, %v2179_v55  ;;  %v2205_v23 = vand.u32 2147483647, %v2179_v55  ;;  %vm2201_vm6 = vweird.f32 %v2179_v55 }
0x1c1d   :  { %v2165_v54 = vmul.f32 %v3068_v49, %v2164_v53 }
0x1c1e   :  { %v2208_v12 = vor.u32 1.1754944e-38, %v2207_v62  ;;  %vm2206_vm10 = vcmp.eq.f32.partialorder %v2205_v23, 8.507059e+37 }
0x1c1f   :  { %v2166_v56 = vmul.f32 0.5, %v2165_v54 }
0x1c21   :  { %v2167_v60 = vsub.f32 1.5, %v2166_v56 }
0x1c22   :  { %v3070_v58 = vpop.eup %3069 }
0x1c23   :  { %v2197_v59 = vmul.f32 %v3070_v58, %v2179_v55  ;;  %v2168_v0 = vmul.f32 %v3068_v49, %v2167_v60  ;;  %vm2202_vm5 = vweird.f32 %v3070_v58 }
0x1c24   :  { %vm2203_vm9 = vmor %vm2201_vm6, %vm2202_vm5 }
0x1c25   :  { %v2198_v61 = vsub.f32 1.0, %v2197_v59  ;;  %v2169_v4 = vmul.f32 %v2168_v0, %v2126_v46 }
0x1c27   :  { %v2199_v2 = vmul.f32 %v3070_v58, %v2198_v61  ;;  %v2171_v11 = vsel %vm2170_vm7, %v2126_v46, %v2169_v4 }
0x1c28   :  { %v2174_v3 = vsel %vm2172_vm8, %v2173_v8, %v2171_v11 }
0x1c29   :  { %v2200_v10 = vadd.f32 %v3070_v58, %v2199_v2  ;;  %2193 = vperm.xlu0 %2907, %v2174_v3  }
0x1c2b   :  { %v2204_v6 = vsel %vm2203_vm9, %v3070_v58, %v2200_v10 }
0x1c2c   :  { %v2209_v47 = vsel %vm2206_vm10, %v2208_v12, %v2204_v6 }
0x1c2d   :  { %v2210_v14 = vmul.f32 %v2209_v47, %v3711_v57 }
0x1c2f   :  { %v2258_v9 = vsel %vm2175_vm11, %v2210_v14, 0.0 }
0x1c30   :  { %v2265_v50 = vperm.slane %v2258_v9, 5 }
0x1c31   :  { %2910 = vset.pattern.permute.xlu0 %v3156_v29 }
0x1c32   :  { %v2269_v22 = vmul.f32 %v3736_v16, %v2265_v50 }
0x1c34   :  { %v3740_v20 = vadd.f32 %v2269_v22, %v3679_v45 }
0x1c35   :  { %v2184_v25 = vpop.permute.xlu1 %2183 }
0x1c36   :  { %2279 = vperm.xlu1 %2908, %v3740_v20   ;;  %3071 = vrcp.f32 %v2184_v25  ;;  %v2222_v44 = vand.u32 2147483648, %v2184_v25  ;;  %v2220_v17 = vand.u32 2147483647, %v2184_v25  ;;  %vm2216_vm15 = vweird.f32 %v2184_v25 }
0x1c37   :  { %v2189_v30 = vpop.permute.xlu2 %2188 }
0x1c38   :  { %3073 = vrcp.f32 %v2189_v30  ;;  %v2237_v28 = vand.u32 2147483648, %v2189_v30  ;;  %v2235_v45 = vand.u32 2147483647, %v2189_v30  ;;  %v2223_v21 = vor.u32 1.1754944e-38, %v2222_v44 }
0x1c39   :  { %vm2231_vm2 = vweird.f32 %v2189_v30  ;;  %vm2221_vm3 = vcmp.eq.f32.partialorder %v2220_v17, 8.507059e+37 }
0x1c3a   :  { %v2238_v29 = vor.u32 1.1754944e-38, %v2237_v28  ;;  %vm2236_vm5 = vcmp.eq.f32.partialorder %v2235_v45, 8.507059e+37 }
0x1c3c   :  { %v3072_v57 = vpop.eup %3071 }
0x1c3d   :  { %v2212_v52 = vmul.f32 %v3072_v57, %v2184_v25  ;;  %vm2217_vm13 = vweird.f32 %v3072_v57 }
0x1c3e   :  { %v3074_v31 = vpop.eup %3073  ;;  %vm2218_vm0 = vmor %vm2216_vm15, %vm2217_vm13 }
0x1c3f   :  { %v2227_v39 = vmul.f32 %v3074_v31, %v2189_v30  ;;  %v2213_v13 = vsub.f32 1.0, %v2212_v52  ;;  %vm2232_vm14 = vweird.f32 %v3074_v31 }
0x1c40   :  { %vm2233_vm4 = vmor %vm2231_vm2, %vm2232_vm14 }
0x1c41   :  { %v2228_v18 = vsub.f32 1.0, %v2227_v39  ;;  %v2214_v34 = vmul.f32 %v3072_v57, %v2213_v13 }
0x1c43   :  { %v2229_v19 = vmul.f32 %v3074_v31, %v2228_v18  ;;  %v2215_v35 = vadd.f32 %v3072_v57, %v2214_v34 }
0x1c45   :  { %v2230_v24 = vadd.f32 %v3074_v31, %v2229_v19  ;;  %v2219_v27 = vsel %vm2218_vm0, %v3072_v57, %v2215_v35 }
0x1c46   :  { %v2224_v5 = vsel %vm2221_vm3, %v2223_v21, %v2219_v27 }
0x1c47   :  { %v2234_v26 = vsel %vm2233_vm4, %v3074_v31, %v2230_v24  ;;  %v2225_v46 = vmul.f32 %v2224_v5, %v3715_v38 }
0x1c48   :  { %v2239_v55 = vsel %vm2236_vm5, %v2238_v29, %v2234_v26  ;;  %vm2385_vm5 = vcmp.ge.s32.totalorder %v3427_v33, 6 }
0x1c49   :  { %v2240_v49 = vmul.f32 %v2239_v55, %v3721_v51  ;;  %v2259_v53 = vsel %vm2175_vm11, %v2225_v46, 0.0 }
0x1c4a   :  { %v2266_v54 = vperm.slane %v2259_v53, 5 }
0x1c4b   :  { %v2260_v56 = vsel %vm2175_vm11, %v2240_v49, 0.0 }
0x1c4c   :  { %v2267_v58 = vperm.slane %v2260_v56, 5  ;;  %v2270_v59 = vmul.f32 %v3736_v16, %v2266_v54 }
0x1c4e   :  { %v2271_v60 = vmul.f32 %v3736_v16, %v2267_v58  ;;  %v3752_v61 = vadd.f32 %v2270_v59, %v3691_v1 }
0x1c50   :  { %v3755_v38 = vadd.f32 %v2271_v60, %v3694_v63  ;;  %2284 = vperm.xlu2 %2909, %v3752_v61  }
0x1c52   :  { %2289 = vperm.xlu0 %2910, %v3755_v38  }
0x1c9b   :  { %v2194_v51 = vpop.permute.xlu0 %2193 }
0x1c9c   :  { %3075 = vrcp.f32 %v2194_v51  ;;  %v2252_v23 = vand.u32 2147483648, %v2194_v51  ;;  %v2250_v10 = vand.u32 2147483647, %v2194_v51  ;;  %vm2246_vm6 = vweird.f32 %v2194_v51 }
0x1c9e   :  { %v2253_v3 = vor.u32 1.1754944e-38, %v2252_v23  ;;  %vm2251_vm9 = vcmp.eq.f32.partialorder %v2250_v10, 8.507059e+37 }
0x1ca2   :  { %v3076_v0 = vpop.eup %3075 }
0x1ca3   :  { %v2242_v62 = vmul.f32 %v3076_v0, %v2194_v51  ;;  %vm2247_vm7 = vweird.f32 %v3076_v0 }
0x1ca4   :  { %vm2248_vm8 = vmor %vm2246_vm6, %vm2247_vm7  ;;  %vm2472_vm7 = vcmp.eq.s32.totalorder %v3425_v32, 6 }
0x1ca5   :  { %v2243_v2 = vsub.f32 1.0, %v2242_v62 }
0x1ca7   :  { %v2244_v8 = vmul.f32 %v3076_v0, %v2243_v2 }
0x1ca8   :  { %v2280_v4 = vpop.permute.xlu1 %2279 }
0x1ca9   :  { %v2297_v1 = vmul.f32 %v2280_v4, %v3740_v20  ;;  %v2245_v11 = vadd.f32 %v3076_v0, %v2244_v8 }
0x1caa   :  { %v2285_v12 = vpop.permute.xlu2 %2284 }
0x1cab   :  { %v2301_v63 = vsel %vm53_vm1, %v2297_v1, 0.0  ;;  %v2298_v47 = vmul.f32 %v2285_v12, %v3752_v61  ;;  %v2249_v14 = vsel %vm2248_vm8, %v3076_v0, %v2245_v11 }
0x1cac   :  { %v2302_v6 = vrot.slane %v2301_v63, 4  ;;  %v2254_v22 = vsel %vm2251_vm9, %v2253_v3, %v2249_v14 }
0x1cad   :  { %v2308_v50 = vsel %vm53_vm1, %v2298_v47, 0.0  ;;  %v2255_v30 = vmul.f32 %v2254_v22, %v3727_v42 }
0x1cae   :  { %v2303_v9 = vadd.f32 %v2302_v6, %v2301_v63  ;;  %v2309_v25 = vrot.slane %v2308_v50, 4 }
0x1caf   :  { %v2261_v52 = vsel %vm2175_vm11, %v2255_v30, 0.0 }
0x1cb0   :  { %v2304_v57 = vrot.slane %v2303_v9, 2  ;;  %v2310_v31 = vadd.f32 %v2309_v25, %v2308_v50  ;;  %v2268_v13 = vperm.slane %v2261_v52, 5 }
0x1cb2   :  { %v2305_v39 = vadd.f32 %v2304_v57, %v2303_v9  ;;  %v2311_v44 = vrot.slane %v2310_v31, 2  ;;  %v2272_v34 = vmul.f32 %v3736_v16, %v2268_v13 }
0x1cb4   :  { %v2306_v18 = vrot.slane %v2305_v39, 1  ;;  %v2312_v17 = vadd.f32 %v2311_v44, %v2310_v31  ;;  %v3768_v19 = vadd.f32 %v2272_v34, %v3703_v15 }
0x1cb6   :  { %v2307_v28 = vadd.f32 %v2306_v18, %v2305_v39  ;;  %v2313_v45 = vrot.slane %v2312_v17, 1  ;;  %2294 = vperm.xlu1 %2908, %v3768_v19   ;;  %v3157_v18 = vmov 7  }
0x1cb8   :  { %v3771_v35 = vsub.f32 %v3432_v36, %v2307_v28  ;;  %v2314_v42 = vadd.f32 %v2313_v45, %v2312_v17 }
0x1cba   :  { %v2333_v21 = vmax.f32 %v3771_v35, 1e-12  ;;  %v3776_v24 = vsub.f32 %v3434_v37, %v2314_v42 }
0x1cbc   :  { %3077 = vrsqrt.f32 %v2333_v21  ;;  %v2334_v16 = vmax.f32 %v3776_v24, 1e-12  ;;  %vm2344_vm10 = vcmp.eq.f32.partialorder %v2333_v21, inf  ;;  %v2347_v4 = vand.u32 2147483648, %v2333_v21 }
0x1cbd   :  { %vm2346_vm11 = vcmp.eq.f32.partialorder %v2333_v21, 0.0 }
0x1cbe   :  { %3079 = vrsqrt.f32 %v2334_v16  ;;  %vm2356_vm12 = vcmp.eq.f32.partialorder %v2334_v16, inf  ;;  %v2359_v12 = vand.u32 2147483648, %v2334_v16  ;;  %vm2358_vm13 = vcmp.eq.f32.partialorder %v2334_v16, 0.0 }
0x1cc2   :  { %v3078_v27 = vpop.eup %3077 }
0x1cc3   :  { %v2338_v29 = vmul.f32 %v3078_v27, %v2333_v21 }
0x1cc4   :  { %v2290_v15 = vpop.permute.xlu0 %2289  ;;  %v3080_v26 = vpop.eup %3079 }
0x1cc5   :  { %v2299_v5 = vmul.f32 %v2290_v15, %v3755_v38  ;;  %v2339_v46 = vmul.f32 %v3078_v27, %v2338_v29  ;;  %v2350_v55 = vmul.f32 %v3080_v26, %v2334_v16 }
0x1cc7   :  { %v2315_v49 = vsel %vm53_vm1, %v2299_v5, 0.0  ;;  %v2340_v53 = vmul.f32 0.5, %v2339_v46  ;;  %v2351_v56 = vmul.f32 %v3080_v26, %v2350_v55 }
0x1cc8   :  { %v2316_v54 = vrot.slane %v2315_v49, 4 }
0x1cc9   :  { %v2341_v58 = vsub.f32 1.5, %v2340_v53  ;;  %v2352_v60 = vmul.f32 0.5, %v2351_v56 }
0x1cca   :  { %v2317_v59 = vadd.f32 %v2316_v54, %v2315_v49 }
0x1ccb   :  { %v2342_v51 = vmul.f32 %v3078_v27, %v2341_v58  ;;  %v2353_v62 = vsub.f32 1.5, %v2352_v60 }
0x1ccc   :  { %v2318_v0 = vrot.slane %v2317_v59, 2 }
0x1ccd   :  { %v2343_v2 = vmul.f32 %v2342_v51, %v2333_v21  ;;  %v2354_v8 = vmul.f32 %v3080_v26, %v2353_v62 }
0x1cce   :  { %v2319_v23 = vadd.f32 %v2318_v0, %v2317_v59 }
0x1ccf   :  { %v2345_v10 = vsel %vm2344_vm10, %v2333_v21, %v2343_v2  ;;  %v2355_v63 = vmul.f32 %v2354_v8, %v2334_v16  ;;  %v3799_v2 = vsel %vm2472_vm7, 1.0, %v3148_v48 }
0x1cd0   :  { %v2320_v1 = vrot.slane %v2319_v23, 1  ;;  %v2348_v11 = vsel %vm2346_vm11, %v2347_v4, %v2345_v10 }
0x1cd1   :  { %2388 = vperm.xlu2 %2909, %v2348_v11   ;;  %v2357_v6 = vsel %vm2356_vm12, %v2334_v16, %v2355_v63 }
0x1cd2   :  { %v2321_v3 = vadd.f32 %v2320_v1, %v2319_v23  ;;  %v2360_v47 = vsel %vm2358_vm13, %v2359_v12, %v2357_v6 }
0x1cd3   :  { %2393 = vperm.xlu1 %2908, %v2360_v47  }
0x1cd4   :  { %v3782_v14 = vsub.f32 %v3437_v41, %v2321_v3 }
0x1cd6   :  { %v2335_v9 = vmax.f32 %v3782_v14, 1e-12 }
0x1cd8   :  { %3081 = vrsqrt.f32 %v2335_v9  ;;  %vm2368_vm14 = vcmp.eq.f32.partialorder %v2335_v9, inf  ;;  %v2371_v39 = vand.u32 2147483648, %v2335_v9  ;;  %vm2370_vm15 = vcmp.eq.f32.partialorder %v2335_v9, 0.0 }
0x1cdb   :  { %2911 = vset.pattern.permute.xlu1 %v3157_v18 }
0x1cde   :  { %v3082_v50 = vpop.eup %3081 }
0x1cdf   :  { %v2362_v22 = vmul.f32 %v3082_v50, %v2335_v9 }
0x1ce1   :  { %v2363_v25 = vmul.f32 %v3082_v50, %v2362_v22 }
0x1ce3   :  { %v2364_v30 = vmul.f32 0.5, %v2363_v25 }
0x1ce5   :  { %v2365_v57 = vsub.f32 1.5, %v2364_v30 }
0x1ce7   :  { %v2366_v31 = vmul.f32 %v3082_v50, %v2365_v57 }
0x1ce9   :  { %v2367_v52 = vmul.f32 %v2366_v31, %v2335_v9 }
0x1ceb   :  { %v2369_v13 = vsel %vm2368_vm14, %v2335_v9, %v2367_v52 }
0x1cec   :  { %v2372_v44 = vsel %vm2370_vm15, %v2371_v39, %v2369_v13 }
0x1ced   :  { %2398 = vperm.xlu2 %2909, %v2372_v44  }
0x1cf5   :  { %2912 = vset.pattern.permute.xlu2 %v3157_v18 }
0x1d28   :  { %v2295_v34 = vpop.permute.xlu1 %2294 }
0x1d29   :  { %v2300_v17 = vmul.f32 %v2295_v34, %v3768_v19 }
0x1d2b   :  { %v2389_v28 = vpop.permute.xlu2 %2388  ;;  %v2322_v45 = vsel %vm53_vm1, %v2300_v17, 0.0 }
0x1d2c   :  { %3083 = vrcp.f32 %v2389_v28  ;;  %v2323_v42 = vrot.slane %v2322_v45, 4  ;;  %v2417_v46 = vand.u32 2147483648, %v2389_v28  ;;  %v2415_v49 = vand.u32 2147483647, %v2389_v28 }
0x1d2d   :  { %vm2411_vm2 = vweird.f32 %v2389_v28 }
0x1d2e   :  { %v2324_v21 = vadd.f32 %v2323_v42, %v2322_v45  ;;  %v2418_v58 = vor.u32 1.1754944e-38, %v2417_v46  ;;  %vm2416_vm4 = vcmp.eq.f32.partialorder %v2415_v49, 8.507059e+37 }
0x1d30   :  { %v2325_v27 = vrot.slane %v2324_v21, 2 }
0x1d32   :  { %v3084_v16 = vpop.eup %3083  ;;  %v2326_v15 = vadd.f32 %v2325_v27, %v2324_v21 }
0x1d33   :  { %v2407_v29 = vmul.f32 %v3084_v16, %v2389_v28  ;;  %vm2412_vm0 = vweird.f32 %v3084_v16 }
0x1d34   :  { %v2327_v5 = vrot.slane %v2326_v15, 1  ;;  %vm2413_vm3 = vmor %vm2411_vm2, %vm2412_vm0 }
0x1d35   :  { %v2408_v26 = vsub.f32 1.0, %v2407_v29 }
0x1d36   :  { %v2328_v53 = vadd.f32 %v2327_v5, %v2326_v15 }
0x1d37   :  { %v2409_v55 = vmul.f32 %v3084_v16, %v2408_v26 }
0x1d38   :  { %v3790_v56 = vsub.f32 %v3440_v43, %v2328_v53 }
0x1d39   :  { %v2410_v54 = vadd.f32 %v3084_v16, %v2409_v55 }
0x1d3a   :  { %v2336_v60 = vmax.f32 %v3790_v56, 1e-12 }
0x1d3b   :  { %v2414_v59 = vsel %vm2413_vm3, %v3084_v16, %v2410_v54 }
0x1d3c   :  { %v2419_v51 = vsel %vm2416_vm4, %v2418_v58, %v2414_v59  ;;  %3085 = vrsqrt.f32 %v2336_v60  ;;  %vm2380_vm6 = vcmp.eq.f32.partialorder %v2336_v60, inf  ;;  %vm2382_vm8 = vcmp.eq.f32.partialorder %v2336_v60, 0.0 }
0x1d3d   :  { %v2420_v0 = vmul.f32 %v2419_v51, %v3771_v35  ;;  %v2383_v31 = vand.u32 2147483648, %v2336_v60 }
0x1d3f   :  { %v2468_v62 = vsel %vm2385_vm5, %v2420_v0, 0.0 }
0x1d40   :  { %v2475_v23 = vperm.slane %v2468_v62, 6 }
0x1d42   :  { %v2479_v4 = vmul.f32 %v3799_v2, %v2475_v23  ;;  %v3086_v8 = vpop.eup %3085 }
0x1d43   :  { %v2374_v1 = vmul.f32 %v3086_v8, %v2336_v60 }
0x1d44   :  { %v3803_v10 = vadd.f32 %v2479_v4, %v3740_v20 }
0x1d45   :  { %v2394_v11 = vpop.permute.xlu1 %2393  ;;  %v2375_v63 = vmul.f32 %v3086_v8, %v2374_v1 }
0x1d46   :  { %2489 = vperm.xlu1 %2911, %v3803_v10   ;;  %3087 = vrcp.f32 %v2394_v11  ;;  %v2432_v20 = vand.u32 2147483648, %v2394_v11  ;;  %v2430_v39 = vand.u32 2147483647, %v2394_v11  ;;  %vm2426_vm11 = vweird.f32 %v2394_v11 }
0x1d47   :  { %v2399_v35 = vpop.permute.xlu2 %2398  ;;  %v2376_v12 = vmul.f32 0.5, %v2375_v63 }
0x1d48   :  { %3089 = vrcp.f32 %v2399_v35  ;;  %v2447_v13 = vand.u32 2147483648, %v2399_v35  ;;  %v2445_v34 = vand.u32 2147483647, %v2399_v35  ;;  %v2433_v42 = vor.u32 1.1754944e-38, %v2432_v20 }
0x1d49   :  { %v2377_v6 = vsub.f32 1.5, %v2376_v12  ;;  %vm2441_vm13 = vweird.f32 %v2399_v35  ;;  %vm2431_vm14 = vcmp.eq.f32.partialorder %v2430_v39, 8.507059e+37 }
0x1d4a   :  { %v2448_v27 = vor.u32 1.1754944e-38, %v2447_v13  ;;  %vm2446_vm0 = vcmp.eq.f32.partialorder %v2445_v34, 8.507059e+37 }
0x1d4b   :  { %v2378_v22 = vmul.f32 %v3086_v8, %v2377_v6 }
0x1d4c   :  { %v3088_v3 = vpop.eup %3087 }
0x1d4d   :  { %v2422_v9 = vmul.f32 %v3088_v3, %v2394_v11  ;;  %v2379_v57 = vmul.f32 %v2378_v22, %v2336_v60  ;;  %vm2427_vm9 = vweird.f32 %v3088_v3 }
0x1d4e   :  { %v3090_v47 = vpop.eup %3089  ;;  %vm2428_vm12 = vmor %vm2426_vm11, %vm2427_vm9 }
0x1d4f   :  { %v2437_v50 = vmul.f32 %v3090_v47, %v2399_v35  ;;  %v2423_v25 = vsub.f32 1.0, %v2422_v9  ;;  %vm2442_vm10 = vweird.f32 %v3090_v47  ;;  %v2381_v17 = vsel %vm2380_vm6, %v2336_v60, %v2379_v57 }
0x1d50   :  { %v2384_v45 = vsel %vm2382_vm8, %v2383_v31, %v2381_v17  ;;  %vm2443_vm15 = vmor %vm2441_vm13, %vm2442_vm10 }
0x1d51   :  { %v2438_v30 = vsub.f32 1.0, %v2437_v50  ;;  %v2424_v52 = vmul.f32 %v3088_v3, %v2423_v25  ;;  %2403 = vperm.xlu0 %2910, %v2384_v45  }
0x1d53   :  { %v2439_v44 = vmul.f32 %v3090_v47, %v2438_v30  ;;  %v2425_v28 = vadd.f32 %v3088_v3, %v2424_v52 }
0x1d55   :  { %v2440_v21 = vadd.f32 %v3090_v47, %v2439_v44  ;;  %v2429_v16 = vsel %vm2428_vm12, %v3088_v3, %v2425_v28 }
0x1d56   :  { %v2434_v15 = vsel %vm2431_vm14, %v2433_v42, %v2429_v16 }
0x1d57   :  { %v2444_v29 = vsel %vm2443_vm15, %v3090_v47, %v2440_v21  ;;  %v2435_v26 = vmul.f32 %v2434_v15, %v3776_v24 }
0x1d58   :  { %v2449_v5 = vsel %vm2446_vm0, %v2448_v27, %v2444_v29 }
0x1d59   :  { %v2450_v46 = vmul.f32 %v2449_v5, %v3782_v14  ;;  %v2469_v55 = vsel %vm2385_vm5, %v2435_v26, 0.0  ;;  %2913 = vset.pattern.permute.xlu0 %v3157_v18 }
0x1d5a   :  { %v2476_v49 = vperm.slane %v2469_v55, 6 }
0x1d5b   :  { %v2470_v53 = vsel %vm2385_vm5, %v2450_v46, 0.0 }
0x1d5c   :  { %v2477_v54 = vperm.slane %v2470_v53, 6  ;;  %v2480_v58 = vmul.f32 %v3799_v2, %v2476_v49 }
0x1d5e   :  { %v2481_v59 = vmul.f32 %v3799_v2, %v2477_v54  ;;  %v3816_v60 = vadd.f32 %v2480_v58, %v3752_v61 }
0x1d60   :  { %v3819_v24 = vadd.f32 %v2481_v59, %v3755_v38  ;;  %2494 = vperm.xlu2 %2912, %v3816_v60  }
0x1d62   :  { %2499 = vperm.xlu0 %2913, %v3819_v24  }
0x1db8   :  { %v2490_v14 = vpop.permute.xlu1 %2489 }
0x1db9   :  { %v2507_v51 = vmul.f32 %v2490_v14, %v3803_v10 }
0x1dba   :  { %v2495_v62 = vpop.permute.xlu2 %2494 }
0x1dbb   :  { %v2511_v0 = vsel %vm53_vm1, %v2507_v51, 0.0  ;;  %v2508_v18 = vmul.f32 %v2495_v62, %v3816_v60 }
0x1dbc   :  { %v2512_v23 = vrot.slane %v2511_v0, 4 }
0x1dbd   :  { %v2518_v61 = vsel %vm53_vm1, %v2508_v18, 0.0 }
0x1dbe   :  { %v2513_v4 = vadd.f32 %v2512_v23, %v2511_v0  ;;  %v2519_v8 = vrot.slane %v2518_v61, 4 }
0x1dc0   :  { %v2514_v1 = vrot.slane %v2513_v4, 2  ;;  %v2520_v38 = vadd.f32 %v2519_v8, %v2518_v61 }
0x1dc2   :  { %v2515_v11 = vadd.f32 %v2514_v1, %v2513_v4  ;;  %v2521_v35 = vrot.slane %v2520_v38, 2 }
0x1dc3   :  { %v2404_v47 = vpop.permute.xlu0 %2403 }
0x1dc4   :  { %v2516_v63 = vrot.slane %v2515_v11, 1  ;;  %v2522_v12 = vadd.f32 %v2521_v35, %v2520_v38  ;;  %3091 = vrcp.f32 %v2404_v47  ;;  %v2462_v39 = vand.u32 2147483648, %v2404_v47 }
0x1dc5   :  { %vm2456_vm3 = vweird.f32 %v2404_v47 }
0x1dc6   :  { %v2517_v3 = vadd.f32 %v2516_v63, %v2515_v11  ;;  %v2523_v6 = vrot.slane %v2522_v12, 1  ;;  %v2463_v42 = vor.u32 1.1754944e-38, %v2462_v39  ;;  %v2698_v39 = vld [vmem:[%s3908_s2 + $0x8] sm:$0xff] }
0x1dc8   :  { %v3828_v9 = vsub.f32 %v3432_v36, %v2517_v3  ;;  %v2524_v50 = vadd.f32 %v2523_v6, %v2522_v12  ;;  %v2460_v36 = vand.u32 2147483647, %v2404_v47 }
0x1dca   :  { %v2543_v22 = vmax.f32 %v3828_v9, 1e-12  ;;  %v3832_v25 = vsub.f32 %v3434_v37, %v2524_v50  ;;  %v3092_v30 = vpop.eup %3091  ;;  %vm2461_vm7 = vcmp.eq.f32.partialorder %v2460_v36, 8.507059e+37 }
0x1dcb   :  { %v2452_v57 = vmul.f32 %v3092_v30, %v2404_v47  ;;  %vm2457_vm2 = vweird.f32 %v3092_v30  ;;  %v2697_v47 = vld [vmem:[%s3908_s2] sm:$0xff] }
0x1dcc   :  { %3093 = vrsqrt.f32 %v2543_v22  ;;  %v2544_v20 = vmax.f32 %v3832_v25, 1e-12  ;;  %vm2458_vm4 = vmor %vm2456_vm3, %vm2457_vm2  ;;  %vm2554_vm6 = vcmp.eq.f32.partialorder %v2543_v22, inf  ;;  %v2557_v18 = vand.u32 2147483648, %v2543_v22 }
0x1dcd   :  { %v2453_v31 = vsub.f32 1.0, %v2452_v57  ;;  %vm2556_vm8 = vcmp.eq.f32.partialorder %v2543_v22, 0.0 }
0x1dce   :  { %3095 = vrsqrt.f32 %v2544_v20  ;;  %v2569_v12 = vand.u32 2147483648, %v2544_v20  ;;  %vm2568_vm9 = vcmp.eq.f32.partialorder %v2544_v20, 0.0 }
0x1dcf   :  { %v2454_v13 = vmul.f32 %v3092_v30, %v2453_v31 }
0x1dd1   :  { %v2455_v28 = vadd.f32 %v3092_v30, %v2454_v13 }
0x1dd2   :  { %v3094_v52 = vpop.eup %3093 }
0x1dd3   :  { %v2548_v44 = vmul.f32 %v3094_v52, %v2543_v22  ;;  %v2459_v16 = vsel %vm2458_vm4, %v3092_v30, %v2455_v28 }
0x1dd4   :  { %v2500_v34 = vpop.permute.xlu0 %2499  ;;  %v3096_v17 = vpop.eup %3095  ;;  %v2464_v26 = vsel %vm2461_vm7, %v2463_v42, %v2459_v16 }
0x1dd5   :  { %v2509_v37 = vmul.f32 %v2500_v34, %v3819_v24  ;;  %v2549_v45 = vmul.f32 %v3094_v52, %v2548_v44  ;;  %v2560_v21 = vmul.f32 %v3096_v17, %v2544_v20  ;;  %v2465_v46 = vmul.f32 %v2464_v26, %v3790_v56 }
0x1dd7   :  { %v2525_v27 = vsel %vm53_vm1, %v2509_v37, 0.0  ;;  %v2550_v29 = vmul.f32 0.5, %v2549_v45  ;;  %v2561_v5 = vmul.f32 %v3096_v17, %v2560_v21  ;;  %v2471_v54 = vsel %vm2385_vm5, %v2465_v46, 0.0 }
0x1dd8   :  { %v2526_v15 = vrot.slane %v2525_v27, 4  ;;  %v2478_v14 = vperm.slane %v2471_v54, 6  ;;  %vm2566_vm5 = vcmp.eq.f32.partialorder %v2544_v20, inf }
0x1dd9   :  { %v2551_v55 = vsub.f32 1.5, %v2550_v29  ;;  %v2562_v53 = vmul.f32 0.5, %v2561_v5 }
0x1dda   :  { %v2527_v49 = vadd.f32 %v2526_v15, %v2525_v27  ;;  %v2482_v23 = vmul.f32 %v3799_v2, %v2478_v14  ;;  %v2700_v27 = vld [vmem:[%s3908_s2 + $0x18] sm:$0xff] }
0x1ddb   :  { %v2552_v58 = vmul.f32 %v3094_v52, %v2551_v55  ;;  %v2563_v51 = vsub.f32 1.5, %v2562_v53 }
0x1ddc   :  { %v2528_v59 = vrot.slane %v2527_v49, 2  ;;  %v3842_v8 = vadd.f32 %v2482_v23, %v3768_v19 }
0x1ddd   :  { %v2553_v0 = vmul.f32 %v2552_v58, %v2543_v22  ;;  %v2564_v4 = vmul.f32 %v3096_v17, %v2563_v51  ;;  %v2699_v58 = vld [vmem:[%s3908_s2 + $0x10] sm:$0xff] }
0x1dde   :  { %v2529_v62 = vadd.f32 %v2528_v59, %v2527_v49  ;;  %2504 = vperm.xlu1 %2911, %v3842_v8  }
0x1ddf   :  { %v2555_v61 = vsel %vm2554_vm6, %v2543_v22, %v2553_v0  ;;  %v2565_v11 = vmul.f32 %v2564_v4, %v2544_v20 }
0x1de0   :  { %v2530_v56 = vrot.slane %v2529_v62, 1  ;;  %v2558_v1 = vsel %vm2556_vm8, %v2557_v18, %v2555_v61 }
0x1de1   :  { %2598 = vperm.xlu2 %2912, %v2558_v1   ;;  %v2567_v63 = vsel %vm2566_vm5, %v2544_v20, %v2565_v11 }
0x1de2   :  { %v2531_v38 = vadd.f32 %v2530_v56, %v2529_v62  ;;  %v2570_v3 = vsel %vm2568_vm9, %v2569_v12, %v2567_v63 }
0x1de4   :  { %v3846_v35 = vsub.f32 %v3437_v41, %v2531_v38 }
0x1de6   :  { %v2545_v2 = vmax.f32 %v3846_v35, 1e-12  ;;  %2603 = vperm.xlu1 %2911, %v2570_v3  }
0x1de8   :  { %3097 = vrsqrt.f32 %v2545_v2  ;;  %vm2578_vm10 = vcmp.eq.f32.partialorder %v2545_v2, inf  ;;  %v2581_v31 = vand.u32 2147483648, %v2545_v2  ;;  %vm2580_vm11 = vcmp.eq.f32.partialorder %v2545_v2, 0.0 }
0x1dee   :  { %v3098_v19 = vpop.eup %3097  ;;  %2914 = vset.pattern.permute.xlu1 %v3137_v7 }
0x1def   :  { %v2572_v6 = vmul.f32 %v3098_v19, %v2545_v2  ;;  %2703 = vperm.xlu1 %2914, %v2697_v47  }
0x1df1   :  { %v2573_v50 = vmul.f32 %v3098_v19, %v2572_v6 }
0x1df3   :  { %v2574_v41 = vmul.f32 0.5, %v2573_v50 }
0x1df5   :  { %v2575_v22 = vsub.f32 1.5, %v2574_v41 }
0x1df7   :  { %v2576_v30 = vmul.f32 %v3098_v19, %v2575_v22  ;;  %2718 = vperm.xlu1 %2914, %v2700_v27  }
0x1df9   :  { %v2577_v57 = vmul.f32 %v2576_v30, %v2545_v2 }
0x1dfb   :  { %v2579_v20 = vsel %vm2578_vm10, %v2545_v2, %v2577_v57 }
0x1dfc   :  { %v2582_v52 = vsel %vm2580_vm11, %v2581_v31, %v2579_v20  ;;  %vm2595_vm11 = vcmp.ge.s32.totalorder %v3427_v33, 7 }
0x1dfd   :  { %2608 = vperm.xlu2 %2912, %v2582_v52  }
0x1e05   :  { %2915 = vset.pattern.permute.xlu2 %v3137_v7 }
0x1e06   :  { %2708 = vperm.xlu2 %2915, %v2698_v39  }
0x1e3b   :  { %v2599_v59 = vpop.permute.xlu2 %2598 }
0x1e3c   :  { %v2627_v22 = vand.u32 2147483648, %v2599_v59  ;;  %vm2621_vm7 = vweird.f32 %v2599_v59  ;;  %v2625_v31 = vand.u32 2147483647, %v2599_v59 }
0x1e3e   :  { %vm2626_vm10 = vcmp.eq.f32.partialorder %v2625_v31, 8.507059e+37 }
0x1e50   :  { %v2505_v13 = vpop.permute.xlu1 %2504 }
0x1e51   :  { %v2510_v36 = vmul.f32 %v2505_v13, %v3842_v8 }
0x1e53   :  { %v2532_v44 = vsel %vm53_vm1, %v2510_v36, 0.0  ;;  %v2628_v36 = vor.u32 1.1754944e-38, %v2627_v22 }
0x1e54   :  { %v2533_v34 = vrot.slane %v2532_v44, 4 }
0x1e56   :  { %v2534_v17 = vadd.f32 %v2533_v34, %v2532_v44 }
0x1e57   :  { %v2609_v51 = vpop.permute.xlu2 %2608 }
0x1e58   :  { %v2535_v28 = vrot.slane %v2534_v17, 2  ;;  %v2604_v14 = vpop.permute.xlu1 %2603  ;;  %v2657_v50 = vand.u32 2147483648, %v2609_v51  ;;  %vm2651_vm4 = vweird.f32 %v2609_v51  ;;  %v2655_v30 = vand.u32 2147483647, %v2609_v51 }
0x1e59   :  { %v2642_v12 = vand.u32 2147483648, %v2604_v14  ;;  %vm2636_vm15 = vweird.f32 %v2604_v14  ;;  %v2640_v3 = vand.u32 2147483647, %v2604_v14 }
0x1e5a   :  { %v2536_v37 = vadd.f32 %v2535_v28, %v2534_v17  ;;  %v2658_v13 = vor.u32 1.1754944e-38, %v2657_v50  ;;  %vm2656_vm9 = vcmp.eq.f32.partialorder %v2655_v30, 8.507059e+37 }
0x1e5b   :  { %v2643_v57 = vor.u32 1.1754944e-38, %v2642_v12  ;;  %vm2641_vm8 = vcmp.eq.f32.partialorder %v2640_v3, 8.507059e+37 }
0x1e5c   :  { %v2537_v45 = vrot.slane %v2536_v37, 1 }
0x1e5e   :  { %v2538_v42 = vadd.f32 %v2537_v45, %v2536_v37 }
0x1e60   :  { %v3860_v21 = vsub.f32 %v3440_v43, %v2538_v42 }
0x1e62   :  { %v2546_v16 = vmax.f32 %v3860_v21, 1e-12 }
0x1e64   :  { %3099 = vrsqrt.f32 %v2546_v16  ;;  %vm2590_vm12 = vcmp.eq.f32.partialorder %v2546_v16, inf  ;;  %v2593_v53 = vand.u32 2147483648, %v2546_v16  ;;  %vm2592_vm13 = vcmp.eq.f32.partialorder %v2546_v16, 0.0 }
0x1e65   :  { %3101 = vrcp.f32 %v2604_v14 }
0x1e66   :  { %3103 = vrcp.f32 %v2609_v51 }
0x1e67   :  { %3105 = vrcp.f32 %v2599_v59 }
0x1e6a   :  { %v3100_v29 = vpop.eup %3099 }
0x1e6b   :  { %v2584_v15 = vmul.f32 %v3100_v29, %v2546_v16  ;;  %v3102_v0 = vpop.eup %3101 }
0x1e6c   :  { %v3104_v62 = vpop.eup %3103  ;;  %v2632_v23 = vmul.f32 %v3102_v0, %v2604_v14  ;;  %vm2637_vm14 = vweird.f32 %v3102_v0 }
0x1e6d   :  { %v2585_v26 = vmul.f32 %v3100_v29, %v2584_v15  ;;  %v3106_v18 = vpop.eup %3105  ;;  %v2647_v4 = vmul.f32 %v3104_v62, %v2609_v51  ;;  %vm2652_vm0 = vweird.f32 %v3104_v62  ;;  %vm3870_vm2 = vmor %vm2636_vm15, %vm2637_vm14 }
0x1e6e   :  { %v2617_v61 = vmul.f32 %v3106_v18, %v2599_v59  ;;  %v2633_v56 = vsub.f32 1.0, %v2632_v23  ;;  %vm2622_vm3 = vweird.f32 %v3106_v18  ;;  %vm2653_vm6 = vmor %vm2651_vm4, %vm2652_vm0  ;;  %vm2766_vm4 = vcmask 60416  }
0x1e6f   :  { %v2586_v5 = vmul.f32 0.5, %v2585_v26  ;;  %v2648_v1 = vsub.f32 1.0, %v2647_v4  ;;  %vm2623_vm5 = vmor %vm2621_vm7, %vm2622_vm3  ;;  %vm2759_vm3 = vcmask 1042434  }
0x1e70   :  { %v2618_v38 = vsub.f32 1.0, %v2617_v61  ;;  %v2634_v11 = vmul.f32 %v3102_v0, %v2633_v56 }
0x1e71   :  { %v2587_v46 = vsub.f32 1.5, %v2586_v5  ;;  %v2649_v2 = vmul.f32 %v3104_v62, %v2648_v1 }
0x1e72   :  { %v2619_v63 = vmul.f32 %v3106_v18, %v2618_v38 }
0x1e73   :  { %v2588_v55 = vmul.f32 %v3100_v29, %v2587_v46  ;;  %v2650_v19 = vadd.f32 %v3104_v62, %v2649_v2 }
0x1e74   :  { %v2620_v47 = vadd.f32 %v3106_v18, %v2619_v63 }
0x1e75   :  { %v2589_v49 = vmul.f32 %v2588_v55, %v2546_v16  ;;  %v2654_v20 = vsel %vm2653_vm6, %v3104_v62, %v2650_v19  ;;  %v2709_v55 = vpop.permute.xlu2 %2708 }
0x1e76   :  { %v2624_v39 = vsel %vm2623_vm5, %v3106_v18, %v2620_v47  ;;  %v2659_v34 = vsel %vm2656_vm9, %v2658_v13, %v2654_v20 }
0x1e77   :  { %v2591_v54 = vsel %vm2590_vm12, %v2546_v16, %v2589_v49  ;;  %v2629_v17 = vsel %vm2626_vm10, %v2628_v36, %v2624_v39  ;;  %v2660_v28 = vmul.f32 %v2659_v34, %v3846_v35  ;;  %vm2682_vm12 = vcmp.eq.s32.totalorder %v3425_v32, 7  ;;  %v2704_v49 = vpop.permute.xlu1 %2703 }
0x1e78   :  { %v2594_v43 = vsel %vm2592_vm13, %v2593_v53, %v2591_v54  ;;  %v2630_v37 = vmul.f32 %v2629_v17, %v3828_v9  ;;  %v2858_v27 = vsel %vm2682_vm12, 1.0, %v3148_v48 }
0x1e79   :  { %2613 = vperm.xlu0 %2913, %v2594_v43   ;;  %v2680_v16 = vsel %vm2595_vm11, %v2660_v28, 0.0 }
0x1e7a   :  { %v2687_v15 = vperm.slane %v2680_v16, 7 }
0x1e7c   :  { %v2691_v9 = vmul.f32 %v2858_v27, %v2687_v15 }
0x1e7e   :  { %v2695_v54 = vadd.f32 %v2691_v9, %v3819_v24 }
0x1e7f   :  { %v2719_v30 = vpop.permute.xlu1 %2718 }
0x1e81   :  { %2916 = vset.pattern.permute.xlu0 %v3137_v7  ;;  %v2635_v7 = vadd.f32 %v3102_v0, %v2634_v11 }
0x1e82   :  { %2713 = vperm.xlu0 %2916, %v2699_v58  }
0x1e83   :  { %v2639_v41 = vsel %vm3870_vm2, %v3102_v0, %v2635_v7  ;;  %vm2757_vm2 = vcmask 1041409  }
0x1e84   :  { %v2644_v52 = vsel %vm2641_vm8, %v2643_v57, %v2639_v41 }
0x1e85   :  { %v2645_v44 = vmul.f32 %v2644_v52, %v3832_v25  ;;  %v2678_v25 = vsel %vm2595_vm11, %v2630_v37, 0.0 }
0x1e86   :  { %v2685_v26 = vperm.slane %v2678_v25, 7 }
0x1e87   :  { %v2679_v45 = vsel %vm2595_vm11, %v2645_v44, 0.0 }
0x1e88   :  { %v2686_v42 = vperm.slane %v2679_v45, 7  ;;  %v2689_v5 = vmul.f32 %v2858_v27, %v2685_v26 }
0x1e8a   :  { %v2690_v35 = vmul.f32 %v2858_v27, %v2686_v42  ;;  %v2693_v43 = vadd.f32 %v2689_v5, %v3803_v10 }
0x1e8c   :  { %v2694_v46 = vadd.f32 %v2690_v35, %v3816_v60  ;;  %v2721_v51 = vmul.f32 %v2704_v49, %v2693_v43 }
0x1e8e   :  { %v2722_v58 = vmul.f32 %v2709_v55, %v2694_v46  ;;  %v2725_v61 = vsel %vm53_vm1, %v2721_v51, 0.0 }
0x1e8f   :  { %v2726_v11 = vrot.slane %v2725_v61, 4 }
0x1e90   :  { %v2732_v18 = vsel %vm53_vm1, %v2722_v58, 0.0 }
0x1e91   :  { %v2733_v10 = vrot.slane %v2732_v18, 4  ;;  %v2727_v19 = vadd.f32 %v2726_v11, %v2725_v61 }
0x1e93   :  { %v2734_v63 = vadd.f32 %v2733_v10, %v2732_v18  ;;  %v2728_v22 = vrot.slane %v2727_v19, 2 }
0x1e95   :  { %v2735_v47 = vrot.slane %v2734_v63, 2 }
0x1e97   :  { %v2736_v31 = vadd.f32 %v2735_v47, %v2734_v63 }
0x1e99   :  { %v2737_v13 = vrot.slane %v2736_v31, 1 }
0x1e9b   :  { %v2738_v17 = vadd.f32 %v2737_v13, %v2736_v31 }
0x1eeb   :  { %v2614_v29 = vpop.permute.xlu0 %2613 }
0x1eec   :  { %3107 = vrcp.f32 %v2614_v29  ;;  %v2672_v0 = vand.u32 2147483648, %v2614_v29  ;;  %v2670_v23 = vand.u32 2147483647, %v2614_v29  ;;  %vm2666_vm14 = vweird.f32 %v2614_v29 }
0x1eee   :  { %v2673_v24 = vor.u32 1.1754944e-38, %v2672_v0  ;;  %vm2671_vm0 = vcmp.eq.f32.partialorder %v2670_v23, 8.507059e+37 }
0x1ef2   :  { %v3108_v32 = vpop.eup %3107 }
0x1ef3   :  { %v2662_v53 = vmul.f32 %v3108_v32, %v2614_v29  ;;  %vm2667_vm13 = vweird.f32 %v3108_v32 }
0x1ef4   :  { %v2714_v59 = vpop.permute.xlu0 %2713  ;;  %vm2668_vm15 = vmor %vm2666_vm14, %vm2667_vm13 }
0x1ef5   :  { %v2663_v48 = vsub.f32 1.0, %v2662_v53  ;;  %v2723_v14 = vmul.f32 %v2714_v59, %v2695_v54 }
0x1ef7   :  { %v2664_v62 = vmul.f32 %v3108_v32, %v2663_v48  ;;  %v2739_v4 = vsel %vm53_vm1, %v2723_v14, 0.0 }
0x1ef8   :  { %v2740_v1 = vrot.slane %v2739_v4, 4 }
0x1ef9   :  { %v2665_v60 = vadd.f32 %v3108_v32, %v2664_v62 }
0x1efa   :  { %v2741_v12 = vadd.f32 %v2740_v1, %v2739_v4 }
0x1efb   :  { %v2669_v56 = vsel %vm2668_vm15, %v3108_v32, %v2665_v60 }
0x1efc   :  { %v2674_v38 = vsel %vm2671_vm0, %v2673_v24, %v2669_v56  ;;  %v2742_v50 = vrot.slane %v2741_v12, 2 }
0x1efd   :  { %v2675_v2 = vmul.f32 %v2674_v38, %v3860_v21  ;;  %v2729_v21 = vadd.f32 %v2728_v22, %v2727_v19 }
0x1efe   :  { %v2743_v20 = vadd.f32 %v2742_v50, %v2741_v12 }
0x1eff   :  { %v2681_v7 = vsel %vm2595_vm11, %v2675_v2, 0.0  ;;  %v2730_v44 = vrot.slane %v2729_v21, 1 }
0x1f00   :  { %v2688_v3 = vperm.slane %v2681_v7, 7  ;;  %v2744_v36 = vrot.slane %v2743_v20, 1 }
0x1f01   :  { %v2731_v42 = vadd.f32 %v2730_v44, %v2729_v21 }
0x1f02   :  { %v2692_v6 = vmul.f32 %v2858_v27, %v2688_v3  ;;  %v2745_v45 = vadd.f32 %v2744_v36, %v2743_v20 }
0x1f03   :  { %v2758_v25 = vsel %vm2757_vm2, %v2738_v17, %v2731_v42 }
0x1f04   :  { %v2696_v41 = vadd.f32 %v2692_v6, %v3842_v8  ;;  %v3110_v8 = vld [vmem:[%s3917_s11 + $0x8] sm:$0x3f]  ;;  %v2760_v15 = vsel %vm2759_vm3, %v2745_v45, %v2758_v25 }
0x1f05   :  { %v785_v37 = vperm.slane %v3110_v8, 1 }
0x1f06   :  { %v2724_v57 = vmul.f32 %v2719_v30, %v2696_v41 }
0x1f07   :  { %v805_v29 = vadd.f32 %v3399_v40, %v785_v37 }
0x1f08   :  { %v2746_v52 = vsel %vm53_vm1, %v2724_v57, 0.0  ;;  %vm2761_vm1 = vcmask 1043459  }
0x1f09   :  { %v2747_v39 = vrot.slane %v2746_v52, 4 }
0x1f0b   :  { %v2748_v33 = vadd.f32 %v2747_v39, %v2746_v52 }
0x1f0d   :  { %v2749_v34 = vrot.slane %v2748_v33, 2 }
0x1f0f   :  { %v2750_v28 = vadd.f32 %v2749_v34, %v2748_v33 }
0x1f11   :  { %v2751_v16 = vrot.slane %v2750_v28, 1 }
0x1f13   :  { %v2752_v27 = vadd.f32 %v2751_v16, %v2750_v28 }
0x1f15   :  { %v2762_v26 = vsel %vm2761_vm1, %v2752_v27, %v2760_v15 }
0x1f16   :  { %v2764_v35 = vadd.f32 %v2762_v26, %v805_v29 }
0x1f18   :  { %2767 = vst.msk [vmem:[#allocation2] sm:$0xf] %vm2766_vm4, %v2764_v35 }
0x1f19   :  { %2778 = dma.vmem_to_hbm [thread:$0]  %s2774_s1, 64, %s2776_s27, [#allocation3]  }
0x1f1a   :  { %3135 = dma.done.wait [#allocation3], 64  }
0x1f1b   :  { %3136 = vsyncadd [#allocation3], 4294967232 }
0x1f1c   :  { %2783 = vsyncpa [#allocation3], 1 }

</bundles_post_ra>
